<compile_context>
chip_gen: v6e
topology: v6e:2x2x1
jax: 0.10.0
libtpu: 0.0.40
codegen_flags: <defaults>
</compile_context>

<pallas_src>
import jax
import jax.numpy as jnp
import numpy as np
from jax.experimental import pallas as pl
from jax.experimental.pallas import tpu as pltpu

# ---- module hyper-parameters (match nn.Module __init__) --------------------
DIM = 4            # input/output channels
HEADS = 4
DIM_HEAD = 32
HIDDEN = HEADS * DIM_HEAD          # 128
SCALE = DIM_HEAD ** (-0.5)


# ---- Pallas kernel: one (batch, query-block) tile ---------------------------
def attention_kernel(x_kv_ref, x_q_ref, wq_ref, wv_ref, wkt_ref, wout_ref,
                     bout_ref, o_ref, acc_ref):
    # x_kv_ref: (C, HW)       activations, ALL key/value positions
    # x_q_ref : (C, TQ)       activations, this query-column block
    # wq_ref  : (HIDDEN, C)   Q rows of to_qkv, pre-scaled by SCALE
    # wv_ref  : (HIDDEN, C)   V rows of to_qkv
    # wkt_ref : (C, HIDDEN)   K rows of to_qkv, pre-transposed (lane-dense)
    # wout_ref: (C, HIDDEN)   to_out 1x1-conv weight (lane-dense)
    # bout_ref: (C, 1)        to_out bias
    # o_ref   : (C, TQ)       output block
    # acc_ref : (HIDDEN, TQ)  f32 VMEM scratch for concatenated head outputs
    x_kv = x_kv_ref[...]                                        # (C, HW)
    xT = x_kv.T                                                 # (HW, C) tiny transpose

    # K projection for ALL heads at once (hoisted out of the head loop);
    # result is directly K^T per head after a column slice.
    kT_all = jnp.dot(xT, wkt_ref[...],
                     preferred_element_type=jnp.float32)        # (HW, HIDDEN)

    # V projection over all key positions; Q projection over the query block
    # only (SCALE already folded into wq).  bf16 MXU operands, f32 accumulate.
    v_all = jnp.dot(wv_ref[...], x_kv,
                    preferred_element_type=jnp.float32).astype(jnp.bfloat16)   # (HIDDEN, HW)
    q_all = jnp.dot(wq_ref[...], x_q_ref[...],
                    preferred_element_type=jnp.float32).astype(jnp.bfloat16)   # (HIDDEN, TQ)

    for hd in range(HEADS):
        rs = hd * DIM_HEAD
        q_h = q_all[rs:rs + DIM_HEAD, :]                        # (DH, TQ) bf16
        v_h = v_all[rs:rs + DIM_HEAD, :]                        # (DH, HW) bf16
        kT_h = kT_all[:, rs:rs + DIM_HEAD].astype(jnp.bfloat16)  # (HW, DH) bf16

        # simT[j, i] = sum_d k[d, j] * (scale * q[d, i])  (bf16 in, f32 out)
        simT = jnp.dot(kT_h, q_h, preferred_element_type=jnp.float32)   # (HW, TQ)

        # softmax over keys (axis 0), f32 math; normalization DEFERRED.
        simT = simT - jnp.max(simT, axis=0, keepdims=True)
        e = jnp.exp(simT)                                       # (HW, TQ) f32
        denom = jnp.sum(e, axis=0, keepdims=True)               # (1, TQ)  f32

        # pv[d, i] = sum_j v[d, j] * e[j, i]   (bf16 in, f32 out)
        pv = jnp.dot(v_h, e.astype(jnp.bfloat16),
                     preferred_element_type=jnp.float32)        # (DH, TQ)

        # Deferred normalization on the small (DH, TQ) tile only (EUP recip).
        acc_ref[rs:rs + DIM_HEAD, :] = pv * pl.reciprocal(denom, approx=True)

    # Single fused to_out projection, K = HIDDEN = 128, bias added once.
    y = jnp.dot(wout_ref[...], acc_ref[...],
                preferred_element_type=jnp.float32)             # (C, TQ)
    o_ref[...] = (y + bout_ref[...]).astype(o_ref.dtype)


# ---- one-time weight preparation (module-init time, not per call) -----------
def prepare_attention_weights(w_qkv, w_out, b_out):
    """w_qkv: (3*HIDDEN, C) conv1x1 weight (no bias); w_out: (C, HIDDEN); b_out: (C,)."""
    w_q = w_qkv[:HIDDEN] * SCALE                   # fold SCALE (exact: to_qkv has no bias)
    w_k_t = jnp.asarray(w_qkv[HIDDEN:2 * HIDDEN].T)  # (C, HIDDEN) lane-dense
    w_v = w_qkv[2 * HIDDEN:]                       # (HIDDEN, C)
    b_out2 = b_out.reshape(-1, 1)                  # (C, 1)
    return (w_q, w_v, w_k_t, w_out, b_out2)


def _num_query_blocks(hw):
    """Split the query columns across the 2 TensorCores on v7x only."""
    try:
        kind = jax.devices()[0].device_kind.lower()
    except Exception:
        kind = ""
    if "v7" in kind and hw % 256 == 0:
        return 2          # TQ = hw // 2, still a multiple of 128 (lane-dense stores)
    return 1              # v5e / v6e: single TC, extra grid steps are pure overhead


# ---- wrapper ----------------------------------------------------------------
def attention_forward(x_nchw, prepared_weights):
    """x_nchw: (B, C, H, W) float32.  Returns (B, C, H, W)."""
    w_q, w_v, w_k_t, w_out, b_out2 = prepared_weights
    b, c, h, w = x_nchw.shape
    hw = h * w

    # (B, C, H, W) -> (B, C, HW): pure reshape, NO transpose (HW stays on lanes).
    x_flat = x_nchw.reshape(b, c, hw)

    nqb = _num_query_blocks(hw)
    tq = hw // nqb

    out_flat = pl.pallas_call(
        attention_kernel,
        out_shape=jax.ShapeDtypeStruct((b, c, hw), x_nchw.dtype),
        grid_spec=pltpu.PrefetchScalarGridSpec(
            num_scalar_prefetch=0,
            grid=(b, nqb),
            in_specs=[
                # full activations for K/V (all key positions)
                pl.BlockSpec((pl.Squeezed(), c, hw), lambda i, j: (i, 0, 0)),
                # query-column block of the same activations
                pl.BlockSpec((pl.Squeezed(), c, tq), lambda i, j: (i, 0, j)),
                pl.BlockSpec((HIDDEN, c), lambda i, j: (0, 0)),   # w_q (pre-scaled)
                pl.BlockSpec((HIDDEN, c), lambda i, j: (0, 0)),   # w_v
                pl.BlockSpec((c, HIDDEN), lambda i, j: (0, 0)),   # w_k^T
                pl.BlockSpec((c, HIDDEN), lambda i, j: (0, 0)),   # w_out
                pl.BlockSpec((c, 1), lambda i, j: (0, 0)),        # b_out
            ],
            out_specs=pl.BlockSpec((pl.Squeezed(), c, tq), lambda i, j: (i, 0, j)),
            scratch_shapes=[pltpu.VMEM((HIDDEN, tq), jnp.float32)],
        ),
        compiler_params=pltpu.CompilerParams(
            dimension_semantics=("parallel", "parallel")),
    )(x_flat, x_flat, w_q, w_v, w_k_t, w_out, b_out2)

    # (B, C, HW) -> NCHW: pure reshape, no transpose.
    return out_flat.reshape(b, c, h, w)


# ---- pure-JAX reference (mirrors the PyTorch forward exactly) ---------------
def attention_reference(x_nchw, w_qkv, w_out, b_out):
    b, c, h, w = x_nchw.shape
    hw = h * w
    x_flat = x_nchw.reshape(b, c, hw)                       # (B, C, HW)
    qkv = jnp.einsum('oc,bcn->bon', w_qkv, x_flat)          # (B, 3H, HW)
    q, k, v = jnp.split(qkv, 3, axis=1)
    def to_heads(t):
        return t.reshape(b, HEADS, DIM_HEAD, hw)            # (B, h, d, HW)
    q, k, v = map(to_heads, (q, k, v))
    q = q * SCALE
    sim = jnp.einsum('bhdi,bhdj->bhij', q, k)
    sim = sim - jnp.max(sim, axis=-1, keepdims=True)
    attn = jax.nn.softmax(sim, axis=-1)
    out = jnp.einsum('bhij,bhdj->bhid', attn, v)            # (B, h, HW, d)
    out = out.transpose(0, 1, 3, 2).reshape(b, HIDDEN, h, w)  # b (h d) x y
    y = jnp.einsum('oc,bcxy->boxy', w_out, out) + b_out[None, :, None, None]
    return y


if __name__ == "__main__":
    B, C, H, W = 2, DIM, 16, 16

    key = jax.random.PRNGKey(0)
    kx, k1, k2, k3 = jax.random.split(key, 4)

    x = jax.random.normal(kx, (B, C, H, W), dtype=jnp.float32)
    # to_qkv: Conv2d(dim, hidden*3, 1, bias=False) -> weight (3*hidden, dim)
    w_qkv = jax.random.normal(k1, (3 * HIDDEN, DIM), dtype=jnp.float32) * 0.05
    # to_out: Conv2d(hidden, dim, 1) -> weight (dim, hidden), bias (dim,)
    w_out = jax.random.normal(k2, (DIM, HIDDEN), dtype=jnp.float32) * 0.05
    b_out = jax.random.normal(k3, (DIM,), dtype=jnp.float32) * 0.05

    # Weight prep happens once, outside the per-call path.
    prepared = prepare_attention_weights(w_qkv, w_out, b_out)
    prepared = jax.tree_util.tree_map(jax.block_until_ready, prepared)

    y = attention_forward(x, prepared)
    y = jax.block_until_ready(y)

    y_ref = attention_reference(x, w_qkv, w_out, b_out)
    assert y.shape == (B, C, H, W)
    # Tolerance absorbs bf16 MXU operands (f32 accumulate) and the approximate
    # EUP reciprocal in the deferred softmax normalization.
    np.testing.assert_allclose(np.asarray(y), np.asarray(y_ref),
                               rtol=3e-3, atol=3e-3)
    print("KERNEL_OK")
</pallas_src>

<mosaic_0001>
module attributes {stable_mosaic.version = 11 : i64} {
  func.func @attention_kernel(%arg0: i32, %arg1: i32, %arg2: memref<1x4x256xf32, #tpu.memory_space<vmem>>, %arg3: memref<1x4x256xf32, #tpu.memory_space<vmem>>, %arg4: memref<128x4xf32, #tpu.memory_space<vmem>>, %arg5: memref<128x4xf32, #tpu.memory_space<vmem>>, %arg6: memref<4x128xf32, #tpu.memory_space<vmem>>, %arg7: memref<4x128xf32, #tpu.memory_space<vmem>>, %arg8: memref<4x1xf32, #tpu.memory_space<vmem>>, %arg9: memref<1x4x256xf32, #tpu.memory_space<vmem>>, %arg10: memref<128x256xf32, #tpu.memory_space<vmem>>) attributes {dimension_semantics = [#tpu.dimension_semantics<parallel>, #tpu.dimension_semantics<parallel>], iteration_bounds = array<i64: 2, 1>, scalar_prefetch = 0 : i64, scratch_operands = 1 : i64, tpu.core_type = #tpu.core_type<tc>, window_params = [{transform_indices = @transform_0, window_bounds = array<i64: 1, 4, 256>}, {transform_indices = @transform_1, window_bounds = array<i64: 1, 4, 256>}, {pipeline_mode = #tpu.pipeline_mode<synchronous>, transform_indices = @transform_2, window_bounds = array<i64: 128, 4>}, {pipeline_mode = #tpu.pipeline_mode<synchronous>, transform_indices = @transform_3, window_bounds = array<i64: 128, 4>}, {pipeline_mode = #tpu.pipeline_mode<synchronous>, transform_indices = @transform_4, window_bounds = array<i64: 4, 128>}, {pipeline_mode = #tpu.pipeline_mode<synchronous>, transform_indices = @transform_5, window_bounds = array<i64: 4, 128>}, {pipeline_mode = #tpu.pipeline_mode<synchronous>, transform_indices = @transform_6, window_bounds = array<i64: 4, 1>}, {transform_indices = @transform_7, window_bounds = array<i64: 1, 4, 256>}]} {
    %c0 = arith.constant 0 : index
    %c0_0 = arith.constant 0 : index
    %c0_1 = arith.constant 0 : index
    %0 = vector.load %arg2[%c0, %c0_0, %c0_1] : memref<1x4x256xf32, #tpu.memory_space<vmem>>, vector<1x4x256xf32>
    %1 = vector.shape_cast %0 : vector<1x4x256xf32> to vector<4x256xf32>
    %2 = tpu.transpose %1, [1, 0] : vector<4x256xf32> -> vector<256x4xf32>
    %c0_2 = arith.constant 0 : index
    %c0_3 = arith.constant 0 : index
    %3 = vector.load %arg6[%c0_2, %c0_3] : memref<4x128xf32, #tpu.memory_space<vmem>>, vector<4x128xf32>
    %cst = arith.constant dense<0.000000e+00> : vector<256x128xf32>
    %4 = tpu.matmul %2, %3, %cst {dimension_numbers = #tpu.dot_dimension_numbers<[1], [0], [0], [1], [0, 0, 1, 1], [], []>} : vector<256x4xf32>, vector<4x128xf32>, vector<256x128xf32> -> vector<256x128xf32>
    %c0_4 = arith.constant 0 : index
    %c0_5 = arith.constant 0 : index
    %5 = vector.load %arg5[%c0_4, %c0_5] : memref<128x4xf32, #tpu.memory_space<vmem>>, vector<128x4xf32>
    %cst_6 = arith.constant dense<0.000000e+00> : vector<128x256xf32>
    %6 = tpu.matmul %5, %1, %cst_6 {dimension_numbers = #tpu.dot_dimension_numbers<[1], [0], [0], [1], [0, 0, 1, 1], [], []>} : vector<128x4xf32>, vector<4x256xf32>, vector<128x256xf32> -> vector<128x256xf32>
    %7 = arith.truncf %6 : vector<128x256xf32> to vector<128x256xbf16>
    %c0_7 = arith.constant 0 : index
    %c0_8 = arith.constant 0 : index
    %8 = vector.load %arg4[%c0_7, %c0_8] : memref<128x4xf32, #tpu.memory_space<vmem>>, vector<128x4xf32>
    %c0_9 = arith.constant 0 : index
    %c0_10 = arith.constant 0 : index
    %c0_11 = arith.constant 0 : index
    %9 = vector.load %arg3[%c0_9, %c0_10, %c0_11] : memref<1x4x256xf32, #tpu.memory_space<vmem>>, vector<1x4x256xf32>
    %10 = vector.shape_cast %9 : vector<1x4x256xf32> to vector<4x256xf32>
    %cst_12 = arith.constant dense<0.000000e+00> : vector<128x256xf32>
    %11 = tpu.matmul %8, %10, %cst_12 {dimension_numbers = #tpu.dot_dimension_numbers<[1], [0], [0], [1], [0, 0, 1, 1], [], []>} : vector<128x4xf32>, vector<4x256xf32>, vector<128x256xf32> -> vector<128x256xf32>
    %12 = arith.truncf %11 : vector<128x256xf32> to vector<128x256xbf16>
    %13 = vector.extract_strided_slice %12 {offsets = [0, 0], sizes = [32, 256], strides = [1, 1]} : vector<128x256xbf16> to vector<32x256xbf16>
    %14 = vector.extract_strided_slice %7 {offsets = [0, 0], sizes = [32, 256], strides = [1, 1]} : vector<128x256xbf16> to vector<32x256xbf16>
    %15 = vector.extract_strided_slice %4 {offsets = [0, 0], sizes = [256, 32], strides = [1, 1]} : vector<256x128xf32> to vector<256x32xf32>
    %16 = arith.truncf %15 : vector<256x32xf32> to vector<256x32xbf16>
    %cst_13 = arith.constant dense<0.000000e+00> : vector<256x256xf32>
    %17 = tpu.matmul %16, %13, %cst_13 {dimension_numbers = #tpu.dot_dimension_numbers<[1], [0], [0], [1], [0, 0, 1, 1], [], []>} : vector<256x32xbf16>, vector<32x256xbf16>, vector<256x256xf32> -> vector<256x256xf32>
    %cst_14 = arith.constant dense<0xFF800000> : vector<256xf32>
    %18 = vector.multi_reduction <maximumf>, %17, %cst_14 [0] : vector<256x256xf32> to vector<256xf32>
    %19 = vector.shape_cast %18 : vector<256xf32> to vector<1x256xf32>
    %20 = vector.broadcast %19 : vector<1x256xf32> to vector<256x256xf32>
    %21 = arith.subf %17, %20 : vector<256x256xf32>
    %22 = math.exp %21 : vector<256x256xf32>
    %cst_15 = arith.constant dense<0.000000e+00> : vector<256xf32>
    %23 = vector.multi_reduction <add>, %22, %cst_15 [0] : vector<256x256xf32> to vector<256xf32>
    %24 = vector.shape_cast %23 : vector<256xf32> to vector<1x256xf32>
    %25 = arith.truncf %22 : vector<256x256xf32> to vector<256x256xbf16>
    %cst_16 = arith.constant dense<0.000000e+00> : vector<32x256xf32>
    %26 = tpu.matmul %14, %25, %cst_16 {dimension_numbers = #tpu.dot_dimension_numbers<[1], [0], [0], [1], [0, 0, 1, 1], [], []>} : vector<32x256xbf16>, vector<256x256xbf16>, vector<32x256xf32> -> vector<32x256xf32>
    %27 = tpu.reciprocal %24 {approx = true} : vector<1x256xf32> -> vector<1x256xf32>
    %28 = vector.broadcast %27 : vector<1x256xf32> to vector<32x256xf32>
    %29 = arith.mulf %26, %28 : vector<32x256xf32>
    %c0_17 = arith.constant 0 : index
    %c0_18 = arith.constant 0 : index
    %30 = vector.load %arg10[%c0_17, %c0_18] : memref<128x256xf32, #tpu.memory_space<vmem>>, vector<32x256xf32>
    tpu.vector_store %arg10[%c0_17, %c0_18], %29 {strides = array<i32>} : memref<128x256xf32, #tpu.memory_space<vmem>>, vector<32x256xf32>,
    %31 = vector.extract_strided_slice %12 {offsets = [32, 0], sizes = [32, 256], strides = [1, 1]} : vector<128x256xbf16> to vector<32x256xbf16>
    %32 = vector.extract_strided_slice %7 {offsets = [32, 0], sizes = [32, 256], strides = [1, 1]} : vector<128x256xbf16> to vector<32x256xbf16>
    %33 = vector.extract_strided_slice %4 {offsets = [0, 32], sizes = [256, 32], strides = [1, 1]} : vector<256x128xf32> to vector<256x32xf32>
    %34 = arith.truncf %33 : vector<256x32xf32> to vector<256x32xbf16>
    %cst_19 = arith.constant dense<0.000000e+00> : vector<256x256xf32>
    %35 = tpu.matmul %34, %31, %cst_19 {dimension_numbers = #tpu.dot_dimension_numbers<[1], [0], [0], [1], [0, 0, 1, 1], [], []>} : vector<256x32xbf16>, vector<32x256xbf16>, vector<256x256xf32> -> vector<256x256xf32>
    %cst_20 = arith.constant dense<0xFF800000> : vector<256xf32>
    %36 = vector.multi_reduction <maximumf>, %35, %cst_20 [0] : vector<256x256xf32> to vector<256xf32>
    %37 = vector.shape_cast %36 : vector<256xf32> to vector<1x256xf32>
    %38 = vector.broadcast %37 : vector<1x256xf32> to vector<256x256xf32>
    %39 = arith.subf %35, %38 : vector<256x256xf32>
    %40 = math.exp %39 : vector<256x256xf32>
    %cst_21 = arith.constant dense<0.000000e+00> : vector<256xf32>
    %41 = vector.multi_reduction <add>, %40, %cst_21 [0] : vector<256x256xf32> to vector<256xf32>
    %42 = vector.shape_cast %41 : vector<256xf32> to vector<1x256xf32>
    %43 = arith.truncf %40 : vector<256x256xf32> to vector<256x256xbf16>
    %cst_22 = arith.constant dense<0.000000e+00> : vector<32x256xf32>
    %44 = tpu.matmul %32, %43, %cst_22 {dimension_numbers = #tpu.dot_dimension_numbers<[1], [0], [0], [1], [0, 0, 1, 1], [], []>} : vector<32x256xbf16>, vector<256x256xbf16>, vector<32x256xf32> -> vector<32x256xf32>
    %45 = tpu.reciprocal %42 {approx = true} : vector<1x256xf32> -> vector<1x256xf32>
    %46 = vector.broadcast %45 : vector<1x256xf32> to vector<32x256xf32>
    %47 = arith.mulf %44, %46 : vector<32x256xf32>
    %c32 = arith.constant 32 : index
    %c0_23 = arith.constant 0 : index
    %48 = vector.load %arg10[%c32, %c0_23] : memref<128x256xf32, #tpu.memory_space<vmem>>, vector<32x256xf32>
    tpu.vector_store %arg10[%c32, %c0_23], %47 {strides = array<i32>} : memref<128x256xf32, #tpu.memory_space<vmem>>, vector<32x256xf32>,
    %49 = vector.extract_strided_slice %12 {offsets = [64, 0], sizes = [32, 256], strides = [1, 1]} : vector<128x256xbf16> to vector<32x256xbf16>
    %50 = vector.extract_strided_slice %7 {offsets = [64, 0], sizes = [32, 256], strides = [1, 1]} : vector<128x256xbf16> to vector<32x256xbf16>
    %51 = vector.extract_strided_slice %4 {offsets = [0, 64], sizes = [256, 32], strides = [1, 1]} : vector<256x128xf32> to vector<256x32xf32>
    %52 = arith.truncf %51 : vector<256x32xf32> to vector<256x32xbf16>
    %cst_24 = arith.constant dense<0.000000e+00> : vector<256x256xf32>
    %53 = tpu.matmul %52, %49, %cst_24 {dimension_numbers = #tpu.dot_dimension_numbers<[1], [0], [0], [1], [0, 0, 1, 1], [], []>} : vector<256x32xbf16>, vector<32x256xbf16>, vector<256x256xf32> -> vector<256x256xf32>
    %cst_25 = arith.constant dense<0xFF800000> : vector<256xf32>
    %54 = vector.multi_reduction <maximumf>, %53, %cst_25 [0] : vector<256x256xf32> to vector<256xf32>
    %55 = vector.shape_cast %54 : vector<256xf32> to vector<1x256xf32>
    %56 = vector.broadcast %55 : vector<1x256xf32> to vector<256x256xf32>
    %57 = arith.subf %53, %56 : vector<256x256xf32>
    %58 = math.exp %57 : vector<256x256xf32>
    %cst_26 = arith.constant dense<0.000000e+00> : vector<256xf32>
    %59 = vector.multi_reduction <add>, %58, %cst_26 [0] : vector<256x256xf32> to vector<256xf32>
    %60 = vector.shape_cast %59 : vector<256xf32> to vector<1x256xf32>
    %61 = arith.truncf %58 : vector<256x256xf32> to vector<256x256xbf16>
    %cst_27 = arith.constant dense<0.000000e+00> : vector<32x256xf32>
    %62 = tpu.matmul %50, %61, %cst_27 {dimension_numbers = #tpu.dot_dimension_numbers<[1], [0], [0], [1], [0, 0, 1, 1], [], []>} : vector<32x256xbf16>, vector<256x256xbf16>, vector<32x256xf32> -> vector<32x256xf32>
    %63 = tpu.reciprocal %60 {approx = true} : vector<1x256xf32> -> vector<1x256xf32>
    %64 = vector.broadcast %63 : vector<1x256xf32> to vector<32x256xf32>
    %65 = arith.mulf %62, %64 : vector<32x256xf32>
    %c64 = arith.constant 64 : index
    %c0_28 = arith.constant 0 : index
    %66 = vector.load %arg10[%c64, %c0_28] : memref<128x256xf32, #tpu.memory_space<vmem>>, vector<32x256xf32>
    tpu.vector_store %arg10[%c64, %c0_28], %65 {strides = array<i32>} : memref<128x256xf32, #tpu.memory_space<vmem>>, vector<32x256xf32>,
    %67 = vector.extract_strided_slice %12 {offsets = [96, 0], sizes = [32, 256], strides = [1, 1]} : vector<128x256xbf16> to vector<32x256xbf16>
    %68 = vector.extract_strided_slice %7 {offsets = [96, 0], sizes = [32, 256], strides = [1, 1]} : vector<128x256xbf16> to vector<32x256xbf16>
    %69 = vector.extract_strided_slice %4 {offsets = [0, 96], sizes = [256, 32], strides = [1, 1]} : vector<256x128xf32> to vector<256x32xf32>
    %70 = arith.truncf %69 : vector<256x32xf32> to vector<256x32xbf16>
    %cst_29 = arith.constant dense<0.000000e+00> : vector<256x256xf32>
    %71 = tpu.matmul %70, %67, %cst_29 {dimension_numbers = #tpu.dot_dimension_numbers<[1], [0], [0], [1], [0, 0, 1, 1], [], []>} : vector<256x32xbf16>, vector<32x256xbf16>, vector<256x256xf32> -> vector<256x256xf32>
    %cst_30 = arith.constant dense<0xFF800000> : vector<256xf32>
    %72 = vector.multi_reduction <maximumf>, %71, %cst_30 [0] : vector<256x256xf32> to vector<256xf32>
    %73 = vector.shape_cast %72 : vector<256xf32> to vector<1x256xf32>
    %74 = vector.broadcast %73 : vector<1x256xf32> to vector<256x256xf32>
    %75 = arith.subf %71, %74 : vector<256x256xf32>
    %76 = math.exp %75 : vector<256x256xf32>
    %cst_31 = arith.constant dense<0.000000e+00> : vector<256xf32>
    %77 = vector.multi_reduction <add>, %76, %cst_31 [0] : vector<256x256xf32> to vector<256xf32>
    %78 = vector.shape_cast %77 : vector<256xf32> to vector<1x256xf32>
    %79 = arith.truncf %76 : vector<256x256xf32> to vector<256x256xbf16>
    %cst_32 = arith.constant dense<0.000000e+00> : vector<32x256xf32>
    %80 = tpu.matmul %68, %79, %cst_32 {dimension_numbers = #tpu.dot_dimension_numbers<[1], [0], [0], [1], [0, 0, 1, 1], [], []>} : vector<32x256xbf16>, vector<256x256xbf16>, vector<32x256xf32> -> vector<32x256xf32>
    %81 = tpu.reciprocal %78 {approx = true} : vector<1x256xf32> -> vector<1x256xf32>
    %82 = vector.broadcast %81 : vector<1x256xf32> to vector<32x256xf32>
    %83 = arith.mulf %80, %82 : vector<32x256xf32>
    %c96 = arith.constant 96 : index
    %c0_33 = arith.constant 0 : index
    %84 = vector.load %arg10[%c96, %c0_33] : memref<128x256xf32, #tpu.memory_space<vmem>>, vector<32x256xf32>
    tpu.vector_store %arg10[%c96, %c0_33], %83 {strides = array<i32>} : memref<128x256xf32, #tpu.memory_space<vmem>>, vector<32x256xf32>,
    %c0_34 = arith.constant 0 : index
    %c0_35 = arith.constant 0 : index
    %85 = vector.load %arg7[%c0_34, %c0_35] : memref<4x128xf32, #tpu.memory_space<vmem>>, vector<4x128xf32>
    %c0_36 = arith.constant 0 : index
    %c0_37 = arith.constant 0 : index
    %86 = vector.load %arg10[%c0_36, %c0_37] : memref<128x256xf32, #tpu.memory_space<vmem>>, vector<128x256xf32>
    %cst_38 = arith.constant dense<0.000000e+00> : vector<4x256xf32>
    %87 = tpu.matmul %85, %86, %cst_38 {dimension_numbers = #tpu.dot_dimension_numbers<[1], [0], [0], [1], [0, 0, 1, 1], [], []>} : vector<4x128xf32>, vector<128x256xf32>, vector<4x256xf32> -> vector<4x256xf32>
    %c0_39 = arith.constant 0 : index
    %c0_40 = arith.constant 0 : index
    %88 = vector.load %arg8[%c0_39, %c0_40] : memref<4x1xf32, #tpu.memory_space<vmem>>, vector<4x1xf32>
    %89 = vector.broadcast %88 : vector<4x1xf32> to vector<4x256xf32>
    %90 = arith.addf %87, %89 : vector<4x256xf32>
    %c0_41 = arith.constant 0 : index
    %c0_42 = arith.constant 0 : index
    %c0_43 = arith.constant 0 : index
    %91 = vector.load %arg9[%c0_41, %c0_42, %c0_43] : memref<1x4x256xf32, #tpu.memory_space<vmem>>, vector<1x4x256xf32>
    %92 = vector.shape_cast %91 : vector<1x4x256xf32> to vector<4x256xf32>
    %93 = vector.shape_cast %90 : vector<4x256xf32> to vector<1x4x256xf32>
    tpu.vector_store %arg9[%c0_41, %c0_42, %c0_43], %93 {strides = array<i32>} : memref<1x4x256xf32, #tpu.memory_space<vmem>>, vector<1x4x256xf32>,
    return
  }
  func.func @transform_0(%arg0: i32, %arg1: i32) -> (i32, i32, i32) {
    %c0_i32 = arith.constant 0 : i32
    %c0_i32_0 = arith.constant 0 : i32
    %c0_i32_1 = arith.constant 0 : i32
    return %arg0, %c0_i32, %c0_i32_0 : i32, i32, i32
  }
  func.func @transform_1(%arg0: i32, %arg1: i32) -> (i32, i32, i32) {
    %c0_i32 = arith.constant 0 : i32
    %c0_i32_0 = arith.constant 0 : i32
    return %arg0, %c0_i32, %arg1 : i32, i32, i32
  }
  func.func @transform_2(%arg0: i32, %arg1: i32) -> (i32, i32) {
    %c0_i32 = arith.constant 0 : i32
    %c0_i32_0 = arith.constant 0 : i32
    %c0_i32_1 = arith.constant 0 : i32
    return %c0_i32, %c0_i32_0 : i32, i32
  }
  func.func @transform_3(%arg0: i32, %arg1: i32) -> (i32, i32) {
    %c0_i32 = arith.constant 0 : i32
    %c0_i32_0 = arith.constant 0 : i32
    %c0_i32_1 = arith.constant 0 : i32
    return %c0_i32, %c0_i32_0 : i32, i32
  }
  func.func @transform_4(%arg0: i32, %arg1: i32) -> (i32, i32) {
    %c0_i32 = arith.constant 0 : i32
    %c0_i32_0 = arith.constant 0 : i32
    %c0_i32_1 = arith.constant 0 : i32
    return %c0_i32, %c0_i32_0 : i32, i32
  }
  func.func @transform_5(%arg0: i32, %arg1: i32) -> (i32, i32) {
    %c0_i32 = arith.constant 0 : i32
    %c0_i32_0 = arith.constant 0 : i32
    %c0_i32_1 = arith.constant 0 : i32
    return %c0_i32, %c0_i32_0 : i32, i32
  }
  func.func @transform_6(%arg0: i32, %arg1: i32) -> (i32, i32) {
    %c0_i32 = arith.constant 0 : i32
    %c0_i32_0 = arith.constant 0 : i32
    %c0_i32_1 = arith.constant 0 : i32
    return %c0_i32, %c0_i32_0 : i32, i32
  }
  func.func @transform_7(%arg0: i32, %arg1: i32) -> (i32, i32, i32) {
    %c0_i32 = arith.constant 0 : i32
    %c0_i32_0 = arith.constant 0 : i32
    return %arg0, %c0_i32, %arg1 : i32, i32, i32
  }
}

</mosaic_0001>

<bundles_post_ra>
// kernel: tpu_custom_call.1
= control target key start
LH: loop header
LB: loop body
LE: loop exit
PB: predicated region body
PF: predicated region fallthrough
CT: control target
= control target key end

     0   :  { %12 = vsyncpa [#allocation4], 0  ;;  %s8210_s0 = inlined_call_operand.vmem [shape: f32[2,4,256], index: 0, kind: input, shape index: {}]   ;;  %s8211_s1 = inlined_call_operand.vmem [shape: f32[2,4,256], index: 1, kind: input, shape index: {}]   ;;  %s8212_s2 = inlined_call_operand.vmem [shape: f32[128,4], index: 2, kind: input, shape index: {}]   ;;  %s8213_s3 = inlined_call_operand.vmem [shape: f32[128,4], index: 3, kind: input, shape index: {}]   ;;  %s8214_s4 = inlined_call_operand.vmem [shape: f32[4,128], index: 4, kind: input, shape index: {}]   ;;  %s8215_s5 = inlined_call_operand.vmem [shape: f32[4,128], index: 5, kind: input, shape index: {}]   ;;  %s8216_s6 = inlined_call_operand.vmem [shape: f32[4,1], index: 6, kind: input, shape index: {}]   ;;  %s8217_s7 = inlined_call_operand.hbm [shape: f32[2,4,256], index: 7, kind: output, shape index: {}]  }
   0x1   :  { %14 = vsyncpa [#allocation4 + $0x1], 0  ;;  %s5254_s24 = smov 0   ;;  %s5256_s25 = smov 0  }
   0x2   :  { %s5258_s26 = smov 0   ;;  %s5260_s27 = smov 0  }
   0x3   :  { %s5262_s28 = smov 0   ;;  %s5264_s29 = smov 0  }
   0x4 LB: > { %s4302_s30 = sadd.s32 4294967295, %s5206_s29   ;;  %s4303_s8 = sadd.s32 4294967294, %s5206_s29   ;;  %s5206_s29 = sphi %s5264_s29, %s20_s29   ;;  %s5202_s28 = sphi %s5262_s28, %s8673_s28   ;;  %s5198_s27 = sphi %s5260_s27, %s8672_s27   ;;  %s5194_s26 = sphi %s5258_s26, %s8671_s26   ;;  %s5190_s25 = sphi %s5256_s25, %s8670_s25   ;;  %s5186_s24 = sphi %s5254_s24, %s8669_s24  }
   0x5   : > { %s32_s9 = sadd.s32 1, %s5202_s28  ;;  %s200_s10 = sadd.s32 1, %s5194_s26 }
   0x6   : > { %p34_p0 = scmp.ge.s32.totalorder %s32_s9, 2  ;;  %p210_p1 = scmp.ne.s32.totalorder %s5194_s26, %s5190_s25 }
   0x7   : > { %p211_p2 = scmp.eq.s32.totalorder %s4302_s30, 1  ;;  %p216_p3 = scmp.ne.s32.totalorder %s5190_s25, %s5186_s24 }
   0x8   : > { %s8675_s9 = smov (%p34_p0, %s32_s9), 0  ;;  %p217_p5 = scmp.eq.s32.totalorder %s4303_s8, 1 }
   0x9   : > { %p5294_p4 = por %p211_p2, %p210_p1  ;;  %s195_s12 = ssub.s32 %s5202_s28, %s8675_s9 }
   0xa   : > { %p4306_p6 = scmp.ge.s32.totalorder %s5206_s29, 1  ;;  %p198_p7 = scmp.eq.s32.totalorder %s195_s12, 0 }
   0xb   : > { %p5301_p8 = por %p217_p5, %p216_p3  ;;  %p271_p9 = scmp.lt.s32.totalorder %s5206_s29, 3 }
   0xc   : > { %s5307_s14 = scalar_select %p198_p7, %s5194_s26, %s200_s10  }
   0xd   : > { %p272_p10 = pnand %p4306_p6, %p271_p9 }
   0xf   : > { %275 = sbr.rel (%p272_p10) target bundleno = 2802 (0xaf2), region = 48 }
  0x14   : > { %p312_p11 = scmp.lt.s32.totalorder %s5198_s27, 1  ;;  %v397_v0 = vld [vmem:[%s8214_s4] sm:$0xf]  ;;  %vm495_vm0 = vcmask 1043456   ;;  %vm398_vm1 = vcmask 31744   ;;  %v8218_v27 = vmov 0.0  }
  0x15   : > { %4486 = vmatprep.subr.msk.mxu0 %vm495_vm0, %v397_v0  ;;  %4536 = vmatprep.subr.msk.mxu1 %vm495_vm0, %v397_v0  ;;  %v969_v28 = vld [vmem:[%s8212_s2] sm:$0xff]  ;;  %v970_v30 = vld [vmem:[%s8212_s2 + $0x8] sm:$0xff]  ;;  %v971_v32 = vld [vmem:[%s8212_s2 + $0x10] sm:$0xff]  ;;  %v8219_v55 = vmov 0   ;;  %s5210_s10 = smov 96   ;;  %s5211_s12 = smov 64  }
  0x16   : > { %s313_s15 = scalar_select %p312_p11, %s5198_s27, 1  ;;  %4487 = vmatpush3.msk.msra.mxu0 %vm495_vm0, %v397_v0  ;;  %4537 = vmatpush3.msk.msra.mxu1 %vm495_vm0, %v397_v0  ;;  %v972_v34 = vld [vmem:[%s8212_s2 + $0x18] sm:$0xff]  ;;  %v724_v42 = vld [vmem:[%s8213_s3] sm:$0xff]  ;;  %v725_v43 = vld [vmem:[%s8213_s3 + $0x8] sm:$0xff]  ;;  %vm1233_vm2 = vcmask 261120  }
  0x17   : > { %v726_v44 = vld [vmem:[%s8213_s3 + $0x10] sm:$0xff]  ;;  %v727_v45 = vld [vmem:[%s8213_s3 + $0x18] sm:$0xff]  ;;  %v728_v46 = vld [vmem:[%s8213_s3 + $0x20] sm:$0xff]  ;;  %4598 = vset.pattern.permute.xlu1 %v8219_v55  ;;  %s5212_s18 = smov 32   ;;  %s309_s20 = sand.u32 1, %s5190_s25  }
  0x18   : > { %s4450_s16 = sshll.u32 %s313_s15, 3  ;;  %v729_v47 = vld [vmem:[%s8213_s3 + $0x28] sm:$0xff]  ;;  %v730_v48 = vld [vmem:[%s8213_s3 + $0x30] sm:$0xff]  ;;  %v731_v49 = vld [vmem:[%s8213_s3 + $0x38] sm:$0xff]  ;;  %s4452_s22 = sshll.u32 %s5198_s27, 7 }
  0x19   : > { %s316_s21 = scalar_lea.vmem %s8210_s0, %s4450_s16  ;;  %s325_s30 = scalar_lea.vmem %s8211_s1, %s4450_s16  ;;  %v732_v50 = vld [vmem:[%s8213_s3 + $0x40] sm:$0xff]  ;;  %v733_v51 = vld [vmem:[%s8213_s3 + $0x48] sm:$0xff]  ;;  %v734_v52 = vld [vmem:[%s8213_s3 + $0x50] sm:$0xff] }
  0x1a   : > { %v5322_v1 = vld [vmem:[%s316_s21] sm:$0xff]  ;;  %v735_v53 = vld [vmem:[%s8213_s3 + $0x58] sm:$0xff]  ;;  %v737_v56 = vld [vmem:[%s8213_s3 + $0x68] sm:$0xff]  ;;  %s4307_s21 = sshll.u32 %s309_s20, 3  ;;  %s4212_s16 = scalar_lea.hbm %s8217_s7, %s4452_s22 }
  0x1b   : > { %v985_v2 = vld [vmem:[%s325_s30] sm:$0xff]  ;;  %333 = vxpose.xlu0.b32.start.end [1/1] (short) %v5322_v1, 128  ;;  %v331_v4 = vcombine.high %v5322_v1, %v5322_v1  ;;  %v738_v57 = vld [vmem:[%s8213_s3 + $0x70] sm:$0xff]  ;;  %v739_v58 = vld [vmem:[%s8213_s3 + $0x78] sm:$0xff]  ;;  %s311_s23 = scalar_lea.vmem [#allocation3], %s4307_s21  ;;  %s4198_s17 = scalar_lea.sflag [#allocation4], %s309_s20 }
  0x1c   : > { %v987_v3 = vcombine.high %v985_v2, %v985_v2  ;;  %v736_v54 = vld [vmem:[%s8213_s3 + $0x60] sm:$0xff]  ;;  %s4214_s30 = sshll.u32 %s311_s23, 4  ;;  %s4215_s30 = int_to_ptr.vmem [resolvable:$true] %s4214_s30 }
  0x1d   : > { %4345 = vmatprep.subr.msk.mxu1 %vm495_vm0, %v331_v4 }
  0x1e   : > { %4363 = vmatprep.subr.msk.mxu0 %vm495_vm0, %v987_v3 }
  0x58   : > { %365 = vxpose.xlu0.b32.start.end [1/1] (short) %v331_v4, 128 }
  0x81   : > { %4599 = vset.pattern.permute.xlu0 %v8219_v55 }
  0x97   : > { %v349_v5 = vpop.trf.xlu0 }
  0x98   : > { %4488 = vmatprep.mubr.msk.f32.mxu0 %vm398_vm1, %v349_v5 }
  0x9b   : > { %v350_v6 = vpop.trf.xlu0 }
  0x9c   : > { %4489 = vmatmul.mubr.msk.f32.vlgmr.msra.gmra.mxu0 %vm398_vm1, %v350_v6 }
  0x9d   : > { %4364 = vmatpush1.msk.msra.mxu0 %vm495_vm0, %v985_v2 }
  0x9f   : > { %v351_v7 = vpop.trf.xlu0 }
  0xa0   : > { %4491 = vmatprep.mubr.msk.f32.mxu0 %vm398_vm1, %v351_v7 }
  0xa3   : > { %v352_v8 = vpop.trf.xlu0 }
  0xa4   : > { %4492 = vmatmul.mubr.msk.f32.gmra.mxu0 %vm398_vm1, %v352_v8 }
  0xa7   : > { %v353_v9 = vpop.trf.xlu0 }
  0xa8   : > { %4494 = vmatprep.mubr.msk.f32.mxu0 %vm398_vm1, %v353_v9 }
  0xab   : > { %v354_v10 = vpop.trf.xlu0 }
  0xac   : > { %4495 = vmatmul.mubr.msk.f32.gmra.mxu0 %vm398_vm1, %v354_v10 }
  0xaf   : > { %v355_v11 = vpop.trf.xlu0 }
  0xb0   : > { %4497 = vmatprep.mubr.msk.f32.mxu0 %vm398_vm1, %v355_v11 }
  0xb3   : > { %v356_v12 = vpop.trf.xlu0 }
  0xb4   : > { %4498 = vmatmul.mubr.msk.f32.gmra.mxu0 %vm398_vm1, %v356_v12 }
  0xb7   : > { %v357_v13 = vpop.trf.xlu0 }
  0xb8   : > { %4500 = vmatprep.mubr.msk.f32.mxu0 %vm398_vm1, %v357_v13 }
  0xbb   : > { %v358_v14 = vpop.trf.xlu0 }
  0xbc   : > { %4501 = vmatmul.mubr.msk.f32.gmra.mxu0 %vm398_vm1, %v358_v14 }
  0xbf   : > { %v359_v15 = vpop.trf.xlu0 }
  0xc0   : > { %4503 = vmatprep.mubr.msk.f32.mxu0 %vm398_vm1, %v359_v15 }
  0xc3   : > { %v360_v16 = vpop.trf.xlu0 }
  0xc4   : > { %4504 = vmatmul.mubr.msk.f32.gmra.mxu0 %vm398_vm1, %v360_v16 }
  0xc7   : > { %v361_v17 = vpop.trf.xlu0 }
  0xc8   : > { %4506 = vmatprep.mubr.msk.f32.mxu0 %vm398_vm1, %v361_v17 }
  0xcb   : > { %v362_v18 = vpop.trf.xlu0 }
  0xcc   : > { %4507 = vmatmul.mubr.msk.f32.gmra.mxu0 %vm398_vm1, %v362_v18 }
  0xcf   : > { %v363_v19 = vpop.trf.xlu0 }
  0xd0   : > { %4509 = vmatprep.mubr.msk.f32.mxu0 %vm398_vm1, %v363_v19 }
  0xd3   : > { %v364_v20 = vpop.trf.xlu0 }
  0xd4   : > { %4510 = vmatmul.mubr.msk.f32.gmra.mxu0 %vm398_vm1, %v364_v20  ;;  %v973_v20 = vld [vmem:[%s8212_s2 + $0x20] sm:$0xff] }
  0xd7   : > { %v381_v21 = vpop.trf.xlu0 }
  0xd8   : > { %4512 = vmatprep.mubr.msk.f32.mxu0 %vm398_vm1, %v381_v21 }
  0xdb   : > { %v382_v22 = vpop.trf.xlu0 }
  0xdc   : > { %4513 = vmatmul.mubr.msk.f32.gmra.mxu0 %vm398_vm1, %v382_v22 }
  0xdf   : > { %v383_v23 = vpop.trf.xlu0 }
  0xe0   : > { %4515 = vmatprep.mubr.msk.f32.mxu0 %vm398_vm1, %v383_v23  ;;  %v974_v23 = vld [vmem:[%s8212_s2 + $0x28] sm:$0xff] }
  0xe3   : > { %v384_v24 = vpop.trf.xlu0 }
  0xe4   : > { %4516 = vmatmul.mubr.msk.f32.gmra.mxu0 %vm398_vm1, %v384_v24 }
  0xe7   : > { %v385_v25 = vpop.trf.xlu0 }
  0xe8   : > { %4518 = vmatprep.mubr.msk.f32.mxu0 %vm398_vm1, %v385_v25  ;;  %v975_v25 = vld [vmem:[%s8212_s2 + $0x30] sm:$0xff] }
  0xeb   : > { %v386_v26 = vpop.trf.xlu0 }
  0xec   : > { %4519 = vmatmul.mubr.msk.f32.gmra.mxu0 %vm398_vm1, %v386_v26 }
  0xed   : > { %1104 = vmatprep.mubr.f32.mxu0 %v8218_v27 }
  0xef   : > { %v387_v29 = vpop.trf.xlu0 }
  0xf0   : > { %4365 = vmatmul.mubr.msk.f32.vlgmr.msra.gmra.mxu0 %vm398_vm1, %v969_v28  ;;  %4521 = vmatprep.mubr.msk.f32.mxu1 %vm398_vm1, %v387_v29  ;;  %v976_v29 = vld [vmem:[%s8212_s2 + $0x38] sm:$0xff] }
  0xf1   : > { %1110 = vmatprep.mubr.f32.mxu0 %v8218_v27 }
  0xf3   : > { %v388_v31 = vpop.trf.xlu0 }
  0xf4   : > { %4366 = vmatmul.mubr.msk.f32.gmra.mxu0 %vm398_vm1, %v970_v30  ;;  %4522 = vmatmul.mubr.msk.f32.vlgmr.msra.gmra.mxu1 %vm398_vm1, %v388_v31  ;;  %v977_v31 = vld [vmem:[%s8212_s2 + $0x40] sm:$0xff] }
  0xf5   : > { %1116 = vmatprep.mubr.f32.mxu0 %v8218_v27  ;;  %4346 = vmatpush1.msk.msra.mxu1 %vm495_vm0, %v5322_v1 }
  0xf7   : > { %v389_v33 = vpop.trf.xlu0 }
  0xf8   : > { %4367 = vmatmul.mubr.msk.f32.gmra.mxu0 %vm398_vm1, %v971_v32  ;;  %4524 = vmatprep.mubr.msk.f32.mxu1 %vm398_vm1, %v389_v33 }
  0xf9   : > { %1122 = vmatprep.mubr.f32.mxu0 %v8218_v27 }
  0xfb   : > { %v390_v35 = vpop.trf.xlu0 }
  0xfc   : > { %4368 = vmatmul.mubr.msk.f32.gmra.mxu0 %vm398_vm1, %v972_v34  ;;  %4525 = vmatmul.mubr.msk.f32.gmra.mxu1 %vm398_vm1, %v390_v35  ;;  %v978_v35 = vld [vmem:[%s8212_s2 + $0x48] sm:$0xff] }
  0xfd   : > { %1128 = vmatprep.mubr.f32.mxu0 %v8218_v27 }
  0xff   : > { %v391_v36 = vpop.trf.xlu0 }
 0x100   : > { %4527 = vmatprep.mubr.msk.f32.mxu1 %vm398_vm1, %v391_v36  ;;  %4369 = vmatmul.mubr.msk.f32.gmra.mxu0 %vm398_vm1, %v973_v20 }
 0x101   : > { %1134 = vmatprep.mubr.f32.mxu0 %v8218_v27 }
 0x103   : > { %v392_v37 = vpop.trf.xlu0 }
 0x104   : > { %4528 = vmatmul.mubr.msk.f32.gmra.mxu1 %vm398_vm1, %v392_v37  ;;  %4370 = vmatmul.mubr.msk.f32.gmra.mxu0 %vm398_vm1, %v974_v23 }
 0x105   : > { %1140 = vmatprep.mubr.f32.mxu0 %v8218_v27 }
 0x107   : > { %v393_v38 = vpop.trf.xlu0 }
 0x108   : > { %4530 = vmatprep.mubr.msk.f32.mxu1 %vm398_vm1, %v393_v38  ;;  %4371 = vmatmul.mubr.msk.f32.gmra.mxu0 %vm398_vm1, %v975_v25 }
 0x109   : > { %1146 = vmatprep.mubr.f32.mxu0 %v8218_v27 }
 0x10b   : > { %v394_v39 = vpop.trf.xlu0 }
 0x10c   : > { %4531 = vmatmul.mubr.msk.f32.gmra.mxu1 %vm398_vm1, %v394_v39  ;;  %4372 = vmatmul.mubr.msk.f32.gmra.mxu0 %vm398_vm1, %v976_v29  ;;  %v979_v39 = vld [vmem:[%s8212_s2 + $0x50] sm:$0xff] }
 0x10d   : > { %1152 = vmatprep.mubr.f32.mxu0 %v8218_v27 }
 0x10f   : > { %v395_v40 = vpop.trf.xlu0 }
 0x110   : > { %4533 = vmatprep.mubr.msk.f32.mxu1 %vm398_vm1, %v395_v40  ;;  %4373 = vmatmul.mubr.msk.f32.gmra.mxu0 %vm398_vm1, %v977_v31 }
 0x111   : > { %1158 = vmatprep.mubr.f32.mxu0 %v8218_v27 }
 0x113   : > { %v396_v41 = vpop.trf.xlu0 }
 0x114   : > { %4534 = vmatmul.mubr.msk.f32.gmra.mxu1 %vm398_vm1, %v396_v41  ;;  %4374 = vmatmul.mubr.msk.f32.gmra.mxu0 %vm398_vm1, %v978_v35 }
 0x115   : > { %856 = vmatprep.mubr.f32.mxu1 %v8218_v27  ;;  %1164 = vmatprep.mubr.f32.mxu0 %v8218_v27 }
 0x118   : > { %4347 = vmatmul.mubr.msk.f32.vlgmr.msra.gmra.mxu1 %vm398_vm1, %v724_v42  ;;  %4375 = vmatmul.mubr.msk.f32.gmra.mxu0 %vm398_vm1, %v979_v39 }
 0x119   : > { %862 = vmatprep.mubr.f32.mxu1 %v8218_v27  ;;  %1170 = vmatprep.mubr.f32.mxu0 %v8218_v27 }
 0x11c   : > { %4348 = vmatmul.mubr.msk.f32.gmra.mxu1 %vm398_vm1, %v725_v43 }
 0x11d   : > { %868 = vmatprep.mubr.f32.mxu1 %v8218_v27 }
 0x120   : > { %4349 = vmatmul.mubr.msk.f32.gmra.mxu1 %vm398_vm1, %v726_v44  ;;  %v980_v44 = vld [vmem:[%s8212_s2 + $0x58] sm:$0xff] }
 0x121   : > { %874 = vmatprep.mubr.f32.mxu1 %v8218_v27  ;;  %4376 = vmatmul.mubr.msk.f32.gmra.mxu0 %vm398_vm1, %v980_v44 }
 0x122   : > { %1176 = vmatprep.mubr.f32.mxu0 %v8218_v27 }
 0x124   : > { %4350 = vmatmul.mubr.msk.f32.gmra.mxu1 %vm398_vm1, %v727_v45 }
 0x125   : > { %880 = vmatprep.mubr.f32.mxu1 %v8218_v27 }
 0x128   : > { %4351 = vmatmul.mubr.msk.f32.gmra.mxu1 %vm398_vm1, %v728_v46 }
 0x129   : > { %886 = vmatprep.mubr.f32.mxu1 %v8218_v27 }
 0x12c   : > { %4352 = vmatmul.mubr.msk.f32.gmra.mxu1 %vm398_vm1, %v729_v47 }
 0x12d   : > { %892 = vmatprep.mubr.f32.mxu1 %v8218_v27 }
 0x130   : > { %4353 = vmatmul.mubr.msk.f32.gmra.mxu1 %vm398_vm1, %v730_v48  ;;  %v981_v48 = vld [vmem:[%s8212_s2 + $0x60] sm:$0xff] }
 0x131   : > { %898 = vmatprep.mubr.f32.mxu1 %v8218_v27  ;;  %4377 = vmatmul.mubr.msk.f32.gmra.mxu0 %vm398_vm1, %v981_v48 }
 0x132   : > { %1182 = vmatprep.mubr.f32.mxu0 %v8218_v27 }
 0x134   : > { %4354 = vmatmul.mubr.msk.f32.gmra.mxu1 %vm398_vm1, %v731_v49 }
 0x135   : > { %904 = vmatprep.mubr.f32.mxu1 %v8218_v27 }
 0x138   : > { %4355 = vmatmul.mubr.msk.f32.gmra.mxu1 %vm398_vm1, %v732_v50 }
 0x139   : > { %910 = vmatprep.mubr.f32.mxu1 %v8218_v27 }
 0x13c   : > { %4356 = vmatmul.mubr.msk.f32.gmra.mxu1 %vm398_vm1, %v733_v51 }
 0x13d   : > { %916 = vmatprep.mubr.f32.mxu1 %v8218_v27 }
 0x140   : > { %4357 = vmatmul.mubr.msk.f32.gmra.mxu1 %vm398_vm1, %v734_v52 }
 0x141   : > { %922 = vmatprep.mubr.f32.mxu1 %v8218_v27 }
 0x144   : > { %4358 = vmatmul.mubr.msk.f32.gmra.mxu1 %vm398_vm1, %v735_v53 }
 0x145   : > { %928 = vmatprep.mubr.f32.mxu1 %v8218_v27 }
 0x148   : > { %4359 = vmatmul.mubr.msk.f32.gmra.mxu1 %vm398_vm1, %v736_v54 }
 0x149   : > { %934 = vmatprep.mubr.f32.mxu1 %v8218_v27 }
 0x14c   : > { %4360 = vmatmul.mubr.msk.f32.gmra.mxu1 %vm398_vm1, %v737_v56  ;;  %v982_v56 = vld [vmem:[%s8212_s2 + $0x68] sm:$0xff] }
 0x14d   : > { %940 = vmatprep.mubr.f32.mxu1 %v8218_v27  ;;  %4378 = vmatmul.mubr.msk.f32.gmra.mxu0 %vm398_vm1, %v982_v56 }
 0x14e   : > { %1188 = vmatprep.mubr.f32.mxu0 %v8218_v27 }
 0x150   : > { %4361 = vmatmul.mubr.msk.f32.gmra.mxu1 %vm398_vm1, %v738_v57 }
 0x151   : > { %946 = vmatprep.mubr.f32.mxu1 %v8218_v27 }
 0x154   : > { %4362 = vmatmul.mubr.msk.f32.gmra.mxu1 %vm398_vm1, %v739_v58 }
 0x155   : > { %1314 = vmatprep.mubr.bf16.mxu1 %v8219_v55 }
 0x15c   : > { %v4490_v59 = vpop.f32.mrf.mxu0 }
 0x15e   : > { %v565_v60 = vpop.f32.mrf.mxu0 }
 0x15f   : > { %v5470_v61 = vpack.c.bf16 %v4490_v59, %v565_v60  ;;  %v983_v59 = vld [vmem:[%s8212_s2 + $0x70] sm:$0xff] }
 0x160   : > { %4379 = vmatmul.mubr.msk.f32.gmra.mxu0 %vm398_vm1, %v983_v59 }
 0x161   : > { %1934 = vrot.lane.b32.xlu1 %v5470_v61, %s5210_s10  ;;  %1194 = vmatprep.mubr.f32.mxu0 %v8218_v27 }
 0x164   : > { %v4493_v62 = vpop.f32.mrf.mxu0 }
 0x166   : > { %v575_v63 = vpop.f32.mrf.mxu0 }
 0x167   : > { %v5474_v0 = vpack.c.bf16 %v4493_v62, %v575_v63  ;;  %v984_v63 = vld [vmem:[%s8212_s2 + $0x78] sm:$0xff] }
 0x168   : > { %4380 = vmatmul.mubr.msk.f32.gmra.mxu0 %vm398_vm1, %v984_v63 }
 0x169   : > { %1936 = vrot.lane.b32.xlu1 %v5474_v0, %s5210_s10  ;;  %2652 = vrot.lane.b32.xlu0 %v5474_v0, %s5211_s12 }
 0x16c   : > { %v4496_v1 = vpop.f32.mrf.mxu0 }
 0x16e   : > { %v585_v2 = vpop.f32.mrf.mxu0 }
 0x16f   : > { %v5480_v3 = vpack.c.bf16 %v4496_v1, %v585_v2 }
 0x171   : > { %1938 = vrot.lane.b32.xlu1 %v5480_v3, %s5210_s10 }
 0x174   : > { %v4499_v4 = vpop.f32.mrf.mxu0 }
 0x176   : > { %v595_v5 = vpop.f32.mrf.mxu0 }
 0x177   : > { %v5484_v6 = vpack.c.bf16 %v4499_v4, %v595_v5 }
 0x179   : > { %1940 = vrot.lane.b32.xlu1 %v5484_v6, %s5210_s10 }
 0x17c   : > { %v4502_v7 = vpop.f32.mrf.mxu0 }
 0x17e   : > { %v605_v8 = vpop.f32.mrf.mxu0 }
 0x17f   : > { %v5488_v9 = vpack.c.bf16 %v4502_v7, %v605_v8 }
 0x181   : > { %1942 = vrot.lane.b32.xlu1 %v5488_v9, %s5210_s10 }
 0x184   : > { %v4505_v10 = vpop.f32.mrf.mxu0 }
 0x186   : > { %v615_v11 = vpop.f32.mrf.mxu0 }
 0x187   : > { %v5492_v12 = vpack.c.bf16 %v4505_v10, %v615_v11 }
 0x189   : > { %1944 = vrot.lane.b32.xlu1 %v5492_v12, %s5210_s10 }
 0x18c   : > { %v4508_v13 = vpop.f32.mrf.mxu0 }
 0x18e   : > { %v625_v14 = vpop.f32.mrf.mxu0 }
 0x18f   : > { %v5496_v15 = vpack.c.bf16 %v4508_v13, %v625_v14 }
 0x191   : > { %1946 = vrot.lane.b32.xlu1 %v5496_v15, %s5210_s10 }
 0x194   : > { %v4511_v16 = vpop.f32.mrf.mxu0 }
 0x196   : > { %v635_v17 = vpop.f32.mrf.mxu0 }
 0x197   : > { %v5500_v18 = vpack.c.bf16 %v4511_v16, %v635_v17 }
 0x199   : > { %1948 = vrot.lane.b32.xlu1 %v5500_v18, %s5210_s10 }
 0x19c   : > { %v4514_v19 = vpop.f32.mrf.mxu0 }
 0x19e   : > { %v645_v21 = vpop.f32.mrf.mxu0 }
 0x19f   : > { %v5508_v22 = vpack.c.bf16 %v4514_v19, %v645_v21 }
 0x1a1   : > { %1950 = vrot.lane.b32.xlu1 %v5508_v22, %s5210_s10 }
 0x1a4   : > { %v4517_v24 = vpop.f32.mrf.mxu0 }
 0x1a6   : > { %v655_v26 = vpop.f32.mrf.mxu0 }
 0x1a7   : > { %v5522_v28 = vpack.c.bf16 %v4517_v24, %v655_v26 }
 0x1a9   : > { %1952 = vrot.lane.b32.xlu1 %v5522_v28, %s5210_s10 }
 0x1ac   : > { %v4520_v30 = vpop.f32.mrf.mxu0 }
 0x1ae   : > { %v665_v32 = vpop.f32.mrf.mxu0 }
 0x1af   : > { %v5536_v33 = vpack.c.bf16 %v4520_v30, %v665_v32 }
 0x1b0   : > { %v1106_v34 = vpop.f32.mrf.mxu0 }
 0x1b1   : > { %1954 = vrot.lane.b32.xlu1 %v5536_v33, %s5210_s10 }
 0x1b2   : > { %v1108_v36 = vpop.f32.mrf.mxu0 }
 0x1b4   : > { %v1112_v37 = vpop.f32.mrf.mxu0  ;;  %v4523_v38 = vpop.f32.mrf.mxu1 }
 0x1b5   : > { %v1201_v57 = vpack.c.bf16 %v1112_v37, %v1106_v34 }
 0x1b6   : > { %v1114_v40 = vpop.f32.mrf.mxu0  ;;  %v675_v41 = vpop.f32.mrf.mxu1 }
 0x1b7   : > { %v5550_v42 = vpack.c.bf16 %v4523_v38, %v675_v41  ;;  %v1202_v54 = vpack.c.bf16 %v1114_v40, %v1108_v36 }
 0x1b8   : > { %v1118_v43 = vpop.f32.mrf.mxu0 }
 0x1b9   : > { %1956 = vrot.lane.b32.xlu1 %v5550_v42, %s5210_s10  ;;  %3388 = vrot.lane.b32.xlu0 %v5550_v42, %s5212_s18 }
 0x1ba   : > { %v1120_v45 = vpop.f32.mrf.mxu0 }
 0x1bc   : > { %v1124_v46 = vpop.f32.mrf.mxu0  ;;  %v4526_v47 = vpop.f32.mrf.mxu1 }
 0x1bd   : > { %v1203_v53 = vpack.c.bf16 %v1124_v46, %v1118_v43 }
 0x1be   : > { %v1126_v49 = vpop.f32.mrf.mxu0  ;;  %v685_v50 = vpop.f32.mrf.mxu1 }
 0x1bf   : > { %v1204_v51 = vpack.c.bf16 %v1126_v49, %v1120_v45  ;;  %v5566_v52 = vpack.c.bf16 %v4526_v47, %v685_v50 }
 0x1c1   : > { %1294 = vmatprep.subr.bf16.mxu1 %v1204_v51  ;;  %1958 = vrot.lane.b32.xlu1 %v5566_v52, %s5210_s10 }
 0x1c2   : > { %1295 = vmatpush1.bf16.msra.mxu1 %v1203_v53 }
 0x1c3   : > { %1296 = vmatprep.subr.bf16.mxu1 %v1202_v54 }
 0x1c4   : > { %v4529_v58 = vpop.f32.mrf.mxu1 }
 0x1c6   : > { %1297 = vmatpush1.bf16.msra.mxu1 %v1201_v57  ;;  %v695_v60 = vpop.f32.mrf.mxu1 }
 0x1c7   : > { %v5580_v62 = vpack.c.bf16 %v4529_v58, %v695_v60 }
 0x1c9   : > { %4381 = vmatmul.mubr.msk.bf16.vlgmr.msra.gmra.mxu1 %vm1233_vm2, %v5470_v61  ;;  %1960 = vrot.lane.b32.xlu1 %v5580_v62, %s5210_s10 }
 0x1ca   : > { %1324 = vmatprep.mubr.bf16.mxu1 %v8219_v55  ;;  %3392 = vrot.lane.b32.xlu0 %v5580_v62, %s5212_s18 }
 0x1cc   : > { %v4532_v1 = vpop.f32.mrf.mxu1 }
 0x1ce   : > { %v705_v2 = vpop.f32.mrf.mxu1 }
 0x1cf   : > { %v5594_v4 = vpack.c.bf16 %v4532_v1, %v705_v2 }
 0x1d1   : > { %4382 = vmatmul.mubr.msk.bf16.gmra.mxu1 %vm1233_vm2, %v5474_v0  ;;  %1962 = vrot.lane.b32.xlu1 %v5594_v4, %s5210_s10 }
 0x1d2   : > { %1334 = vmatprep.mubr.bf16.mxu1 %v8219_v55 }
 0x1d4   : > { %v4535_v5 = vpop.f32.mrf.mxu1 }
 0x1d6   : > { %v715_v7 = vpop.f32.mrf.mxu1 }
 0x1d7   : > { %v5601_v8 = vpack.c.bf16 %v4535_v5, %v715_v7 }
 0x1d8   : > { %v5603_v10 = vpop.f32.mrf.mxu1 }
 0x1d9   : > { %8335 = vst [vmem:[#allocation6_spill] sm:$0xff] %v5603_v10  ;;  %1964 = vrot.lane.b32.xlu1 %v5601_v8, %s5210_s10  ;;  %4383 = vmatmul.mubr.msk.bf16.gmra.mxu1 %vm1233_vm2, %v5480_v3  ;;  %s5130_s10 = scalar_lea.vmem %s4215_s30, 128 }
 0x1da   : > { %1344 = vmatprep.mubr.bf16.mxu1 %v8219_v55  ;;  %3396 = vrot.lane.b32.xlu0 %v5601_v8, %s5212_s18  ;;  %v860_v11 = vpop.f32.mrf.mxu1  ;;  %p5131_p12 = scmp.ne.s32.totalorder %s4215_s30, %s5130_s10 }
 0x1dc   : > { %v5612_v13 = vpop.f32.mrf.mxu1  ;;  %p5132_p13 = pnand %p5131_p12, %p5294_p4 }
 0x1dd   : > { %8336 = vst [vmem:[#allocation7_spill] sm:$0xff] %v5612_v13  ;;  %2650 = vrot.lane.b32.xlu1 %v5470_v61, %s5211_s12 }
 0x1de   : > { %v866_v16 = vpop.f32.mrf.mxu1  ;;  %p5133_p0 = pneg %p5132_p13 }
 0x1df   : > { %v954_v17 = vpack.c.bf16 %v866_v16, %v860_v11 }
 0x1e0   : > { %v5618_v19 = vpop.f32.mrf.mxu1 }
 0x1e1   : > { %8337 = vst [vmem:[#allocation8_spill] sm:$0xff] %v5618_v19  ;;  %2654 = vrot.lane.b32.xlu1 %v5480_v3, %s5211_s12  ;;  %4384 = vmatmul.mubr.msk.bf16.gmra.mxu1 %vm1233_vm2, %v5484_v6 }
 0x1e2   : > { %1354 = vmatprep.mubr.bf16.mxu1 %v8219_v55  ;;  %1879 = vmatprep.mubr.bf16.mxu0 %v954_v17  ;;  %v5625_v20 = vpop.f32.mrf.mxu1 }
 0x1e3   : > { %8338 = vst [vmem:[#allocation9_spill] sm:$0xff] %v5625_v20 }
 0x1e4   : > { %v5627_v21 = vpop.f32.mrf.mxu1 }
 0x1e5   : > { %8339 = vst [vmem:[#allocation10_spill] sm:$0xff] %v5627_v21  ;;  %2656 = vrot.lane.b32.xlu1 %v5484_v6, %s5211_s12 }
 0x1e6   : > { %v5633_v24 = vpop.f32.mrf.mxu1 }
 0x1e7   : > { %8340 = vst [vmem:[#allocation11_spill] sm:$0xff] %v5633_v24 }
 0x1e8   : > { %v5635_v25 = vpop.f32.mrf.mxu1 }
 0x1e9   : > { %8341 = vst [vmem:[#allocation12_spill] sm:$0xff] %v5635_v25  ;;  %2658 = vrot.lane.b32.xlu1 %v5488_v9, %s5211_s12  ;;  %4385 = vmatmul.mubr.msk.bf16.gmra.mxu1 %vm1233_vm2, %v5488_v9 }
 0x1ea   : > { %1364 = vmatprep.mubr.bf16.mxu1 %v8219_v55  ;;  %v5642_v26 = vpop.f32.mrf.mxu1 }
 0x1ec   : > { %v5644_v29 = vpop.f32.mrf.mxu1 }
 0x1ed   : > { %8342 = vst [vmem:[#allocation13_spill] sm:$0xff] %v5644_v29  ;;  %2660 = vrot.lane.b32.xlu1 %v5492_v12, %s5211_s12 }
 0x1ee   : > { %v5650_v31 = vpop.f32.mrf.mxu1 }
 0x1f0   : > { %v5652_v32 = vpop.f32.mrf.mxu1 }
 0x1f1   : > { %8343 = vst [vmem:[#allocation14_spill] sm:$0xff] %v5652_v32  ;;  %2662 = vrot.lane.b32.xlu1 %v5496_v15, %s5211_s12  ;;  %4386 = vmatmul.mubr.msk.bf16.gmra.mxu1 %vm1233_vm2, %v5492_v12 }
 0x1f2   : > { %1374 = vmatprep.mubr.bf16.mxu1 %v8219_v55  ;;  %v5659_v34 = vpop.f32.mrf.mxu1 }
 0x1f3   : > { %8344 = vst [vmem:[#allocation15_spill] sm:$0xff] %v5659_v34 }
 0x1f4   : > { %v5661_v35 = vpop.f32.mrf.mxu1 }
 0x1f5   : > { %8345 = vst [vmem:[#allocation16_spill] sm:$0xff] %v5661_v35  ;;  %2664 = vrot.lane.b32.xlu1 %v5500_v18, %s5211_s12 }
 0x1f6   : > { %v5667_v37 = vpop.f32.mrf.mxu1 }
 0x1f7   : > { %8346 = vst [vmem:[#allocation17_spill] sm:$0xff] %v5667_v37 }
 0x1f8   : > { %v5669_v38 = vpop.f32.mrf.mxu1 }
 0x1f9   : > { %8347 = vst [vmem:[#allocation18_spill] sm:$0xff] %v5669_v38  ;;  %2666 = vrot.lane.b32.xlu1 %v5508_v22, %s5211_s12  ;;  %4387 = vmatmul.mubr.msk.bf16.gmra.mxu1 %vm1233_vm2, %v5496_v15 }
 0x1fa   : > { %1384 = vmatprep.mubr.bf16.mxu1 %v8219_v55  ;;  %v5676_v39 = vpop.f32.mrf.mxu1 }
 0x1fb   : > { %8348 = vst [vmem:[#allocation19_spill] sm:$0xff] %v5676_v39 }
 0x1fc   : > { %v5678_v40 = vpop.f32.mrf.mxu1 }
 0x1fd   : > { %8349 = vst [vmem:[#allocation20_spill] sm:$0xff] %v5678_v40  ;;  %2668 = vrot.lane.b32.xlu1 %v5522_v28, %s5211_s12 }
 0x1fe   : > { %v5684_v43 = vpop.f32.mrf.mxu1 }
 0x1ff   : > { %8350 = vst [vmem:[#allocation21_spill] sm:$0xff] %v5684_v43 }
 0x200   : > { %v5686_v44 = vpop.f32.mrf.mxu1 }
 0x201   : > { %8351 = vst [vmem:[#allocation22_spill] sm:$0xff] %v5686_v44  ;;  %2670 = vrot.lane.b32.xlu1 %v5536_v33, %s5211_s12  ;;  %4388 = vmatmul.mubr.msk.bf16.gmra.mxu1 %vm1233_vm2, %v5500_v18 }
 0x202   : > { %1394 = vmatprep.mubr.bf16.mxu1 %v8219_v55  ;;  %v5693_v45 = vpop.f32.mrf.mxu1 }
 0x203   : > { %8352 = vst [vmem:[#allocation23_spill] sm:$0xff] %v5693_v45 }
 0x204   : > { %v5695_v46 = vpop.f32.mrf.mxu1 }
 0x205   : > { %8353 = vst [vmem:[#allocation24_spill] sm:$0xff] %v5695_v46  ;;  %2672 = vrot.lane.b32.xlu1 %v5550_v42, %s5211_s12 }
 0x206   : > { %v5701_v48 = vpop.f32.mrf.mxu1 }
 0x207   : > { %8354 = vst [vmem:[#allocation25_spill] sm:$0xff] %v5701_v48 }
 0x208   : > { %v5703_v49 = vpop.f32.mrf.mxu1 }
 0x209   : > { %8355 = vst [vmem:[#allocation26_spill] sm:$0xff] %v5703_v49  ;;  %2674 = vrot.lane.b32.xlu1 %v5566_v52, %s5211_s12  ;;  %4389 = vmatmul.mubr.msk.bf16.gmra.mxu1 %vm1233_vm2, %v5508_v22 }
 0x20a   : > { %1404 = vmatprep.mubr.bf16.mxu1 %v8219_v55  ;;  %v5710_v50 = vpop.f32.mrf.mxu1 }
 0x20b   : > { %8356 = vst [vmem:[#allocation27_spill] sm:$0xff] %v5710_v50 }
 0x20c   : > { %v5712_v51 = vpop.f32.mrf.mxu1 }
 0x20d   : > { %8357 = vst [vmem:[#allocation28_spill] sm:$0xff] %v5712_v51  ;;  %2676 = vrot.lane.b32.xlu1 %v5580_v62, %s5211_s12 }
 0x20e   : > { %v5718_v54 = vpop.f32.mrf.mxu1 }
 0x20f   : > { %8358 = vst [vmem:[#allocation29_spill] sm:$0xff] %v5718_v54 }
 0x210   : > { %v5720_v56 = vpop.f32.mrf.mxu1 }
 0x211   : > { %8359 = vst [vmem:[#allocation30_spill] sm:$0xff] %v5720_v56  ;;  %2678 = vrot.lane.b32.xlu1 %v5594_v4, %s5211_s12  ;;  %4390 = vmatmul.mubr.msk.bf16.gmra.mxu1 %vm1233_vm2, %v5522_v28 }
 0x212   : > { %1414 = vmatprep.mubr.bf16.mxu1 %v8219_v55  ;;  %v5727_v57 = vpop.f32.mrf.mxu1 }
 0x213   : > { %8360 = vst [vmem:[#allocation31_spill] sm:$0xff] %v5727_v57 }
 0x214   : > { %v5729_v58 = vpop.f32.mrf.mxu1 }
 0x215   : > { %8361 = vst [vmem:[#allocation32_spill] sm:$0xff] %v5729_v58  ;;  %2680 = vrot.lane.b32.xlu1 %v5601_v8, %s5211_s12  ;;  %s5213_s12 = smov [#allocation3]  }
 0x219   : > { %3366 = vrot.lane.b32.xlu1 %v5470_v61, %s5212_s18  ;;  %4391 = vmatmul.mubr.msk.bf16.gmra.mxu1 %vm1233_vm2, %v5536_v33  ;;  %v958_v61 = vpack.c.bf16 %v5650_v31, %v5642_v26 }
 0x21a   : > { %1424 = vmatprep.mubr.bf16.mxu1 %v8219_v55 }
 0x21d   : > { %3368 = vrot.lane.b32.xlu1 %v5474_v0, %s5212_s18  ;;  %v5780_v0 = vpop.f32.mrf.mxu1 }
 0x21e   : > { %8362 = vst [vmem:[#allocation33_spill] sm:$0xff] %v5780_v0 }
 0x221   : > { %3370 = vrot.lane.b32.xlu1 %v5480_v3, %s5212_s18  ;;  %4392 = vmatmul.mubr.msk.bf16.gmra.mxu1 %vm1233_vm2, %v5550_v42 }
 0x222   : > { %1434 = vmatprep.mubr.bf16.mxu1 %v8219_v55 }
 0x225   : > { %3372 = vrot.lane.b32.xlu1 %v5484_v6, %s5212_s18 }
 0x229   : > { %3374 = vrot.lane.b32.xlu1 %v5488_v9, %s5212_s18  ;;  %4393 = vmatmul.mubr.msk.bf16.gmra.mxu1 %vm1233_vm2, %v5566_v52 }
 0x22a   : > { %1444 = vmatprep.mubr.bf16.mxu1 %v8219_v55 }
 0x22d   : > { %3376 = vrot.lane.b32.xlu1 %v5492_v12, %s5212_s18 }
 0x231   : > { %3378 = vrot.lane.b32.xlu1 %v5496_v15, %s5212_s18  ;;  %4394 = vmatmul.mubr.msk.bf16.gmra.mxu1 %vm1233_vm2, %v5580_v62 }
 0x232   : > { %1454 = vmatprep.mubr.bf16.mxu1 %v8219_v55 }
 0x235   : > { %3380 = vrot.lane.b32.xlu1 %v5500_v18, %s5212_s18 }
 0x239   : > { %3382 = vrot.lane.b32.xlu1 %v5508_v22, %s5212_s18  ;;  %4395 = vmatmul.mubr.msk.bf16.gmra.mxu1 %vm1233_vm2, %v5594_v4 }
 0x23a   : > { %1464 = vmatprep.mubr.bf16.mxu1 %v8219_v55 }
 0x23d   : > { %3384 = vrot.lane.b32.xlu1 %v5522_v28, %s5212_s18 }
 0x241   : > { %3386 = vrot.lane.b32.xlu1 %v5536_v33, %s5212_s18  ;;  %4396 = vmatmul.mubr.msk.bf16.gmra.mxu1 %vm1233_vm2, %v5601_v8 }
 0x242   : > { %2611 = vmatprep.mubr.bf16.mxu1 %v958_v61 }
 0x245   : > { %3390 = vrot.lane.b32.xlu1 %v5566_v52, %s5212_s18 }
 0x249   : > { %3394 = vrot.lane.b32.xlu1 %v5594_v4, %s5212_s18  ;;  %s5134_s18 = sshll.u32 %s5213_s12, 4  ;;  %s5135_s18 = int_to_ptr.vmem [resolvable:$false] %s5134_s18 }
 0x24a   : > { %s5136_s27 = scalar_lea.vmem %s5135_s18, 256  ;;  %p5137_p1 = scmp.lt.s32.totalorder %s4215_s30, %s5135_s18 }
 0x24b   : > { %p5138_p2 = scmp.lt.s32.totalorder %s5136_s27, %s5130_s10 }
 0x24d   : > { %p5139_p3 = por %p5138_p2, %p5137_p1 }
 0x24f   : > { %p5140_p5 = pnand %p5139_p3, %p5133_p0 }
 0x289   : > { %v5782_v3 = vpop.f32.mrf.mxu1 }
 0x28b   : > { %v5784_v6 = vpop.f32.mrf.mxu1 }
 0x28d   : > { %v5786_v9 = vpop.f32.mrf.mxu1 }
 0x28f   : > { %v5788_v12 = vpop.f32.mrf.mxu1 }
 0x291   : > { %v5790_v15 = vpop.f32.mrf.mxu1 }
 0x292   : > { %v1475_v50 = vmax.f32 %v5782_v3, %v5790_v15 }
 0x293   : > { %v5792_v18 = vpop.f32.mrf.mxu1 }
 0x295   : > { %v5794_v22 = vpop.f32.mrf.mxu1 }
 0x296   : > { %v1476_v32 = vmax.f32 %v5786_v9, %v5794_v22 }
 0x297   : > { %v5796_v28 = vpop.f32.mrf.mxu1 }
 0x298   : > { %8363 = vst [vmem:[#allocation34_spill] sm:$0xff] %v5796_v28 }
 0x299   : > { %v5798_v33 = vpop.f32.mrf.mxu1 }
 0x29a   : > { %v1477_v25 = vmax.f32 %v1475_v50, %v5798_v33 }
 0x29b   : > { %v5800_v42 = vpop.f32.mrf.mxu1 }
 0x29d   : > { %v5802_v52 = vpop.f32.mrf.mxu1 }
 0x29e   : > { %v1478_v29 = vmax.f32 %v1476_v32, %v5802_v52 }
 0x29f   : > { %v5804_v60 = vpop.f32.mrf.mxu1 }
 0x2a0   : > { %8364 = vst [vmem:[#allocation35_spill] sm:$0xff] %v5804_v60 }
 0x2a1   : > { %v5806_v62 = vpop.f32.mrf.mxu1 }
 0x2a2   : > { %v1479_v34 = vmax.f32 %v1477_v25, %v5806_v62 }
 0x2a3   : > { %v5808_v63 = vpop.f32.mrf.mxu1 }
 0x2a5   : > { %v5810_v1 = vpop.f32.mrf.mxu1 }
 0x2a6   : > { %v1480_v43 = vmax.f32 %v1478_v29, %v5810_v1 }
 0x2a7   : > { %v5812_v2 = vpop.f32.mrf.mxu1 }
 0x2a8   : > { %8365 = vst [vmem:[#allocation36_spill] sm:$0xff] %v5812_v2 }
 0x2a9   : > { %v5814_v4 = vpop.f32.mrf.mxu1 }
 0x2aa   : > { %8366 = vst [vmem:[#allocation37_spill] sm:$0xff] %v5814_v4  ;;  %v1481_v19 = vmax.f32 %v1479_v34, %v5814_v4 }
 0x2ab   : > { %v5816_v5 = vpop.f32.mrf.mxu1 }
 0x2ac   : > { %8367 = vst [vmem:[#allocation38_spill] sm:$0xff] %v5816_v5 }
 0x2ad   : > { %v5818_v7 = vpop.f32.mrf.mxu1 }
 0x2ae   : > { %v1482_v21 = vmax.f32 %v1480_v43, %v5818_v7 }
 0x2af   : > { %v5820_v8 = vpop.f32.mrf.mxu1 }
 0x2b0   : > { %8368 = vst [vmem:[#allocation39_spill] sm:$0xff] %v5820_v8 }
 0x2b1   : > { %v5822_v11 = vpop.f32.mrf.mxu1 }
 0x2b2   : > { %8369 = vst [vmem:[#allocation40_spill] sm:$0xff] %v5822_v11  ;;  %v1483_v13 = vmax.f32 %v1481_v19, %v5822_v11 }
 0x2b3   : > { %v5824_v16 = vpop.f32.mrf.mxu1 }
 0x2b5   : > { %v5826_v17 = vpop.f32.mrf.mxu1 }
 0x2b6   : > { %v1484_v50 = vmax.f32 %v1482_v21, %v5826_v17 }
 0x2b7   : > { %v5828_v26 = vpop.f32.mrf.mxu1 }
 0x2b9   : > { %v5830_v31 = vpop.f32.mrf.mxu1 }
 0x2ba   : > { %8370 = vst [vmem:[#allocation41_spill] sm:$0xff] %v5830_v31  ;;  %v1485_v32 = vmax.f32 %v1483_v13, %v5830_v31 }
 0x2bb   : > { %v5832_v61 = vpop.f32.mrf.mxu1 }
 0x2bd   : > { %v5834_v27 = vpop.f32.mrf.mxu1 }
 0x2be   : > { %v1486_v25 = vmax.f32 %v1484_v50, %v5834_v27  ;;  %v1513_v50 = vmax.f32 %v5788_v12, %v5796_v28 }
 0x2bf   : > { %v5836_v59 = vpop.f32.mrf.mxu1 }
 0x2c1   : > { %v5838_v53 = vpop.f32.mrf.mxu1 }
 0x2c2   : > { %v1487_v29 = vmax.f32 %v1485_v32, %v5838_v53 }
 0x2c3   : > { %v5840_v47 = vpop.f32.mrf.mxu1 }
 0x2c5   : > { %v5842_v41 = vpop.f32.mrf.mxu1 }
 0x2c6   : > { %8371 = vst [vmem:[#allocation42_spill] sm:$0xff] %v5842_v41  ;;  %v1488_v34 = vmax.f32 %v1486_v25, %v5842_v41 }
 0x2c7   : > { %v5844_v36 = vpop.f32.mrf.mxu1 }
 0x2c9   : > { %v5846_v30 = vpop.f32.mrf.mxu1 }
 0x2ca   : > { %v1489_v43 = vmax.f32 %v1487_v29, %v5846_v30  ;;  %v1512_v29 = vmax.f32 %v5784_v6, %v5792_v18 }
 0x2cb   : > { %v5848_v55 = vpop.f32.mrf.mxu1 }
 0x2cd   : > { %v5850_v23 = vpop.f32.mrf.mxu1 }
 0x2ce   : > { %v1490_v19 = vmax.f32 %v1488_v34, %v5850_v23  ;;  %v1515_v34 = vmax.f32 %v1513_v50, %v5804_v60 }
 0x2cf   : > { %v5852_v14 = vpop.f32.mrf.mxu1 }
 0x2d0   : > { %v1517_v28 = vmax.f32 %v1515_v34, %v5812_v2 }
 0x2d1   : > { %v5854_v56 = vpop.f32.mrf.mxu1 }
 0x2d2   : > { %8372 = vst [vmem:[#allocation43_spill] sm:$0xff] %v5854_v56  ;;  %v1491_v21 = vmax.f32 %v1489_v43, %v5854_v56  ;;  %v1514_v56 = vmax.f32 %v1512_v29, %v5800_v42  ;;  %v1519_v50 = vmax.f32 %v1517_v28, %v5820_v8 }
 0x2d3   : > { %v5856_v58 = vpop.f32.mrf.mxu1 }
 0x2d4   : > { %v1521_v34 = vmax.f32 %v1519_v50, %v5828_v26 }
 0x2d5   : > { %v5858_v49 = vpop.f32.mrf.mxu1 }
 0x2d6   : > { %8373 = vst [vmem:[#allocation44_spill] sm:$0xff] %v5858_v49  ;;  %v1492_v13 = vmax.f32 %v1490_v19, %v5858_v49  ;;  %v1523_v28 = vmax.f32 %v1521_v34, %v5836_v59 }
 0x2d7   : > { %v5860_v51 = vpop.f32.mrf.mxu1 }
 0x2d9   : > { %v5862_v0 = vpop.f32.mrf.mxu1 }
 0x2da   : > { %8374 = vst [vmem:[#allocation45_spill] sm:$0xff] %v5862_v0  ;;  %v1493_v32 = vmax.f32 %v1491_v21, %v5862_v0  ;;  %v1516_v0 = vmax.f32 %v1514_v56, %v5808_v63 }
 0x2db   : > { %v5864_v57 = vpop.f32.mrf.mxu1 }
 0x2dc   : > { %v1518_v29 = vmax.f32 %v1516_v0, %v5816_v5  ;;  %v1525_v0 = vmax.f32 %v1523_v28, %v5844_v36 }
 0x2dd   : > { %v5866_v44 = vpop.f32.mrf.mxu1 }
 0x2de   : > { %8375 = vst [vmem:[#allocation46_spill] sm:$0xff] %v5866_v44  ;;  %v1494_v25 = vmax.f32 %v1492_v13, %v5866_v44  ;;  %v1520_v56 = vmax.f32 %v1518_v29, %v5824_v16 }
 0x2df   : > { %v5868_v46 = vpop.f32.mrf.mxu1 }
 0x2e0   : > { %v1522_v8 = vmax.f32 %v1520_v56, %v5832_v61 }
 0x2e1   : > { %v5870_v38 = vpop.f32.mrf.mxu1 }
 0x2e2   : > { %v1495_v43 = vmax.f32 %v1493_v32, %v5870_v38  ;;  %v1524_v50 = vmax.f32 %v1522_v8, %v5840_v47 }
 0x2e3   : > { %v5872_v40 = vpop.f32.mrf.mxu1 }
 0x2e5   : > { %v5874_v48 = vpop.f32.mrf.mxu1 }
 0x2e6   : > { %v1496_v19 = vmax.f32 %v1494_v25, %v5874_v48 }
 0x2e7   : > { %v5876_v45 = vpop.f32.mrf.mxu1 }
 0x2e9   : > { %v5878_v54 = vpop.f32.mrf.mxu1 }
 0x2ea   : > { %v1497_v21 = vmax.f32 %v1495_v43, %v5878_v54 }
 0x2eb   : > { %v5884_v35 = vpop.f32.mrf.mxu1 }
 0x2ed   : > { %v5888_v37 = vpop.f32.mrf.mxu1 }
 0x2ee   : > { %v1498_v13 = vmax.f32 %v1496_v19, %v5888_v37 }
 0x2ef   : > { %v5892_v39 = vpop.f32.mrf.mxu1 }
 0x2f1   : > { %v5896_v10 = vpop.f32.mrf.mxu1 }
 0x2f2   : > { %v1499_v32 = vmax.f32 %v1497_v21, %v5896_v10 }
 0x2f3   : > { %v5900_v24 = vpop.f32.mrf.mxu1 }
 0x2f5   : > { %v5904_v20 = vpop.f32.mrf.mxu1 }
 0x2f6   : > { %v1500_v25 = vmax.f32 %v1498_v13, %v5904_v20 }
 0x2f7   : > { %v5908_v4 = vpop.f32.mrf.mxu1 }
 0x2f9   : > { %v5912_v11 = vpop.f32.mrf.mxu1 }
 0x2fa   : > { %8376 = vst [vmem:[#allocation47_spill] sm:$0xff] %v5912_v11  ;;  %v1501_v43 = vmax.f32 %v1499_v32, %v5912_v11  ;;  %v1527_v32 = vmax.f32 %v1525_v0, %v5852_v14 }
 0x2fb   : > { %v5916_v31 = vpop.f32.mrf.mxu1 }
 0x2fc   : > { %v1529_v29 = vmax.f32 %v1527_v32, %v5860_v51 }
 0x2fd   : > { %v5922_v41 = vpop.f32.mrf.mxu1 }
 0x2fe   : > { %8377 = vst [vmem:[#allocation48_spill] sm:$0xff] %v5922_v41  ;;  %v1502_v19 = vmax.f32 %v1500_v25, %v5922_v41  ;;  %v1526_v41 = vmax.f32 %v1524_v50, %v5848_v55 }
 0x2ff   : > { %v5929_v49 = vpop.f32.mrf.mxu1 }
 0x300   : > { %v1528_v34 = vmax.f32 %v1526_v41, %v5856_v58 }
 0x301   : > { %v5935_v44 = vpop.f32.mrf.mxu1 }
 0x302   : > { %v1503_v21 = vmax.f32 %v1501_v43, %v5935_v44  ;;  %v1531_v43 = vmax.f32 %v1529_v29, %v5868_v46  ;;  %v1530_v56 = vmax.f32 %v1528_v34, %v5864_v57 }
 0x303   : > { %v5941_v60 = vpop.f32.mrf.mxu1 }
 0x304   : > { %v1533_v28 = vmax.f32 %v1531_v43, %v5876_v45  ;;  %v1532_v8 = vmax.f32 %v1530_v56, %v5872_v40 }
 0x305   : > { %v5947_v2 = vpop.f32.mrf.mxu1 }
 0x306   : > { %v1504_v13 = vmax.f32 %v1502_v19, %v5947_v2  ;;  %v1534_v50 = vmax.f32 %v1532_v8, %v5884_v35 }
 0x308   : > { %v1505_v5 = vmax.f32 %v1503_v21, %v1504_v13  ;;  %v1535_v13 = vmax.f32 %v1533_v28, %v5892_v39  ;;  %v1536_v41 = vmax.f32 %v1534_v50, %v5900_v24 }
 0x30a   : > { %v1506_v25 = vrot.slane %v1505_v5, 4  ;;  %v1537_v32 = vmax.f32 %v1535_v13, %v5908_v4  ;;  %v1538_v34 = vmax.f32 %v1536_v41, %v5916_v31 }
 0x30c   : > { %v1507_v11 = vmax.f32 %v1505_v5, %v1506_v25  ;;  %v5967_v5 = vpop.f32.mrf.mxu1  ;;  %v1539_v25 = vmax.f32 %v1537_v32, %v5929_v49  ;;  %v1540_v43 = vmax.f32 %v1538_v34, %v5941_v60 }
 0x30e   : > { %v1508_v19 = vrot.slane %v1507_v11, 2 }
 0x310   : > { %v1509_v21 = vmax.f32 %v1507_v11, %v1508_v19  ;;  %v1541_v11 = vmax.f32 %v1539_v25, %v5967_v5 }
 0x312   : > { %v1510_v0 = vrot.slane %v1509_v21, 1  ;;  %v1542_v8 = vmax.f32 %v1540_v43, %v1541_v11 }
 0x314   : > { %v5971_v29 = vmax.f32 %v1509_v21, %v1510_v0  ;;  %v1543_v41 = vrot.slane %v1542_v8, 4 }
 0x316   : > { %v1549_v19 = vsub.f32 %v5782_v3, %v5971_v29  ;;  %v1551_v56 = vsub.f32 %v5786_v9, %v5971_v29  ;;  %v1553_v28 = vsub.f32 %v5790_v15, %v5971_v29  ;;  %v1555_v21 = vsub.f32 %v5794_v22, %v5971_v29 }
 0x317   : > { %v1557_v50 = vsub.f32 %v5798_v33, %v5971_v29  ;;  %v1559_v3 = vsub.f32 %v5802_v52, %v5971_v29  ;;  %v1561_v15 = vsub.f32 %v5806_v62, %v5971_v29  ;;  %v1544_v34 = vmax.f32 %v1542_v8, %v1543_v41  ;;  %v8378_v33 = vld [vmem:[#allocation37_spill] sm:$0xff] }
 0x318   : > { %v1613_v13 = vmul.f32 1.442695, %v1549_v19  ;;  %v1617_v0 = vmul.f32 1.442695, %v1551_v56  ;;  %v1621_v32 = vmul.f32 1.442695, %v1553_v28  ;;  %v1563_v22 = vsub.f32 %v5810_v1, %v5971_v29 }
 0x319   : > { %v1625_v9 = vmul.f32 1.442695, %v1555_v21  ;;  %v1629_v25 = vmul.f32 1.442695, %v1557_v50  ;;  %v1633_v11 = vmul.f32 1.442695, %v1559_v3  ;;  %v1565_v43 = vsub.f32 %v8378_v33, %v5971_v29 }
 0x31a   : > { %4602 = vpow2.f32 %v1613_v13  ;;  %v1637_v19 = vmul.f32 1.442695, %v1561_v15  ;;  %v1567_v52 = vsub.f32 %v5818_v7, %v5971_v29  ;;  %v1545_v56 = vrot.slane %v1544_v34, 2  ;;  %v8379_v28 = vld [vmem:[#allocation40_spill] sm:$0xff]  ;;  %v8380_v1 = vld [vmem:[#allocation41_spill] sm:$0xff] }
 0x31b   : > { %4604 = vpow2.f32 %v1617_v0  ;;  %v1569_v62 = vsub.f32 %v8379_v28, %v5971_v29  ;;  %v1641_v21 = vmul.f32 1.442695, %v1563_v22  ;;  %v1571_v8 = vsub.f32 %v5826_v17, %v5971_v29 }
 0x31c   : > { %4606 = vpow2.f32 %v1621_v32  ;;  %v1573_v13 = vsub.f32 %v8380_v1, %v5971_v29  ;;  %v1645_v0 = vmul.f32 1.442695, %v1565_v43  ;;  %v1575_v50 = vsub.f32 %v5834_v27, %v5971_v29 }
 0x31d   : > { %4608 = vpow2.f32 %v1625_v9  ;;  %v1649_v32 = vmul.f32 1.442695, %v1567_v52  ;;  %v1546_v41 = vmax.f32 %v1544_v34, %v1545_v56  ;;  %v1577_v3 = vsub.f32 %v5838_v53, %v5971_v29 }
 0x31e   : > { %4610 = vpow2.f32 %v1629_v25  ;;  %v1653_v9 = vmul.f32 1.442695, %v1569_v62  ;;  %v1593_v17 = vsub.f32 %v5870_v38, %v5971_v29  ;;  %v1657_v25 = vmul.f32 1.442695, %v1571_v8 }
 0x31f   : > { %4612 = vpow2.f32 %v1633_v11  ;;  %v1595_v22 = vsub.f32 %v5874_v48, %v5971_v29  ;;  %v1661_v27 = vmul.f32 1.442695, %v1573_v13  ;;  %v1597_v53 = vsub.f32 %v5878_v54, %v5971_v29 }
 0x320   : > { %4614 = vpow2.f32 %v1637_v19  ;;  %v1665_v33 = vmul.f32 1.442695, %v1575_v50  ;;  %v1547_v43 = vrot.slane %v1546_v41, 1  ;;  %v1599_v38 = vsub.f32 %v5888_v37, %v5971_v29  ;;  %v8382_v37 = vld [vmem:[#allocation42_spill] sm:$0xff] }
 0x321   : > { %4616 = vpow2.f32 %v1641_v21  ;;  %v1669_v19 = vmul.f32 1.442695, %v1577_v3  ;;  %v1601_v56 = vsub.f32 %v5896_v10, %v5971_v29  ;;  %v1701_v28 = vmul.f32 1.442695, %v1593_v17  ;;  %v8383_v17 = vld [vmem:[#allocation43_spill] sm:$0xff] }
 0x322   : > { %4618 = vpow2.f32 %v1645_v0  ;;  %v1603_v54 = vsub.f32 %v5904_v20, %v5971_v29  ;;  %v1705_v62 = vmul.f32 1.442695, %v1595_v22  ;;  %v1579_v1 = vsub.f32 %v8382_v37, %v5971_v29 }
 0x323   : > { %4620 = vpow2.f32 %v1649_v32  ;;  %v1709_v13 = vmul.f32 1.442695, %v1597_v53  ;;  %v6034_v0 = vmax.f32 %v1546_v41, %v1547_v43  ;;  %v1581_v10 = vsub.f32 %v5846_v30, %v5971_v29 }
 0x324   : > { %4622 = vpow2.f32 %v1653_v9  ;;  %v1713_v50 = vmul.f32 1.442695, %v1599_v38  ;;  %v1583_v3 = vsub.f32 %v5850_v23, %v5971_v29  ;;  %v1717_v9 = vmul.f32 1.442695, %v1601_v56  ;;  %v8384_v38 = vld [vmem:[#allocation44_spill] sm:$0xff] }
 0x325   : > { %4624 = vpow2.f32 %v1657_v25  ;;  %v1585_v25 = vsub.f32 %v8383_v17, %v5971_v29  ;;  %v1721_v41 = vmul.f32 1.442695, %v1603_v54  ;;  %v1673_v30 = vmul.f32 1.442695, %v1579_v1 }
 0x326   : > { %4626 = vpow2.f32 %v1661_v27  ;;  %v1677_v53 = vmul.f32 1.442695, %v1581_v10 }
 0x327   : > { %v6004_v7 = vpop.eup %4602  ;;  %4628 = vpow2.f32 %v1665_v33  ;;  %v1552_v33 = vsub.f32 %v5788_v12, %v6034_v0  ;;  %v1685_v56 = vmul.f32 1.442695, %v1585_v25 }
 0x328   : > { %v6008_v15 = vpop.eup %4604  ;;  %4630 = vpow2.f32 %v1669_v19  ;;  %v1587_v19 = vsub.f32 %v8384_v38, %v5971_v29 }
 0x329   : > { %8381 = vst [vmem:[#allocation37_spill] sm:$0xff] %v6008_v15  ;;  %v1741_v34 = vadd.f32 %v6008_v15, %v6004_v7  ;;  %v6016_v11 = vpop.eup %4606  ;;  %4632 = vpow2.f32 %v1701_v28 }
 0x32a   : > { %v6023_v52 = vpop.eup %4608  ;;  %4634 = vpow2.f32 %v1705_v62  ;;  %v8385_v62 = vld [vmem:[#allocation45_spill] sm:$0xff] }
 0x32b   : > { %v1742_v48 = vadd.f32 %v6016_v11, %v1741_v34  ;;  %v6030_v8 = vpop.eup %4610  ;;  %4636 = vpow2.f32 %v1709_v13  ;;  %v1550_v34 = vsub.f32 %v5784_v6, %v6034_v0  ;;  %v1554_v6 = vsub.f32 %v5792_v18, %v6034_v0  ;;  %v8386_v13 = vld [vmem:[#allocation34_spill] sm:$0xff] }
 0x32c   : > { %v6039_v32 = vpop.eup %4612  ;;  %4638 = vpow2.f32 %v1713_v50  ;;  %v1556_v10 = vsub.f32 %v8386_v13, %v6034_v0  ;;  %v1619_v50 = vmul.f32 1.442695, %v1552_v33  ;;  %v8387_v18 = vld [vmem:[#allocation46_spill] sm:$0xff] }
 0x32d   : > { %v1743_v21 = vadd.f32 %v6023_v52, %v1742_v48  ;;  %v6046_v27 = vpop.eup %4614  ;;  %v1681_v48 = vmul.f32 1.442695, %v1583_v3  ;;  %4640 = vpow2.f32 %v1717_v9  ;;  %v1615_v12 = vmul.f32 1.442695, %v1550_v34 }
 0x32e   : > { %v6053_v43 = vpop.eup %4616  ;;  %4642 = vpow2.f32 %v1721_v41  ;;  %v1591_v3 = vsub.f32 %v8387_v18, %v5971_v29  ;;  %v1689_v9 = vmul.f32 1.442695, %v1587_v19  ;;  %v1558_v41 = vsub.f32 %v5800_v42, %v6034_v0 }
 0x32f   : > { %v1744_v20 = vadd.f32 %v6030_v8, %v1743_v21  ;;  %v6060_v54 = vpop.eup %4618  ;;  %v1589_v21 = vsub.f32 %v8385_v62, %v5971_v29  ;;  %4644 = vpow2.f32 %v1673_v30  ;;  %v1562_v19 = vsub.f32 %v5808_v63, %v6034_v0 }
 0x330   : > { %v6064_v37 = vpop.eup %4620  ;;  %4646 = vpow2.f32 %v1677_v53  ;;  %v8388_v53 = vld [vmem:[#allocation35_spill] sm:$0xff]  ;;  %v1697_v42 = vmul.f32 1.442695, %v1591_v3  ;;  %v1631_v13 = vmul.f32 1.442695, %v1558_v41  ;;  %v1574_v63 = vsub.f32 %v5832_v61, %v6034_v0 }
 0x331   : > { %v1745_v22 = vadd.f32 %v6039_v32, %v1744_v20  ;;  %v6069_v20 = vpop.eup %4622  ;;  %4648 = vpow2.f32 %v1681_v48  ;;  %v1693_v34 = vmul.f32 1.442695, %v1589_v21  ;;  %v1627_v48 = vmul.f32 1.442695, %v1556_v10 }
 0x332   : > { %v6073_v17 = vpop.eup %4624  ;;  %4650 = vpow2.f32 %v1685_v56  ;;  %v1576_v10 = vsub.f32 %v5836_v59, %v6034_v0  ;;  %v1580_v61 = vsub.f32 %v5844_v36, %v6034_v0 }
 0x333   : > { %v1746_v23 = vadd.f32 %v6046_v27, %v1745_v22  ;;  %v1623_v22 = vmul.f32 1.442695, %v1554_v6  ;;  %v6078_v30 = vpop.eup %4626  ;;  %4652 = vpow2.f32 %v1615_v12  ;;  %v8390_v12 = vld [vmem:[#allocation38_spill] sm:$0xff] }
 0x334   : > { %v6082_v33 = vpop.eup %4628  ;;  %4654 = vpow2.f32 %v1619_v50 }
 0x335   : > { %v1747_v28 = vadd.f32 %v6053_v43, %v1746_v23  ;;  %v1560_v23 = vsub.f32 %v8388_v53, %v6034_v0  ;;  %v6087_v56 = vpop.eup %4630  ;;  %4656 = vpow2.f32 %v1689_v9 }
 0x336   : > { %v6091_v62 = vpop.eup %4632  ;;  %4658 = vpow2.f32 %v1623_v22 }
 0x337   : > { %v1748_v1 = vadd.f32 %v6060_v54, %v1747_v28  ;;  %v8389_v28 = vld [vmem:[#allocation36_spill] sm:$0xff]  ;;  %v6096_v18 = vpop.eup %4634  ;;  %4660 = vpow2.f32 %v1693_v34  ;;  %v1635_v50 = vmul.f32 1.442695, %v1560_v23  ;;  %v1578_v34 = vsub.f32 %v5840_v47, %v6034_v0 }
 0x338   : > { %v1564_v6 = vsub.f32 %v8389_v28, %v6034_v0  ;;  %v6102_v3 = vpop.eup %4636  ;;  %4662 = vpow2.f32 %v1627_v48  ;;  %v1663_v47 = vmul.f32 1.442695, %v1574_v63 }
 0x339   : > { %v1749_v25 = vadd.f32 %v6064_v37, %v1748_v1  ;;  %v1566_v1 = vsub.f32 %v8390_v12, %v6034_v0  ;;  %v6107_v41 = vpop.eup %4638  ;;  %4664 = vpow2.f32 %v1697_v42  ;;  %v8391_v42 = vld [vmem:[#allocation39_spill] sm:$0xff] }
 0x33a   : > { %v1643_v59 = vmul.f32 1.442695, %v1564_v6  ;;  %v6113_v53 = vpop.eup %4640  ;;  %4666 = vpow2.f32 %v1631_v13  ;;  %v1568_v28 = vsub.f32 %v8391_v42, %v6034_v0  ;;  %v1667_v6 = vmul.f32 1.442695, %v1576_v10 }
 0x33b   : > { %v1750_v38 = vadd.f32 %v6069_v20, %v1749_v25  ;;  %v1639_v25 = vmul.f32 1.442695, %v1562_v19  ;;  %v6118_v48 = vpop.eup %4642  ;;  %4668 = vpow2.f32 %v1635_v50  ;;  %v1570_v13 = vsub.f32 %v5824_v16, %v6034_v0 }
 0x33c   : > { %v1572_v50 = vsub.f32 %v5828_v26, %v6034_v0  ;;  %v1651_v19 = vmul.f32 1.442695, %v1568_v28  ;;  %v8397_v28 = vld [vmem:[#allocation48_spill] sm:$0xff] }
 0x33d   : > { %v1751_v21 = vadd.f32 %v6073_v17, %v1750_v38  ;;  %v1647_v38 = vmul.f32 1.442695, %v1566_v1  ;;  %4670 = vpow2.f32 %v1639_v25  ;;  %v1675_v25 = vmul.f32 1.442695, %v1580_v61 }
 0x33e   : > { %4672 = vpow2.f32 %v1643_v59  ;;  %v1659_v61 = vmul.f32 1.442695, %v1572_v50 }
 0x33f   : > { %v1752_v9 = vadd.f32 %v6078_v30, %v1751_v21  ;;  %v6122_v21 = vpop.eup %4644  ;;  %4674 = vpow2.f32 %v1647_v38 }
 0x340   : > { %v6127_v1 = vpop.eup %4646  ;;  %4676 = vpow2.f32 %v1663_v47 }
 0x341   : > { %v1753_v23 = vadd.f32 %v6082_v33, %v1752_v9  ;;  %8392 = vst [vmem:[#allocation40_spill] sm:$0xff] %v6127_v1  ;;  %v1671_v9 = vmul.f32 1.442695, %v1578_v34  ;;  %v6131_v22 = vpop.eup %4648  ;;  %4678 = vpow2.f32 %v1667_v6  ;;  %v8395_v34 = vld [vmem:[#allocation47_spill] sm:$0xff]  ;;  %v1607_v6 = vsub.f32 %v8397_v28, %v5971_v29 }
 0x342   : > { %8393 = vst [vmem:[#allocation41_spill] sm:$0xff] %v6131_v22  ;;  %v6136_v10 = vpop.eup %4650  ;;  %v1605_v59 = vsub.f32 %v8395_v34, %v5971_v29  ;;  %v1602_v34 = vsub.f32 %v5900_v24, %v6034_v0 }
 0x343   : > { %v1754_v36 = vadd.f32 %v6087_v56, %v1753_v23  ;;  %8394 = vst [vmem:[#allocation42_spill] sm:$0xff] %v6136_v10  ;;  %v6138_v23 = vpop.eup %4652  ;;  %4680 = vpow2.f32 %v1671_v9 }
 0x344   : > { %v6141_v16 = vpop.eup %4654  ;;  %4682 = vpow2.f32 %v1675_v25  ;;  %v1725_v25 = vmul.f32 1.442695, %v1605_v59  ;;  %v1611_v59 = vsub.f32 %v5947_v2, %v5971_v29 }
 0x345   : > { %v1755_v63 = vadd.f32 %v6122_v21, %v1754_v36  ;;  %v1655_v36 = vmul.f32 1.442695, %v1570_v13  ;;  %v6145_v12 = vpop.eup %4656  ;;  %v1778_v38 = vadd.f32 %v6141_v16, %v6138_v23  ;;  %v1609_v13 = vsub.f32 %v5935_v44, %v5971_v29 }
 0x346   : > { %8396 = vst [vmem:[#allocation43_spill] sm:$0xff] %v6145_v12  ;;  %v6150_v47 = vpop.eup %4658  ;;  %4684 = vpow2.f32 %v1651_v19  ;;  %v1584_v29 = vsub.f32 %v5852_v14, %v6034_v0 }
 0x347   : > { %v1756_v42 = vadd.f32 %v6127_v1, %v1755_v63  ;;  %v6154_v63 = vpop.eup %4660  ;;  %4686 = vpow2.f32 %v1655_v36  ;;  %v1604_v1 = vsub.f32 %v5908_v4, %v6034_v0  ;;  %v1733_v24 = vmul.f32 1.442695, %v1609_v13 }
 0x348   : > { %v6160_v50 = vpop.eup %4662  ;;  %4688 = vpow2.f32 %v1659_v61  ;;  %v1582_v4 = vsub.f32 %v5848_v55, %v6034_v0  ;;  %v1719_v61 = vmul.f32 1.442695, %v1602_v34 }
 0x349   : > { %v1757_v26 = vadd.f32 %v6131_v22, %v1756_v42  ;;  %v1779_v42 = vadd.f32 %v6150_v47, %v1778_v38  ;;  %v6164_v22 = vpop.eup %4664  ;;  %4690 = vpow2.f32 %v1725_v25  ;;  %v1586_v25 = vsub.f32 %v5856_v58, %v6034_v0 }
 0x34a   : > { %8398 = vst [vmem:[#allocation44_spill] sm:$0xff] %v6164_v22  ;;  %v6170_v19 = vpop.eup %4666 }
 0x34b   : > { %v1758_v9 = vadd.f32 %v6136_v10, %v1757_v26  ;;  %v1780_v44 = vadd.f32 %v6160_v50, %v1779_v42  ;;  %v1729_v26 = vmul.f32 1.442695, %v1607_v6  ;;  %v6172_v38 = vpop.eup %4668 }
 0x34d   : > { %v1759_v28 = vadd.f32 %v6145_v12, %v1758_v9  ;;  %v1781_v10 = vadd.f32 %v6170_v19, %v1780_v44  ;;  %v6178_v9 = vpop.eup %4670  ;;  %v1723_v12 = vmul.f32 1.442695, %v1604_v1  ;;  %4692 = vpow2.f32 %v1729_v26 }
 0x34e   : > { %v6182_v42 = vpop.eup %4672  ;;  %4694 = vpow2.f32 %v1733_v24  ;;  %v1679_v26 = vmul.f32 1.442695, %v1582_v4  ;;  %v1683_v24 = vmul.f32 1.442695, %v1584_v29  ;;  %v1687_v4 = vmul.f32 1.442695, %v1586_v25 }
 0x34f   : > { %v1760_v36 = vadd.f32 %v6154_v63, %v1759_v28  ;;  %v1782_v15 = vadd.f32 %v6172_v38, %v1781_v10  ;;  %v6186_v2 = vpop.eup %4674  ;;  %v1737_v28 = vmul.f32 1.442695, %v1611_v59  ;;  %4696 = vpow2.f32 %v1719_v61 }
 0x350   : > { %v4677_v13 = vpop.eup %4676  ;;  %4698 = vpow2.f32 %v1723_v12  ;;  %v1588_v59 = vsub.f32 %v5860_v51, %v6034_v0  ;;  %v1590_v12 = vsub.f32 %v5864_v57, %v6034_v0 }
 0x351   : > { %v1761_v6 = vadd.f32 %v6164_v22, %v1760_v36  ;;  %v1783_v34 = vadd.f32 %v6178_v9, %v1782_v15  ;;  %v4679_v44 = vpop.eup %4678  ;;  %4700 = vpow2.f32 %v1737_v28  ;;  %v1594_v22 = vsub.f32 %v5872_v40, %v6034_v0 }
 0x352   : > { %v6194_v1 = vpop.eup %4680  ;;  %4702 = vpow2.f32 %v1679_v26  ;;  %v1828_v28 = vpack.c.bf16 %v4679_v44, %v4677_v13  ;;  %v1691_v25 = vmul.f32 1.442695, %v1588_v59  ;;  %v1612_v26 = vsub.f32 %v5967_v5, %v6034_v0 }
 0x353   : > { %v1762_v55 = vadd.f32 %v6091_v62, %v1761_v6  ;;  %v1784_v14 = vadd.f32 %v6182_v42, %v1783_v34  ;;  %v6198_v36 = vpop.eup %4682  ;;  %4704 = vpow2.f32 %v1683_v24  ;;  %v1596_v59 = vsub.f32 %v5876_v45, %v6034_v0 }
 0x354   : > { %v1830_v61 = vpack.c.bf16 %v6198_v36, %v6194_v1  ;;  %v4685_v6 = vpop.eup %4684  ;;  %4706 = vpow2.f32 %v1687_v4  ;;  %v1606_v5 = vsub.f32 %v5916_v31, %v6034_v0  ;;  %v1608_v45 = vsub.f32 %v5929_v49, %v6034_v0 }
 0x355   : > { %v1763_v10 = vadd.f32 %v6096_v18, %v1762_v55  ;;  %v1785_v58 = vadd.f32 %v6186_v2, %v1784_v14  ;;  %v1829_v55 = vpack.c.bf16 %v6122_v21, %v6087_v56  ;;  %v4687_v34 = vpop.eup %4686  ;;  %v1592_v14 = vsub.f32 %v5868_v46, %v6034_v0 }
 0x356   : > { %1847 = vmatprep.subr.bf16.mxu0 %v1830_v61  ;;  %v1610_v21 = vsub.f32 %v5941_v60, %v6034_v0  ;;  %v1827_v46 = vpack.c.bf16 %v6082_v33, %v6078_v30  ;;  %v1598_v60 = vsub.f32 %v5884_v35, %v6034_v0  ;;  %4708 = vpow2.f32 %v1691_v25 }
 0x357   : > { %v1764_v15 = vadd.f32 %v6102_v3, %v1763_v10  ;;  %v1786_v29 = vadd.f32 %v4685_v6, %v1785_v58  ;;  %v4689_v10 = vpop.eup %4688  ;;  %1848 = vmatpush1.bf16.msra.mxu0 %v1829_v55  ;;  %v1699_v24 = vmul.f32 1.442695, %v1592_v14  ;;  %v1703_v33 = vmul.f32 1.442695, %v1594_v22 }
 0x358   : > { %1849 = vmatprep.subr.bf16.mxu0 %v1828_v28  ;;  %v1826_v61 = vpack.c.bf16 %v4689_v10, %v4687_v34  ;;  %v6223_v55 = vpop.eup %4690  ;;  %v1739_v35 = vmul.f32 1.442695, %v1612_v26  ;;  %v1825_v31 = vpack.c.bf16 %v6073_v17, %v6069_v20  ;;  %v1824_v22 = vpack.c.bf16 %v4685_v6, %v6186_v2 }
 0x359   : > { %v1765_v51 = vadd.f32 %v6107_v41, %v1764_v15  ;;  %v1787_v56 = vadd.f32 %v4687_v34, %v1786_v29  ;;  %v1695_v15 = vmul.f32 1.442695, %v1590_v12  ;;  %v1600_v14 = vsub.f32 %v5892_v39, %v6034_v0 }
 0x35a   : > { %v6231_v12 = vpop.eup %4692  ;;  %v1707_v49 = vmul.f32 1.442695, %v1596_v59  ;;  %v1727_v2 = vmul.f32 1.442695, %v1606_v5  ;;  %v1731_v6 = vmul.f32 1.442695, %v1608_v45  ;;  %v1823_v39 = vpack.c.bf16 %v6064_v37, %v6060_v54  ;;  %v1130_v45 = vpop.f32.mrf.mxu0 }
 0x35b   : > { %v1766_v57 = vadd.f32 %v6113_v53, %v1765_v51  ;;  %v1788_v40 = vadd.f32 %v4689_v10, %v1787_v56  ;;  %1850 = vmatpush1.bf16.msra.mxu0 %v1827_v46  ;;  %v6234_v34 = vpop.eup %4694  ;;  %v1735_v51 = vmul.f32 1.442695, %v1610_v21  ;;  %4710 = vpow2.f32 %v1695_v15 }
 0x35c   : > { %1851 = vmatprep.subr.bf16.mxu0 %v1826_v61  ;;  %v6240_v29 = vpop.eup %4696  ;;  %4712 = vpow2.f32 %v1699_v24  ;;  %v1822_v21 = vpack.c.bf16 %v6182_v42, %v6178_v9  ;;  %v1715_v26 = vmul.f32 1.442695, %v1600_v14  ;;  %v1821_v54 = vpack.c.bf16 %v6053_v43, %v6046_v27 }
 0x35d   : > { %v1767_v58 = vadd.f32 %v6118_v48, %v1766_v57  ;;  %v1789_v4 = vadd.f32 %v4677_v13, %v1788_v40  ;;  %v6244_v13 = vpop.eup %4698  ;;  %v1711_v57 = vmul.f32 1.442695, %v1598_v60  ;;  %4714 = vpow2.f32 %v1703_v33 }
 0x35e   : > { %v1842_v17 = vpack.c.bf16 %v6244_v13, %v6240_v29  ;;  %4716 = vpow2.f32 %v1735_v51  ;;  %v1820_v9 = vpack.c.bf16 %v6172_v38, %v6170_v19  ;;  %v1819_v40 = vpack.c.bf16 %v6039_v32, %v6030_v8 }
 0x35f   : > { %v1768_v30 = vadd.f32 %v6223_v55, %v1767_v58  ;;  %v1790_v10 = vadd.f32 %v4679_v44, %v1789_v4  ;;  %1852 = vmatpush1.bf16.msra.mxu0 %v1825_v31  ;;  %v4701_v44 = vpop.eup %4700  ;;  %4718 = vpow2.f32 %v1739_v35  ;;  %v1818_v27 = vpack.c.bf16 %v6160_v50, %v6150_v47  ;;  %v8399_v50 = vld [vmem:[#allocation37_spill] sm:$0xff] }
 0x360   : > { %1853 = vmatprep.subr.bf16.mxu0 %v1824_v22  ;;  %4720 = vpow2.f32 %v1707_v49  ;;  %v1817_v38 = vpack.c.bf16 %v6023_v52, %v6016_v11  ;;  %v1815_v4 = vpack.c.bf16 %v8399_v50, %v6004_v7  ;;  %v1843_v7 = vpack.c.bf16 %v6231_v12, %v6223_v55 }
 0x361   : > { %v1769_v28 = vadd.f32 %v6231_v12, %v1768_v30  ;;  %v1791_v20 = vadd.f32 %v6194_v1, %v1790_v10  ;;  %v6259_v1 = vpop.eup %4702  ;;  %4722 = vpow2.f32 %v1711_v57  ;;  %v1816_v30 = vpack.c.bf16 %v6141_v16, %v6138_v23  ;;  %v1132_v16 = vpop.f32.mrf.mxu0 }
 0x362   : > { %v6262_v46 = vpop.eup %4704  ;;  %4724 = vpow2.f32 %v1727_v2  ;;  %v1845_v23 = vpack.c.bf16 %v4701_v44, %v6234_v34  ;;  %v8400_v2 = vpack.c.bf16 %v6118_v48, %v6113_v53  ;;  %v8403_v53 = vld [vmem:[#allocation44_spill] sm:$0xff] }
 0x363   : > { %v1770_v25 = vadd.f32 %v6234_v34, %v1769_v28  ;;  %v1792_v56 = vadd.f32 %v6198_v36, %v1791_v20  ;;  %1854 = vmatpush1.bf16.msra.mxu0 %v1823_v39  ;;  %4726 = vpow2.f32 %v1731_v6  ;;  %v6269_v42 = vpop.eup %4706  ;;  %v1136_v49 = vpop.f32.mrf.mxu0  ;;  %v1835_v48 = vpack.c.bf16 %v8403_v53, %v6154_v63  ;;  %v8408_v63 = vld [vmem:[#allocation9_spill] sm:$0xff] }
 0x364   : > { %1855 = vmatprep.subr.bf16.mxu0 %v1822_v21  ;;  %4728 = vpow2.f32 %v1715_v26  ;;  %v4709_v58 = vpop.eup %4708  ;;  %v8433_v53 = vld [vmem:[#allocation21_spill] sm:$0xff] }
 0x365   : > { %v6254_v0 = vadd.f32 %v4701_v44, %v1770_v25  ;;  %v1793_v15 = vadd.f32 %v6259_v1, %v1792_v56  ;;  %v1138_v34 = vpop.f32.mrf.mxu0  ;;  %v8401_v56 = vpack.c.bf16 %v6107_v41, %v6102_v3  ;;  %v1834_v26 = vpack.c.bf16 %v4709_v58, %v6269_v42 }
 0x367   : > { %v1794_v37 = vadd.f32 %v6262_v46, %v1793_v15  ;;  %1856 = vmatpush1.bf16.msra.mxu0 %v1821_v54  ;;  %v1142_v39 = vpop.f32.mrf.mxu0  ;;  %v8404_v15 = vld [vmem:[#allocation42_spill] sm:$0xff]  ;;  %v8405_v54 = vld [vmem:[#allocation43_spill] sm:$0xff] }
 0x368   : > { %1857 = vmatprep.subr.bf16.mxu0 %v1820_v9  ;;  %v4711_v43 = vpop.eup %4710  ;;  %v1833_v3 = vpack.c.bf16 %v8405_v54, %v8404_v15  ;;  %v8407_v9 = vld [vmem:[#allocation41_spill] sm:$0xff] }
 0x369   : > { %v1795_v36 = vadd.f32 %v6269_v42, %v1794_v37  ;;  %v4713_v59 = vpop.eup %4712  ;;  %v1832_v37 = vpack.c.bf16 %v6262_v46, %v6259_v1  ;;  %v8409_v42 = vld [vmem:[#allocation11_spill] sm:$0xff]  ;;  %v1205_v1 = vpack.c.bf16 %v1136_v49, %v1130_v45  ;;  %v8413_v46 = vld [vmem:[#allocation10_spill] sm:$0xff] }
 0x36a   : > { %v4715_v19 = vpop.eup %4714 }
 0x36b   : > { %v1796_v61 = vadd.f32 %v4709_v58, %v1795_v36  ;;  %1858 = vmatpush1.bf16.msra.mxu0 %v1819_v40  ;;  %v4717_v5 = vpop.eup %4716  ;;  %v956_v58 = vpack.c.bf16 %v8409_v42, %v8408_v63 }
 0x36c   : > { %1859 = vmatprep.subr.bf16.mxu0 %v1818_v27  ;;  %v4719_v33 = vpop.eup %4718  ;;  %v8410_v27 = vld [vmem:[#allocation7_spill] sm:$0xff] }
 0x36d   : > { %v1797_v60 = vadd.f32 %v4711_v43, %v1796_v61  ;;  %v4721_v8 = vpop.eup %4720  ;;  %v1846_v31 = vpack.c.bf16 %v4719_v33, %v4717_v5  ;;  %v1206_v61 = vpack.c.bf16 %v1138_v34, %v1132_v16 }
 0x36e   : > { %v4723_v47 = vpop.eup %4722  ;;  %v1838_v12 = vpack.c.bf16 %v4721_v8, %v4715_v19 }
 0x36f   : > { %v1798_v24 = vadd.f32 %v4713_v59, %v1797_v60  ;;  %1860 = vmatpush1.bf16.msra.mxu0 %v1817_v38  ;;  %v4725_v51 = vpop.eup %4724  ;;  %v8414_v60 = vld [vmem:[#allocation8_spill] sm:$0xff]  ;;  %v8416_v38 = vmov 0  }
 0x370   : > { %1861 = vmatprep.subr.bf16.mxu0 %v1816_v30  ;;  %v4727_v28 = vpop.eup %4726 }
 0x371   : > { %v1799_v32 = vadd.f32 %v4715_v19, %v1798_v24  ;;  %v4729_v52 = vpop.eup %4728  ;;  %v1844_v22 = vpack.c.bf16 %v4727_v28, %v4725_v51  ;;  %v8415_v19 = vpack.c.bf16 %v8413_v46, %v8414_v60 }
 0x372   : > { %v1840_v44 = vpack.c.bf16 %v4729_v52, %v4723_v47 }
 0x373   : > { %v1800_v35 = vadd.f32 %v4721_v8, %v1799_v32  ;;  %1862 = vmatpush1.bf16.msra.mxu0 %v1815_v4  ;;  %v1935_v8 = vpop.permute.xlu1 %1934 }
 0x374   : > { %1863 = vmatprep.subr.bf16.mxu0 %v1846_v31 }
 0x375   : > { %v1801_v11 = vadd.f32 %v4723_v47, %v1800_v35 }
 0x377   : > { %v1802_v10 = vadd.f32 %v4729_v52, %v1801_v11  ;;  %1864 = vmatpush2.bf16.msra.mxu0 %v1845_v23 }
 0x378   : > { %1865 = vmatprep.subr.bf16.mxu0 %v1844_v22 }
 0x379   : > { %v1803_v14 = vadd.f32 %v6240_v29, %v1802_v10  ;;  %v1144_v29 = vpop.f32.mrf.mxu0 }
 0x37b   : > { %v1804_v57 = vadd.f32 %v6244_v13, %v1803_v14  ;;  %1866 = vmatpush2.bf16.msra.mxu0 %v1843_v7  ;;  %v1836_v13 = vpack.c.bf16 %v4713_v59, %v4711_v43  ;;  %v1148_v21 = vpop.f32.mrf.mxu0  ;;  %v8411_v43 = vld [vmem:[#allocation6_spill] sm:$0xff] }
 0x37c   : > { %1867 = vmatprep.subr.bf16.mxu0 %v1842_v17  ;;  %v8402_v17 = vpack.c.bf16 %v6096_v18, %v6091_v62  ;;  %v8406_v18 = vld [vmem:[#allocation40_spill] sm:$0xff]  ;;  %v1207_v40 = vpack.c.bf16 %v1148_v21, %v1142_v39  ;;  %v8412_v59 = vpack.c.bf16 %v8410_v27, %v8411_v43  ;;  %v1772_v21 = vrot.slane %v6254_v0, 4 }
 0x37d   : > { %v1805_v25 = vadd.f32 %v4725_v51, %v1804_v57  ;;  %v1150_v41 = vpop.f32.mrf.mxu0  ;;  %v1831_v36 = vpack.c.bf16 %v8407_v9, %v8406_v18  ;;  %v1937_v51 = vpop.permute.xlu1 %1936 }
 0x37e   : > { %v1208_v62 = vpack.c.bf16 %v1150_v41, %v1144_v29  ;;  %v1773_v15 = vadd.f32 %v1772_v21, %v6254_v0 }
 0x37f   : > { %v1806_v20 = vadd.f32 %v4727_v28, %v1805_v25  ;;  %1868 = vmatpush2.bf16.msra.mxu0 %v8400_v2 }
 0x380   : > { %1869 = vmatprep.subr.bf16.mxu0 %v1840_v44 }
 0x381   : > { %v1807_v6 = vadd.f32 %v4717_v5, %v1806_v20  ;;  %v6319_v5 = vpop.f32.mrf.mxu0  ;;  %v1939_v23 = vpop.permute.xlu1 %1938 }
 0x382   : > { %8417 = vst [vmem:[#allocation45_spill] sm:$0xff] %v6319_v5 }
 0x383   : > { %v6293_v55 = vadd.f32 %v4719_v33, %v1807_v6  ;;  %1870 = vmatpush2.bf16.msra.mxu0 %v8401_v56  ;;  %v6321_v24 = vpop.f32.mrf.mxu0 }
 0x384   : > { %1871 = vmatprep.subr.bf16.mxu0 %v1838_v12  ;;  %8418 = vst [vmem:[#allocation34_spill] sm:$0xff] %v6321_v24 }
 0x385   : > { %v6323_v30 = vpop.f32.mrf.mxu0  ;;  %v1941_v49 = vpop.permute.xlu1 %1940 }
 0x386   : > { %8419 = vst [vmem:[#allocation46_spill] sm:$0xff] %v6323_v30 }
 0x387   : > { %1872 = vmatpush2.bf16.msra.mxu0 %v8402_v17  ;;  %v6327_v32 = vpop.f32.mrf.mxu0  ;;  %v8432_v17 = vld [vmem:[#allocation19_spill] sm:$0xff] }
 0x388   : > { %1873 = vmatprep.subr.bf16.mxu0 %v1836_v13  ;;  %8420 = vst [vmem:[#allocation35_spill] sm:$0xff] %v6327_v32 }
 0x389   : > { %v6331_v47 = vpop.f32.mrf.mxu0  ;;  %v1943_v57 = vpop.permute.xlu1 %1942 }
 0x38a   : > { %8421 = vst [vmem:[#allocation36_spill] sm:$0xff] %v6331_v47 }
 0x38b   : > { %1874 = vmatpush2.bf16.msra.mxu0 %v1835_v48  ;;  %v6333_v50 = vpop.f32.mrf.mxu0  ;;  %v962_v48 = vpack.c.bf16 %v8433_v53, %v8432_v17 }
 0x38c   : > { %1875 = vmatprep.subr.bf16.mxu0 %v1834_v26  ;;  %8422 = vst [vmem:[#allocation38_spill] sm:$0xff] %v6333_v50  ;;  %v1809_v26 = vrot.slane %v6293_v55, 4 }
 0x38d   : > { %v6335_v4 = vpop.f32.mrf.mxu0  ;;  %v1945_v25 = vpop.permute.xlu1 %1944 }
 0x38e   : > { %8423 = vst [vmem:[#allocation39_spill] sm:$0xff] %v6335_v4  ;;  %v1810_v54 = vadd.f32 %v1809_v26, %v6293_v55 }
 0x38f   : > { %1876 = vmatpush2.bf16.msra.mxu0 %v1833_v3  ;;  %v6339_v35 = vpop.f32.mrf.mxu0  ;;  %v1774_v3 = vrot.slane %v1773_v15, 2 }
 0x390   : > { %1877 = vmatprep.subr.bf16.mxu0 %v1832_v37  ;;  %8424 = vst [vmem:[#allocation47_spill] sm:$0xff] %v6339_v35  ;;  %v1811_v41 = vrot.slane %v1810_v54, 2 }
 0x391   : > { %v6343_v31 = vpop.f32.mrf.mxu0  ;;  %v1947_v34 = vpop.permute.xlu1 %1946  ;;  %v1775_v37 = vadd.f32 %v1774_v3, %v1773_v15 }
 0x392   : > { %8425 = vst [vmem:[#allocation48_spill] sm:$0xff] %v6343_v31 }
 0x393   : > { %1878 = vmatpush2.bf16.msra.mxu0 %v1831_v36  ;;  %v6345_v28 = vpop.f32.mrf.mxu0  ;;  %v1776_v18 = vrot.slane %v1775_v37, 1 }
 0x394   : > { %2026 = vmatprep.subr.bf16.mxu0 %v1208_v62  ;;  %8426 = vst [vmem:[#allocation37_spill] sm:$0xff] %v6345_v28  ;;  %v1812_v62 = vadd.f32 %v1811_v41, %v1810_v54 }
 0x395   : > { %v6347_v11 = vpop.f32.mrf.mxu0  ;;  %v1949_v20 = vpop.permute.xlu1 %1948  ;;  %v1777_v36 = vadd.f32 %v1776_v18, %v1775_v37 }
 0x396   : > { %1880 = vmatmul.mubr.bf16.vlgmr.msra.gmra.mxu0 %v8412_v59  ;;  %8427 = vst [vmem:[#allocation44_spill] sm:$0xff] %v6347_v11  ;;  %v1813_v9 = vrot.slane %v1812_v62, 1 }
 0x397   : > { %1889 = vmatprep.mubr.bf16.mxu0 %v956_v58  ;;  %2027 = vmatpush1.bf16.msra.mxu0 %v1207_v40  ;;  %v6351_v16 = vpop.f32.mrf.mxu0  ;;  %4730 = vrcp.f32 %v1777_v36 }
 0x398   : > { %2028 = vmatprep.subr.bf16.mxu0 %v1206_v61  ;;  %8428 = vst [vmem:[#allocation42_spill] sm:$0xff] %v6351_v16  ;;  %v1814_v40 = vadd.f32 %v1813_v9, %v1812_v62 }
 0x399   : > { %v6355_v10 = vpop.f32.mrf.mxu0  ;;  %v1951_v44 = vpop.permute.xlu1 %1950 }
 0x39a   : > { %8429 = vst [vmem:[#allocation43_spill] sm:$0xff] %v6355_v10  ;;  %4732 = vrcp.f32 %v1814_v40 }
 0x39b   : > { %2029 = vmatpush1.bf16.msra.mxu0 %v1205_v1  ;;  %v6357_v22 = vpop.f32.mrf.mxu0 }
 0x39c   : > { %8430 = vst [vmem:[#allocation40_spill] sm:$0xff] %v6357_v22 }
 0x39d   : > { %v6359_v14 = vpop.f32.mrf.mxu0  ;;  %v1953_v2 = vpop.permute.xlu1 %1952 }
 0x39e   : > { %1890 = vmatmul.mubr.bf16.gmra.mxu0 %v8415_v19  ;;  %8431 = vst [vmem:[#allocation41_spill] sm:$0xff] %v6359_v14 }
 0x39f   : > { %2046 = vmatprep.mubr.bf16.mxu0 %v8416_v38  ;;  %v6394_v63 = vpop.f32.mrf.mxu0 }
 0x3a0   : > { %8434 = vst [vmem:[#allocation9_spill] sm:$0xff] %v6394_v63 }
 0x3a1   : > { %v1955_v6 = vpop.permute.xlu1 %1954 }
 0x3a4   : > { %v4731_v42 = vpop.eup %4730 }
 0x3a5   : > { %v1957_v39 = vpop.permute.xlu1 %1956 }
 0x3a6   : > { %4397 = vmatmul.mubr.msk.bf16.vlgmr.msra.gmra.mxu0 %vm1233_vm2, %v1935_v8 }
 0x3a7   : > { %2056 = vmatprep.mubr.bf16.mxu0 %v8416_v38  ;;  %v6398_v27 = vpop.eup %4732 }
 0x3a8   : > { %8436 = vst [vmem:[#allocation7_spill] sm:$0xff] %v6398_v27 }
 0x3a9   : > { %v1959_v12 = vpop.permute.xlu1 %1958 }
 0x3ad   : > { %v1961_v56 = vpop.permute.xlu1 %1960 }
 0x3ae   : > { %4398 = vmatmul.mubr.msk.bf16.gmra.mxu0 %vm1233_vm2, %v1937_v51 }
 0x3af   : > { %2066 = vmatprep.mubr.bf16.mxu0 %v8416_v38 }
 0x3b1   : > { %v1963_v29 = vpop.permute.xlu1 %1962 }
 0x3b5   : > { %v1965_v13 = vpop.permute.xlu1 %1964 }
 0x3b6   : > { %4399 = vmatmul.mubr.msk.bf16.gmra.mxu0 %vm1233_vm2, %v1939_v23 }
 0x3b7   : > { %2076 = vmatprep.mubr.bf16.mxu0 %v8416_v38 }
 0x3be   : > { %4400 = vmatmul.mubr.msk.bf16.gmra.mxu0 %vm1233_vm2, %v1941_v49 }
 0x3bf   : > { %2086 = vmatprep.mubr.bf16.mxu0 %v8416_v38 }
 0x3c6   : > { %4401 = vmatmul.mubr.msk.bf16.gmra.mxu0 %vm1233_vm2, %v1943_v57 }
 0x3c7   : > { %2096 = vmatprep.mubr.bf16.mxu0 %v8416_v38 }
 0x3ce   : > { %4402 = vmatmul.mubr.msk.bf16.gmra.mxu0 %vm1233_vm2, %v1945_v25 }
 0x3cf   : > { %2106 = vmatprep.mubr.bf16.mxu0 %v8416_v38 }
 0x3d6   : > { %4403 = vmatmul.mubr.msk.bf16.gmra.mxu0 %vm1233_vm2, %v1947_v34 }
 0x3d7   : > { %2116 = vmatprep.mubr.bf16.mxu0 %v8416_v38 }
 0x3de   : > { %4404 = vmatmul.mubr.msk.bf16.gmra.mxu0 %vm1233_vm2, %v1949_v20 }
 0x3df   : > { %2126 = vmatprep.mubr.bf16.mxu0 %v8416_v38 }
 0x3e6   : > { %4405 = vmatmul.mubr.msk.bf16.gmra.mxu0 %vm1233_vm2, %v1951_v44 }
 0x3e7   : > { %2136 = vmatprep.mubr.bf16.mxu0 %v8416_v38 }
 0x3ee   : > { %4406 = vmatmul.mubr.msk.bf16.gmra.mxu0 %vm1233_vm2, %v1953_v2 }
 0x3ef   : > { %2146 = vmatprep.mubr.bf16.mxu0 %v8416_v38 }
 0x3f6   : > { %4407 = vmatmul.mubr.msk.bf16.gmra.mxu0 %vm1233_vm2, %v1955_v6 }
 0x3f7   : > { %2156 = vmatprep.mubr.bf16.mxu0 %v8416_v38 }
 0x3fe   : > { %4408 = vmatmul.mubr.msk.bf16.gmra.mxu0 %vm1233_vm2, %v1957_v39 }
 0x3ff   : > { %2166 = vmatprep.mubr.bf16.mxu0 %v8416_v38 }
 0x406   : > { %4409 = vmatmul.mubr.msk.bf16.gmra.mxu0 %vm1233_vm2, %v1959_v12 }
 0x407   : > { %2176 = vmatprep.mubr.bf16.mxu0 %v8416_v38 }
 0x40e   : > { %4410 = vmatmul.mubr.msk.bf16.gmra.mxu0 %vm1233_vm2, %v1961_v56 }
 0x40f   : > { %2186 = vmatprep.mubr.bf16.mxu0 %v8416_v38 }
 0x416   : > { %4411 = vmatmul.mubr.msk.bf16.gmra.mxu0 %vm1233_vm2, %v1963_v29 }
 0x417   : > { %2196 = vmatprep.mubr.bf16.mxu0 %v8416_v38 }
 0x41e   : > { %4412 = vmatmul.mubr.msk.bf16.gmra.mxu0 %vm1233_vm2, %v1965_v13 }
 0x41f   : > { %3327 = vmatprep.mubr.bf16.mxu0 %v962_v48 }
 0x456   : > { %v1881_v58 = vpop.f32.mrf.mxu0 }
 0x457   : > { %v6396_v61 = vmul.f32 %v4731_v42, %v1881_v58 }
 0x458   : > { %v1883_v0 = vpop.f32.mrf.mxu0 }
 0x459   : > { %8435 = vst [vmem:[#allocation11_spill] sm:$0xff] %v6396_v61  ;;  %v6401_v55 = vmul.f32 %v6398_v27, %v1883_v0 }
 0x45a   : > { %v1885_v43 = vpop.f32.mrf.mxu0 }
 0x45b   : > { %8437 = vst [vmem:[#allocation6_spill] sm:$0xff] %v6401_v55  ;;  %v6403_v59 = vmul.f32 %v4731_v42, %v1885_v43 }
 0x45c   : > { %v6405_v1 = vpop.f32.mrf.mxu0 }
 0x45d   : > { %8438 = vst [vmem:[#allocation10_spill] sm:$0xff] %v6403_v59  ;;  %8439 = vst [vmem:[#allocation8_spill] sm:$0xff] %v6405_v1 }
 0x45e   : > { %v1891_v46 = vpop.f32.mrf.mxu0 }
 0x45f   : > { %v6407_v60 = vmul.f32 %v4731_v42, %v1891_v46 }
 0x460   : > { %v1893_v19 = vpop.f32.mrf.mxu0 }
 0x461   : > { %8440 = vst [vmem:[#allocation19_spill] sm:$0xff] %v6407_v60  ;;  %v6410_v8 = vmul.f32 %v6398_v27, %v1893_v19 }
 0x462   : > { %v1895_v51 = vpop.f32.mrf.mxu0 }
 0x463   : > { %8441 = vst [vmem:[#allocation21_spill] sm:$0xff] %v6410_v8  ;;  %v6412_v23 = vmul.f32 %v4731_v42, %v1895_v51 }
 0x464   : > { %v6414_v49 = vpop.f32.mrf.mxu0 }
 0x465   : > { %8442 = vst [vmem:[#allocation49_spill] sm:$0xff] %v6412_v23  ;;  %8443 = vst [vmem:[#allocation50_spill] sm:$0xff] %v6414_v49 }
 0x466   : > { %v6416_v57 = vpop.f32.mrf.mxu0 }
 0x468   : > { %v6418_v25 = vpop.f32.mrf.mxu0 }
 0x46a   : > { %v6420_v34 = vpop.f32.mrf.mxu0 }
 0x46c   : > { %v6422_v20 = vpop.f32.mrf.mxu0 }
 0x46e   : > { %v6424_v44 = vpop.f32.mrf.mxu0 }
 0x46f   : > { %v2207_v10 = vmax.f32 %v6416_v57, %v6424_v44 }
 0x470   : > { %v6426_v2 = vpop.f32.mrf.mxu0 }
 0x472   : > { %v6428_v6 = vpop.f32.mrf.mxu0 }
 0x473   : > { %v2208_v14 = vmax.f32 %v6420_v34, %v6428_v6 }
 0x474   : > { %v6430_v39 = vpop.f32.mrf.mxu0 }
 0x475   : > { %8444 = vst [vmem:[#allocation51_spill] sm:$0xff] %v6430_v39 }
 0x476   : > { %v6432_v12 = vpop.f32.mrf.mxu0 }
 0x477   : > { %v2209_v28 = vmax.f32 %v2207_v10, %v6432_v12 }
 0x478   : > { %v6434_v56 = vpop.f32.mrf.mxu0 }
 0x47a   : > { %v6436_v29 = vpop.f32.mrf.mxu0 }
 0x47b   : > { %v2210_v63 = vmax.f32 %v2208_v14, %v6436_v29 }
 0x47c   : > { %v6438_v13 = vpop.f32.mrf.mxu0 }
 0x47d   : > { %8445 = vst [vmem:[#allocation52_spill] sm:$0xff] %v6438_v13 }
 0x47e   : > { %v6440_v17 = vpop.f32.mrf.mxu0 }
 0x47f   : > { %v2211_v38 = vmax.f32 %v2209_v28, %v6440_v17 }
 0x480   : > { %v6442_v53 = vpop.f32.mrf.mxu0 }
 0x482   : > { %v6444_v48 = vpop.f32.mrf.mxu0 }
 0x483   : > { %v2212_v5 = vmax.f32 %v2210_v63, %v6444_v48 }
 0x484   : > { %v6446_v21 = vpop.f32.mrf.mxu0 }
 0x485   : > { %8446 = vst [vmem:[#allocation53_spill] sm:$0xff] %v6446_v21 }
 0x486   : > { %v6448_v26 = vpop.f32.mrf.mxu0 }
 0x487   : > { %8447 = vst [vmem:[#allocation54_spill] sm:$0xff] %v6448_v26  ;;  %v2213_v47 = vmax.f32 %v2211_v38, %v6448_v26 }
 0x488   : > { %v6450_v15 = vpop.f32.mrf.mxu0 }
 0x489   : > { %8448 = vst [vmem:[#allocation55_spill] sm:$0xff] %v6450_v15 }
 0x48a   : > { %v6452_v54 = vpop.f32.mrf.mxu0 }
 0x48b   : > { %v2214_v4 = vmax.f32 %v2212_v5, %v6452_v54 }
 0x48c   : > { %v6454_v3 = vpop.f32.mrf.mxu0 }
 0x48d   : > { %8449 = vst [vmem:[#allocation56_spill] sm:$0xff] %v6454_v3 }
 0x48e   : > { %v6456_v41 = vpop.f32.mrf.mxu0 }
 0x48f   : > { %8450 = vst [vmem:[#allocation57_spill] sm:$0xff] %v6456_v41  ;;  %v2215_v24 = vmax.f32 %v2213_v47, %v6456_v41 }
 0x490   : > { %v6458_v37 = vpop.f32.mrf.mxu0 }
 0x492   : > { %v6460_v62 = vpop.f32.mrf.mxu0 }
 0x493   : > { %v2216_v10 = vmax.f32 %v2214_v4, %v6460_v62 }
 0x494   : > { %v6462_v18 = vpop.f32.mrf.mxu0 }
 0x496   : > { %v6464_v9 = vpop.f32.mrf.mxu0 }
 0x497   : > { %8451 = vst [vmem:[#allocation58_spill] sm:$0xff] %v6464_v9  ;;  %v2217_v14 = vmax.f32 %v2215_v24, %v6464_v9 }
 0x498   : > { %v6466_v36 = vpop.f32.mrf.mxu0 }
 0x49a   : > { %v6468_v40 = vpop.f32.mrf.mxu0 }
 0x49b   : > { %v2218_v28 = vmax.f32 %v2216_v10, %v6468_v40  ;;  %v2245_v10 = vmax.f32 %v6422_v20, %v6430_v39 }
 0x49c   : > { %v6470_v42 = vpop.f32.mrf.mxu0 }
 0x49e   : > { %v6472_v58 = vpop.f32.mrf.mxu0 }
 0x49f   : > { %v2219_v63 = vmax.f32 %v2217_v14, %v6472_v58 }
 0x4a0   : > { %v6474_v0 = vpop.f32.mrf.mxu0 }
 0x4a2   : > { %v6476_v43 = vpop.f32.mrf.mxu0 }
 0x4a3   : > { %8452 = vst [vmem:[#allocation59_spill] sm:$0xff] %v6476_v43  ;;  %v2220_v38 = vmax.f32 %v2218_v28, %v6476_v43 }
 0x4a4   : > { %v6478_v46 = vpop.f32.mrf.mxu0 }
 0x4a6   : > { %v6480_v19 = vpop.f32.mrf.mxu0 }
 0x4a7   : > { %v2221_v5 = vmax.f32 %v2219_v63, %v6480_v19  ;;  %v2244_v63 = vmax.f32 %v6418_v25, %v6426_v2 }
 0x4a8   : > { %v6482_v51 = vpop.f32.mrf.mxu0 }
 0x4aa   : > { %v6484_v52 = vpop.f32.mrf.mxu0 }
 0x4ab   : > { %v2222_v47 = vmax.f32 %v2220_v38, %v6484_v52  ;;  %v2247_v38 = vmax.f32 %v2245_v10, %v6438_v13 }
 0x4ac   : > { %v6486_v7 = vpop.f32.mrf.mxu0 }
 0x4ad   : > { %v2249_v39 = vmax.f32 %v2247_v38, %v6446_v21 }
 0x4ae   : > { %v6488_v33 = vpop.f32.mrf.mxu0 }
 0x4af   : > { %8453 = vst [vmem:[#allocation60_spill] sm:$0xff] %v6488_v33  ;;  %v2223_v4 = vmax.f32 %v2221_v5, %v6488_v33  ;;  %v2246_v33 = vmax.f32 %v2244_v63, %v6434_v56  ;;  %v2251_v10 = vmax.f32 %v2249_v39, %v6454_v3 }
 0x4b0   : > { %v6490_v45 = vpop.f32.mrf.mxu0 }
 0x4b1   : > { %v2253_v38 = vmax.f32 %v2251_v10, %v6462_v18 }
 0x4b2   : > { %v6492_v61 = vpop.f32.mrf.mxu0 }
 0x4b3   : > { %8454 = vst [vmem:[#allocation61_spill] sm:$0xff] %v6492_v61  ;;  %v2224_v24 = vmax.f32 %v2222_v47, %v6492_v61  ;;  %v2255_v39 = vmax.f32 %v2253_v38, %v6470_v42 }
 0x4b4   : > { %v6494_v55 = vpop.f32.mrf.mxu0 }
 0x4b6   : > { %v6496_v59 = vpop.f32.mrf.mxu0 }
 0x4b7   : > { %8455 = vst [vmem:[#allocation62_spill] sm:$0xff] %v6496_v59  ;;  %v2225_v14 = vmax.f32 %v2223_v4, %v6496_v59  ;;  %v2248_v59 = vmax.f32 %v2246_v33, %v6442_v53 }
 0x4b8   : > { %v6498_v60 = vpop.f32.mrf.mxu0 }
 0x4b9   : > { %v2250_v63 = vmax.f32 %v2248_v59, %v6450_v15  ;;  %v2257_v59 = vmax.f32 %v2255_v39, %v6478_v46 }
 0x4ba   : > { %v6500_v8 = vpop.f32.mrf.mxu0 }
 0x4bb   : > { %8456 = vst [vmem:[#allocation63_spill] sm:$0xff] %v6500_v8  ;;  %v2226_v28 = vmax.f32 %v2224_v24, %v6500_v8  ;;  %v2252_v33 = vmax.f32 %v2250_v63, %v6458_v37 }
 0x4bc   : > { %v6502_v1 = vpop.f32.mrf.mxu0 }
 0x4bd   : > { %v2254_v3 = vmax.f32 %v2252_v33, %v6466_v36 }
 0x4be   : > { %v6504_v23 = vpop.f32.mrf.mxu0 }
 0x4bf   : > { %v2227_v5 = vmax.f32 %v2225_v14, %v6504_v23  ;;  %v2256_v10 = vmax.f32 %v2254_v3, %v6474_v0 }
 0x4c0   : > { %v6506_v27 = vpop.f32.mrf.mxu0 }
 0x4c2   : > { %v6508_v49 = vpop.f32.mrf.mxu0 }
 0x4c3   : > { %v2228_v47 = vmax.f32 %v2226_v28, %v6508_v49 }
 0x4c4   : > { %v6510_v31 = vpop.f32.mrf.mxu0 }
 0x4c6   : > { %v6512_v11 = vpop.f32.mrf.mxu0 }
 0x4c7   : > { %v2229_v4 = vmax.f32 %v2227_v5, %v6512_v11 }
 0x4c8   : > { %v6518_v16 = vpop.f32.mrf.mxu0 }
 0x4ca   : > { %v6522_v22 = vpop.f32.mrf.mxu0 }
 0x4cb   : > { %v2230_v24 = vmax.f32 %v2228_v47, %v6522_v22 }
 0x4cc   : > { %v6526_v30 = vpop.f32.mrf.mxu0 }
 0x4ce   : > { %v6530_v32 = vpop.f32.mrf.mxu0 }
 0x4cf   : > { %v2231_v14 = vmax.f32 %v2229_v4, %v6530_v32 }
 0x4d0   : > { %v6534_v35 = vpop.f32.mrf.mxu0 }
 0x4d2   : > { %v6538_v50 = vpop.f32.mrf.mxu0 }
 0x4d3   : > { %v2232_v28 = vmax.f32 %v2230_v24, %v6538_v50 }
 0x4d4   : > { %v6542_v26 = vpop.f32.mrf.mxu0 }
 0x4d6   : > { %v6546_v41 = vpop.f32.mrf.mxu0 }
 0x4d7   : > { %8457 = vst [vmem:[#allocation64_spill] sm:$0xff] %v6546_v41  ;;  %v2233_v5 = vmax.f32 %v2231_v14, %v6546_v41  ;;  %v2259_v14 = vmax.f32 %v2257_v59, %v6486_v7 }
 0x4d8   : > { %v6550_v9 = vpop.f32.mrf.mxu0 }
 0x4d9   : > { %v2261_v63 = vmax.f32 %v2259_v14, %v6494_v55 }
 0x4da   : > { %v6556_v43 = vpop.f32.mrf.mxu0 }
 0x4db   : > { %8458 = vst [vmem:[#allocation65_spill] sm:$0xff] %v6556_v43  ;;  %v2234_v47 = vmax.f32 %v2232_v28, %v6556_v43  ;;  %v2258_v43 = vmax.f32 %v2256_v10, %v6482_v51 }
 0x4dc   : > { %v6563_v61 = vpop.f32.mrf.mxu0 }
 0x4dd   : > { %v2260_v38 = vmax.f32 %v2258_v43, %v6490_v45 }
 0x4de   : > { %v6569_v8 = vpop.f32.mrf.mxu0 }
 0x4df   : > { %v2235_v4 = vmax.f32 %v2233_v5, %v6569_v8  ;;  %v2263_v5 = vmax.f32 %v2261_v63, %v6502_v1  ;;  %v2262_v33 = vmax.f32 %v2260_v38, %v6498_v60 }
 0x4e0   : > { %v6575_v13 = vpop.f32.mrf.mxu0 }
 0x4e1   : > { %v2265_v39 = vmax.f32 %v2263_v5, %v6510_v31  ;;  %v2264_v3 = vmax.f32 %v2262_v33, %v6506_v27 }
 0x4e2   : > { %v6581_v21 = vpop.f32.mrf.mxu0 }
 0x4e3   : > { %v2236_v24 = vmax.f32 %v2234_v47, %v6581_v21  ;;  %v2266_v10 = vmax.f32 %v2264_v3, %v6518_v16 }
 0x4e5   : > { %v2237_v15 = vmax.f32 %v2235_v4, %v2236_v24  ;;  %v2267_v24 = vmax.f32 %v2265_v39, %v6526_v30  ;;  %v2268_v43 = vmax.f32 %v2266_v10, %v6534_v35 }
 0x4e7   : > { %v2238_v28 = vrot.slane %v2237_v15, 4  ;;  %v2269_v14 = vmax.f32 %v2267_v24, %v6542_v26  ;;  %v2270_v38 = vmax.f32 %v2268_v43, %v6550_v9 }
 0x4e9   : > { %v2239_v41 = vmax.f32 %v2237_v15, %v2238_v28  ;;  %v6601_v15 = vpop.f32.mrf.mxu0  ;;  %v2271_v28 = vmax.f32 %v2269_v14, %v6563_v61  ;;  %v2272_v5 = vmax.f32 %v2270_v38, %v6575_v13 }
 0x4eb   : > { %v2240_v47 = vrot.slane %v2239_v41, 2 }
 0x4ed   : > { %v2241_v4 = vmax.f32 %v2239_v41, %v2240_v47  ;;  %v2273_v41 = vmax.f32 %v2271_v28, %v6601_v15 }
 0x4ef   : > { %v2242_v59 = vrot.slane %v2241_v4, 1  ;;  %v2274_v3 = vmax.f32 %v2272_v5, %v2273_v41 }
 0x4f1   : > { %v6605_v63 = vmax.f32 %v2241_v4, %v2242_v59  ;;  %v2275_v43 = vrot.slane %v2274_v3, 4 }
 0x4f3   : > { %v2281_v47 = vsub.f32 %v6416_v57, %v6605_v63  ;;  %v2283_v33 = vsub.f32 %v6420_v34, %v6605_v63  ;;  %v2285_v39 = vsub.f32 %v6424_v44, %v6605_v63  ;;  %v2287_v4 = vsub.f32 %v6428_v6, %v6605_v63 }
 0x4f4   : > { %v2289_v10 = vsub.f32 %v6432_v12, %v6605_v63  ;;  %v2291_v57 = vsub.f32 %v6436_v29, %v6605_v63  ;;  %v2293_v44 = vsub.f32 %v6440_v17, %v6605_v63  ;;  %v2276_v38 = vmax.f32 %v2274_v3, %v2275_v43  ;;  %v8459_v12 = vld [vmem:[#allocation54_spill] sm:$0xff] }
 0x4f5   : > { %v2345_v24 = vmul.f32 1.442695, %v2281_v47  ;;  %v2349_v59 = vmul.f32 1.442695, %v2283_v33  ;;  %v2353_v14 = vmul.f32 1.442695, %v2285_v39  ;;  %v2295_v6 = vsub.f32 %v6444_v48, %v6605_v63 }
 0x4f6   : > { %v2357_v34 = vmul.f32 1.442695, %v2287_v4  ;;  %v2361_v28 = vmul.f32 1.442695, %v2289_v10  ;;  %v2365_v41 = vmul.f32 1.442695, %v2291_v57  ;;  %v2297_v5 = vsub.f32 %v8459_v12, %v6605_v63 }
 0x4f7   : > { %4734 = vpow2.f32 %v2345_v24  ;;  %v2369_v47 = vmul.f32 1.442695, %v2293_v44  ;;  %v2299_v29 = vsub.f32 %v6452_v54, %v6605_v63  ;;  %v2277_v33 = vrot.slane %v2276_v38, 2  ;;  %v8460_v39 = vld [vmem:[#allocation57_spill] sm:$0xff]  ;;  %v8461_v48 = vld [vmem:[#allocation58_spill] sm:$0xff] }
 0x4f8   : > { %4736 = vpow2.f32 %v2349_v59  ;;  %v2301_v17 = vsub.f32 %v8460_v39, %v6605_v63  ;;  %v2373_v4 = vmul.f32 1.442695, %v2295_v6  ;;  %v2303_v3 = vsub.f32 %v6460_v62, %v6605_v63 }
 0x4f9   : > { %4738 = vpow2.f32 %v2353_v14  ;;  %v2305_v24 = vsub.f32 %v8461_v48, %v6605_v63  ;;  %v2377_v59 = vmul.f32 1.442695, %v2297_v5  ;;  %v2307_v10 = vsub.f32 %v6468_v40, %v6605_v63 }
 0x4fa   : > { %4740 = vpow2.f32 %v2357_v34  ;;  %v2381_v14 = vmul.f32 1.442695, %v2299_v29  ;;  %v2278_v43 = vmax.f32 %v2276_v38, %v2277_v33  ;;  %v2309_v57 = vsub.f32 %v6472_v58, %v6605_v63 }
 0x4fb   : > { %4742 = vpow2.f32 %v2361_v28  ;;  %v2385_v34 = vmul.f32 1.442695, %v2301_v17  ;;  %v2325_v62 = vsub.f32 %v6504_v23, %v6605_v63  ;;  %v2389_v28 = vmul.f32 1.442695, %v2303_v3 }
 0x4fc   : > { %4744 = vpow2.f32 %v2365_v41  ;;  %v2327_v6 = vsub.f32 %v6508_v49, %v6605_v63  ;;  %v2393_v40 = vmul.f32 1.442695, %v2305_v24  ;;  %v2329_v58 = vsub.f32 %v6512_v11, %v6605_v63 }
 0x4fd   : > { %4746 = vpow2.f32 %v2369_v47  ;;  %v2397_v12 = vmul.f32 1.442695, %v2307_v10  ;;  %v2279_v5 = vrot.slane %v2278_v43, 1  ;;  %v2331_v23 = vsub.f32 %v6522_v22, %v6605_v63  ;;  %v8463_v22 = vld [vmem:[#allocation59_spill] sm:$0xff] }
 0x4fe   : > { %4748 = vpow2.f32 %v2373_v4  ;;  %v2401_v47 = vmul.f32 1.442695, %v2309_v57  ;;  %v2333_v33 = vsub.f32 %v6530_v32, %v6605_v63  ;;  %v2433_v39 = vmul.f32 1.442695, %v2325_v62  ;;  %v8464_v62 = vld [vmem:[#allocation60_spill] sm:$0xff] }
 0x4ff   : > { %4750 = vpow2.f32 %v2377_v59  ;;  %v2335_v11 = vsub.f32 %v6538_v50, %v6605_v63  ;;  %v2437_v17 = vmul.f32 1.442695, %v2327_v6  ;;  %v2311_v48 = vsub.f32 %v8463_v22, %v6605_v63 }
 0x500   : > { %4752 = vpow2.f32 %v2381_v14  ;;  %v2441_v24 = vmul.f32 1.442695, %v2329_v58  ;;  %v6668_v59 = vmax.f32 %v2278_v43, %v2279_v5  ;;  %v2313_v32 = vsub.f32 %v6480_v19, %v6605_v63 }
 0x501   : > { %4754 = vpow2.f32 %v2385_v34  ;;  %v2445_v10 = vmul.f32 1.442695, %v2331_v23  ;;  %v2315_v57 = vsub.f32 %v6484_v52, %v6605_v63  ;;  %v2449_v34 = vmul.f32 1.442695, %v2333_v33  ;;  %v8465_v23 = vld [vmem:[#allocation61_spill] sm:$0xff] }
 0x502   : > { %4756 = vpow2.f32 %v2389_v28  ;;  %v2317_v28 = vsub.f32 %v8464_v62, %v6605_v63  ;;  %v2453_v43 = vmul.f32 1.442695, %v2335_v11  ;;  %v2405_v19 = vmul.f32 1.442695, %v2311_v48 }
 0x503   : > { %4758 = vpow2.f32 %v2393_v40  ;;  %v2409_v58 = vmul.f32 1.442695, %v2313_v32 }
 0x504   : > { %v6638_v54 = vpop.eup %4734  ;;  %4760 = vpow2.f32 %v2397_v12  ;;  %v2284_v12 = vsub.f32 %v6422_v20, %v6668_v59  ;;  %v2417_v33 = vmul.f32 1.442695, %v2317_v28 }
 0x505   : > { %v6642_v44 = vpop.eup %4736  ;;  %4762 = vpow2.f32 %v2401_v47  ;;  %v2319_v47 = vsub.f32 %v8465_v23, %v6605_v63 }
 0x506   : > { %8462 = vst [vmem:[#allocation54_spill] sm:$0xff] %v6642_v44  ;;  %v2473_v38 = vadd.f32 %v6642_v44, %v6638_v54  ;;  %v6650_v41 = vpop.eup %4738  ;;  %4764 = vpow2.f32 %v2433_v39 }
 0x507   : > { %v6657_v29 = vpop.eup %4740  ;;  %4766 = vpow2.f32 %v2437_v17  ;;  %v8466_v17 = vld [vmem:[#allocation62_spill] sm:$0xff] }
 0x508   : > { %v2474_v49 = vadd.f32 %v6650_v41, %v2473_v38  ;;  %v6664_v3 = vpop.eup %4742  ;;  %4768 = vpow2.f32 %v2441_v24  ;;  %v2282_v38 = vsub.f32 %v6418_v25, %v6668_v59  ;;  %v2286_v25 = vsub.f32 %v6426_v2, %v6668_v59  ;;  %v8467_v24 = vld [vmem:[#allocation51_spill] sm:$0xff] }
 0x509   : > { %v6673_v14 = vpop.eup %4744  ;;  %4770 = vpow2.f32 %v2445_v10  ;;  %v2288_v32 = vsub.f32 %v8467_v24, %v6668_v59  ;;  %v2351_v10 = vmul.f32 1.442695, %v2284_v12  ;;  %v8468_v2 = vld [vmem:[#allocation63_spill] sm:$0xff] }
 0x50a   : > { %v2475_v4 = vadd.f32 %v6657_v29, %v2474_v49  ;;  %v6680_v40 = vpop.eup %4746  ;;  %v2413_v49 = vmul.f32 1.442695, %v2315_v57  ;;  %4772 = vpow2.f32 %v2449_v34  ;;  %v2347_v20 = vmul.f32 1.442695, %v2282_v38 }
 0x50b   : > { %v6687_v5 = vpop.eup %4748  ;;  %4774 = vpow2.f32 %v2453_v43  ;;  %v2323_v57 = vsub.f32 %v8468_v2, %v6605_v63  ;;  %v2421_v34 = vmul.f32 1.442695, %v2319_v47  ;;  %v2290_v43 = vsub.f32 %v6434_v56, %v6668_v59 }
 0x50c   : > { %v2476_v50 = vadd.f32 %v6664_v3, %v2475_v4  ;;  %v6694_v11 = vpop.eup %4750  ;;  %v2321_v4 = vsub.f32 %v8466_v17, %v6605_v63  ;;  %4776 = vpow2.f32 %v2405_v19  ;;  %v2294_v47 = vsub.f32 %v6442_v53, %v6668_v59 }
 0x50d   : > { %v6698_v22 = vpop.eup %4752  ;;  %4778 = vpow2.f32 %v2409_v58  ;;  %v8469_v58 = vld [vmem:[#allocation52_spill] sm:$0xff]  ;;  %v2429_v56 = vmul.f32 1.442695, %v2323_v57  ;;  %v2363_v24 = vmul.f32 1.442695, %v2290_v43  ;;  %v2306_v53 = vsub.f32 %v6466_v36, %v6668_v59 }
 0x50e   : > { %v2477_v6 = vadd.f32 %v6673_v14, %v2476_v50  ;;  %v6703_v50 = vpop.eup %4754  ;;  %4780 = vpow2.f32 %v2413_v49  ;;  %v2425_v38 = vmul.f32 1.442695, %v2321_v4  ;;  %v2359_v49 = vmul.f32 1.442695, %v2288_v32 }
 0x50f   : > { %v6707_v62 = vpop.eup %4756  ;;  %4782 = vpow2.f32 %v2417_v33  ;;  %v2308_v32 = vsub.f32 %v6470_v42, %v6668_v59  ;;  %v2312_v36 = vsub.f32 %v6478_v46, %v6668_v59 }
 0x510   : > { %v2478_v52 = vadd.f32 %v6680_v40, %v2477_v6  ;;  %v2355_v6 = vmul.f32 1.442695, %v2286_v25  ;;  %v6712_v19 = vpop.eup %4758  ;;  %4784 = vpow2.f32 %v2347_v20  ;;  %v8471_v20 = vld [vmem:[#allocation55_spill] sm:$0xff] }
 0x511   : > { %v6716_v12 = vpop.eup %4760  ;;  %4786 = vpow2.f32 %v2351_v10 }
 0x512   : > { %v2479_v39 = vadd.f32 %v6687_v5, %v2478_v52  ;;  %v2292_v52 = vsub.f32 %v8469_v58, %v6668_v59  ;;  %v6721_v33 = vpop.eup %4762  ;;  %4788 = vpow2.f32 %v2421_v34 }
 0x513   : > { %v6725_v17 = vpop.eup %4764  ;;  %4790 = vpow2.f32 %v2355_v6 }
 0x514   : > { %v2480_v48 = vadd.f32 %v6694_v11, %v2479_v39  ;;  %v8470_v39 = vld [vmem:[#allocation53_spill] sm:$0xff]  ;;  %v6730_v2 = vpop.eup %4766  ;;  %4792 = vpow2.f32 %v2425_v38  ;;  %v2367_v10 = vmul.f32 1.442695, %v2292_v52  ;;  %v2310_v38 = vsub.f32 %v6474_v0, %v6668_v59 }
 0x515   : > { %v2296_v25 = vsub.f32 %v8470_v39, %v6668_v59  ;;  %v6736_v57 = vpop.eup %4768  ;;  %4794 = vpow2.f32 %v2359_v49  ;;  %v2395_v0 = vmul.f32 1.442695, %v2306_v53 }
 0x516   : > { %v2481_v28 = vadd.f32 %v6698_v22, %v2480_v48  ;;  %v2298_v48 = vsub.f32 %v8471_v20, %v6668_v59  ;;  %v6741_v43 = vpop.eup %4770  ;;  %4796 = vpow2.f32 %v2429_v56  ;;  %v8472_v56 = vld [vmem:[#allocation56_spill] sm:$0xff] }
 0x517   : > { %v2375_v42 = vmul.f32 1.442695, %v2296_v25  ;;  %v6747_v58 = vpop.eup %4772  ;;  %4798 = vpow2.f32 %v2363_v24  ;;  %v2300_v39 = vsub.f32 %v8472_v56, %v6668_v59  ;;  %v2399_v25 = vmul.f32 1.442695, %v2308_v32 }
 0x518   : > { %v2482_v23 = vadd.f32 %v6703_v50, %v2481_v28  ;;  %v2371_v28 = vmul.f32 1.442695, %v2294_v47  ;;  %v6752_v49 = vpop.eup %4774  ;;  %4800 = vpow2.f32 %v2367_v10  ;;  %v2302_v24 = vsub.f32 %v6458_v37, %v6668_v59 }
 0x519   : > { %v2304_v10 = vsub.f32 %v6462_v18, %v6668_v59  ;;  %v2383_v47 = vmul.f32 1.442695, %v2300_v39  ;;  %v8478_v39 = vld [vmem:[#allocation65_spill] sm:$0xff] }
 0x51a   : > { %v2483_v4 = vadd.f32 %v6707_v62, %v2482_v23  ;;  %v2379_v23 = vmul.f32 1.442695, %v2298_v48  ;;  %4802 = vpow2.f32 %v2371_v28  ;;  %v2407_v28 = vmul.f32 1.442695, %v2312_v36 }
 0x51b   : > { %4804 = vpow2.f32 %v2375_v42  ;;  %v2391_v36 = vmul.f32 1.442695, %v2304_v10 }
 0x51c   : > { %v2484_v34 = vadd.f32 %v6712_v19, %v2483_v4  ;;  %v6756_v4 = vpop.eup %4776  ;;  %4806 = vpow2.f32 %v2379_v23 }
 0x51d   : > { %v6761_v48 = vpop.eup %4778  ;;  %4808 = vpow2.f32 %v2395_v0 }
 0x51e   : > { %v2485_v52 = vadd.f32 %v6716_v12, %v2484_v34  ;;  %8473 = vst [vmem:[#allocation57_spill] sm:$0xff] %v6761_v48  ;;  %v2403_v34 = vmul.f32 1.442695, %v2310_v38  ;;  %v6765_v6 = vpop.eup %4780  ;;  %4810 = vpow2.f32 %v2399_v25  ;;  %v8476_v38 = vld [vmem:[#allocation64_spill] sm:$0xff]  ;;  %v2339_v25 = vsub.f32 %v8478_v39, %v6605_v63 }
 0x51f   : > { %8474 = vst [vmem:[#allocation58_spill] sm:$0xff] %v6765_v6  ;;  %v6770_v32 = vpop.eup %4782  ;;  %v2337_v42 = vsub.f32 %v8476_v38, %v6605_v63  ;;  %v2334_v38 = vsub.f32 %v6534_v35, %v6668_v59 }
 0x520   : > { %v2486_v46 = vadd.f32 %v6721_v33, %v2485_v52  ;;  %8475 = vst [vmem:[#allocation59_spill] sm:$0xff] %v6770_v32  ;;  %v6772_v52 = vpop.eup %4784  ;;  %4812 = vpow2.f32 %v2403_v34 }
 0x521   : > { %v6775_v37 = vpop.eup %4786  ;;  %4814 = vpow2.f32 %v2407_v28  ;;  %v2457_v28 = vmul.f32 1.442695, %v2337_v42  ;;  %v2343_v42 = vsub.f32 %v6581_v21, %v6605_v63 }
 0x522   : > { %v2487_v53 = vadd.f32 %v6756_v4, %v2486_v46  ;;  %v2387_v46 = vmul.f32 1.442695, %v2302_v24  ;;  %v6779_v20 = vpop.eup %4788  ;;  %v2510_v23 = vadd.f32 %v6775_v37, %v6772_v52  ;;  %v2341_v24 = vsub.f32 %v6569_v8, %v6605_v63 }
 0x523   : > { %8477 = vst [vmem:[#allocation60_spill] sm:$0xff] %v6779_v20  ;;  %v6784_v0 = vpop.eup %4790  ;;  %4816 = vpow2.f32 %v2383_v47  ;;  %v2316_v63 = vsub.f32 %v6486_v7, %v6668_v59 }
 0x524   : > { %v2488_v56 = vadd.f32 %v6761_v48, %v2487_v53  ;;  %v6788_v53 = vpop.eup %4792  ;;  %4818 = vpow2.f32 %v2387_v46  ;;  %v2336_v48 = vsub.f32 %v6542_v26, %v6668_v59  ;;  %v2465_v35 = vmul.f32 1.442695, %v2341_v24 }
 0x525   : > { %v6794_v10 = vpop.eup %4794  ;;  %4820 = vpow2.f32 %v2391_v36  ;;  %v2314_v26 = vsub.f32 %v6482_v51, %v6668_v59  ;;  %v2451_v36 = vmul.f32 1.442695, %v2334_v38 }
 0x526   : > { %v2489_v18 = vadd.f32 %v6765_v6, %v2488_v56  ;;  %v2511_v56 = vadd.f32 %v6784_v0, %v2510_v23  ;;  %v6798_v6 = vpop.eup %4796  ;;  %4822 = vpow2.f32 %v2457_v28  ;;  %v2318_v28 = vsub.f32 %v6490_v45, %v6668_v59 }
 0x527   : > { %8479 = vst [vmem:[#allocation61_spill] sm:$0xff] %v6798_v6  ;;  %v6804_v47 = vpop.eup %4798 }
 0x528   : > { %v2490_v34 = vadd.f32 %v6770_v32, %v2489_v18  ;;  %v2512_v8 = vadd.f32 %v6794_v10, %v2511_v56  ;;  %v2461_v18 = vmul.f32 1.442695, %v2339_v25  ;;  %v6806_v23 = vpop.eup %4800 }
 0x52a   : > { %v2491_v39 = vadd.f32 %v6779_v20, %v2490_v34  ;;  %v2513_v32 = vadd.f32 %v6804_v47, %v2512_v8  ;;  %v6812_v34 = vpop.eup %4802  ;;  %v2455_v20 = vmul.f32 1.442695, %v2336_v48  ;;  %4824 = vpow2.f32 %v2461_v18 }
 0x52b   : > { %v6816_v56 = vpop.eup %4804  ;;  %4826 = vpow2.f32 %v2465_v35  ;;  %v2411_v18 = vmul.f32 1.442695, %v2314_v26  ;;  %v2415_v35 = vmul.f32 1.442695, %v2316_v63  ;;  %v2419_v26 = vmul.f32 1.442695, %v2318_v28 }
 0x52c   : > { %v2492_v46 = vadd.f32 %v6788_v53, %v2491_v39  ;;  %v2514_v44 = vadd.f32 %v6806_v23, %v2513_v32  ;;  %v6820_v21 = vpop.eup %4806  ;;  %v2469_v39 = vmul.f32 1.442695, %v2343_v42  ;;  %4828 = vpow2.f32 %v2451_v36 }
 0x52d   : > { %v4809_v24 = vpop.eup %4808  ;;  %4830 = vpow2.f32 %v2455_v20  ;;  %v2320_v42 = vsub.f32 %v6494_v55, %v6668_v59  ;;  %v2322_v20 = vsub.f32 %v6498_v60, %v6668_v59 }
 0x52e   : > { %v2493_v25 = vadd.f32 %v6798_v6, %v2492_v46  ;;  %v2515_v38 = vadd.f32 %v6812_v34, %v2514_v44  ;;  %v4811_v8 = vpop.eup %4810  ;;  %4832 = vpow2.f32 %v2469_v39  ;;  %v2326_v6 = vsub.f32 %v6506_v27, %v6668_v59 }
 0x52f   : > { %v6828_v48 = vpop.eup %4812  ;;  %4834 = vpow2.f32 %v2411_v18  ;;  %v2560_v39 = vpack.c.bf16 %v4811_v8, %v4809_v24  ;;  %v2423_v28 = vmul.f32 1.442695, %v2320_v42  ;;  %v2344_v18 = vsub.f32 %v6601_v15, %v6668_v59 }
 0x530   : > { %v2494_v51 = vadd.f32 %v6725_v17, %v2493_v25  ;;  %v2516_v7 = vadd.f32 %v6816_v56, %v2515_v38  ;;  %v6832_v46 = vpop.eup %4814  ;;  %4836 = vpow2.f32 %v2415_v35  ;;  %v2328_v42 = vsub.f32 %v6510_v31, %v6668_v59 }
 0x531   : > { %v2562_v36 = vpack.c.bf16 %v6832_v46, %v6828_v48  ;;  %v4817_v25 = vpop.eup %4816  ;;  %4838 = vpow2.f32 %v2419_v26  ;;  %v2338_v15 = vsub.f32 %v6550_v9, %v6668_v59  ;;  %v2340_v31 = vsub.f32 %v6563_v61, %v6668_v59 }
 0x532   : > { %v2495_v32 = vadd.f32 %v6730_v2, %v2494_v51  ;;  %v2517_v45 = vadd.f32 %v6820_v21, %v2516_v7  ;;  %v2561_v51 = vpack.c.bf16 %v6756_v4, %v6721_v33  ;;  %v4819_v38 = vpop.eup %4818  ;;  %v2324_v7 = vsub.f32 %v6502_v1, %v6668_v59 }
 0x533   : > { %2579 = vmatprep.subr.bf16.mxu1 %v2562_v36  ;;  %v2342_v4 = vsub.f32 %v6575_v13, %v6668_v59  ;;  %v2559_v1 = vpack.c.bf16 %v6716_v12, %v6712_v19  ;;  %v2330_v13 = vsub.f32 %v6518_v16, %v6668_v59  ;;  %4840 = vpow2.f32 %v2423_v28 }
 0x534   : > { %v2496_v44 = vadd.f32 %v6736_v57, %v2495_v32  ;;  %v2518_v63 = vadd.f32 %v4817_v25, %v2517_v45  ;;  %v4821_v32 = vpop.eup %4820  ;;  %2580 = vmatpush1.bf16.msra.mxu1 %v2561_v51  ;;  %v2431_v35 = vmul.f32 1.442695, %v2324_v7  ;;  %v2435_v12 = vmul.f32 1.442695, %v2326_v6 }
 0x535   : > { %2581 = vmatprep.subr.bf16.mxu1 %v2560_v39  ;;  %v2558_v36 = vpack.c.bf16 %v4821_v32, %v4819_v38  ;;  %v6857_v51 = vpop.eup %4822  ;;  %v2471_v16 = vmul.f32 1.442695, %v2344_v18  ;;  %v2557_v9 = vpack.c.bf16 %v6707_v62, %v6703_v50  ;;  %v2556_v6 = vpack.c.bf16 %v4817_v25, %v6820_v21 }
 0x536   : > { %v2497_v55 = vadd.f32 %v6741_v43, %v2496_v44  ;;  %v2519_v33 = vadd.f32 %v4819_v38, %v2518_v63  ;;  %v2427_v44 = vmul.f32 1.442695, %v2322_v20  ;;  %v2332_v7 = vsub.f32 %v6526_v30, %v6668_v59 }
 0x537   : > { %v6865_v20 = vpop.eup %4824  ;;  %v2439_v61 = vmul.f32 1.442695, %v2328_v42  ;;  %v2459_v21 = vmul.f32 1.442695, %v2338_v15  ;;  %v2463_v25 = vmul.f32 1.442695, %v2340_v31  ;;  %v2555_v30 = vpack.c.bf16 %v6698_v22, %v6694_v11 }
 0x538   : > { %v2498_v60 = vadd.f32 %v6747_v58, %v2497_v55  ;;  %v2520_v27 = vadd.f32 %v4821_v32, %v2519_v33  ;;  %2582 = vmatpush1.bf16.msra.mxu1 %v2559_v1  ;;  %v6868_v38 = vpop.eup %4826  ;;  %v2467_v55 = vmul.f32 1.442695, %v2342_v4  ;;  %4842 = vpow2.f32 %v2427_v44 }
 0x539   : > { %2583 = vmatprep.subr.bf16.mxu1 %v2558_v36  ;;  %v6874_v63 = vpop.eup %4828  ;;  %4844 = vpow2.f32 %v2431_v35  ;;  %v2554_v4 = vpack.c.bf16 %v6816_v56, %v6812_v34  ;;  %v2447_v18 = vmul.f32 1.442695, %v2332_v7  ;;  %v2553_v11 = vpack.c.bf16 %v6687_v5, %v6680_v40 }
 0x53a   : > { %v2499_v45 = vadd.f32 %v6752_v49, %v2498_v60  ;;  %v2521_v26 = vadd.f32 %v4809_v24, %v2520_v27  ;;  %v6878_v24 = vpop.eup %4830  ;;  %v2443_v60 = vmul.f32 1.442695, %v2330_v13  ;;  %4846 = vpow2.f32 %v2435_v12 }
 0x53b   : > { %v2574_v62 = vpack.c.bf16 %v6878_v24, %v6874_v63  ;;  %4848 = vpow2.f32 %v2467_v55  ;;  %v2552_v34 = vpack.c.bf16 %v6806_v23, %v6804_v47  ;;  %v2551_v27 = vpack.c.bf16 %v6673_v14, %v6664_v3 }
 0x53c   : > { %v2500_v19 = vadd.f32 %v6857_v51, %v2499_v45  ;;  %v2522_v32 = vadd.f32 %v4811_v8, %v2521_v26  ;;  %2584 = vmatpush1.bf16.msra.mxu1 %v2557_v9  ;;  %v4833_v8 = vpop.eup %4832  ;;  %4850 = vpow2.f32 %v2471_v16  ;;  %v2550_v42 = vpack.c.bf16 %v6794_v10, %v6784_v0  ;;  %v8480_v10 = vld [vmem:[#allocation54_spill] sm:$0xff] }
 0x53d   : > { %2585 = vmatprep.subr.bf16.mxu1 %v2556_v6  ;;  %4852 = vpow2.f32 %v2439_v61  ;;  %v2549_v47 = vpack.c.bf16 %v6657_v29, %v6650_v41  ;;  %v2547_v26 = vpack.c.bf16 %v8480_v10, %v6638_v54  ;;  %v2575_v6 = vpack.c.bf16 %v6865_v20, %v6857_v51 }
 0x53e   : > { %v2501_v39 = vadd.f32 %v6865_v20, %v2500_v19  ;;  %v2523_v50 = vadd.f32 %v6828_v48, %v2522_v32  ;;  %v6893_v48 = vpop.eup %4834  ;;  %4854 = vpow2.f32 %v2443_v60  ;;  %v2548_v19 = vpack.c.bf16 %v6775_v37, %v6772_v52 }
 0x53f   : > { %v6896_v1 = vpop.eup %4836  ;;  %4856 = vpow2.f32 %v2459_v21  ;;  %v8482_v51 = vpack.c.bf16 %v6741_v43, %v6736_v57  ;;  %v8486_v21 = vld [vmem:[#allocation60_spill] sm:$0xff]  ;;  %v8487_v43 = vld [vmem:[#allocation57_spill] sm:$0xff] }
 0x540   : > { %v2502_v28 = vadd.f32 %v6868_v38, %v2501_v39  ;;  %v2524_v33 = vadd.f32 %v6832_v46, %v2523_v50  ;;  %2586 = vmatpush1.bf16.msra.mxu1 %v2555_v30  ;;  %4858 = vpow2.f32 %v2463_v25  ;;  %v4839_v56 = vpop.eup %4838  ;;  %v2577_v39 = vpack.c.bf16 %v4833_v8, %v6868_v38  ;;  %v8488_v30 = vld [vmem:[#allocation58_spill] sm:$0xff] }
 0x541   : > { %2587 = vmatprep.subr.bf16.mxu1 %v2554_v4  ;;  %4860 = vpow2.f32 %v2447_v18  ;;  %v4841_v45 = vpop.eup %4840  ;;  %v8481_v38 = vpack.c.bf16 %v6752_v49, %v6747_v58  ;;  %v2564_v57 = vpack.c.bf16 %v6896_v1, %v6893_v48  ;;  %v8492_v18 = vld [vmem:[#allocation17_spill] sm:$0xff] }
 0x542   : > { %v6888_v59 = vadd.f32 %v4833_v8, %v2502_v28  ;;  %v2525_v44 = vadd.f32 %v6893_v48, %v2524_v33  ;;  %v2566_v49 = vpack.c.bf16 %v4841_v45, %v4839_v56  ;;  %v2563_v33 = vpack.c.bf16 %v8488_v30, %v8487_v43  ;;  %v8498_v48 = vld [vmem:[#allocation39_spill] sm:$0xff] }
 0x544   : > { %v2526_v22 = vadd.f32 %v6896_v1, %v2525_v44  ;;  %2588 = vmatpush1.bf16.msra.mxu1 %v2553_v11  ;;  %v8493_v11 = vld [vmem:[#allocation34_spill] sm:$0xff]  ;;  %v8499_v1 = vld [vmem:[#allocation36_spill] sm:$0xff] }
 0x545   : > { %2589 = vmatprep.subr.bf16.mxu1 %v2552_v34  ;;  %v4843_v40 = vpop.eup %4842 }
 0x546   : > { %v2527_v46 = vadd.f32 %v4839_v56, %v2526_v22  ;;  %v4845_v5 = vpop.eup %4844  ;;  %v8494_v22 = vld [vmem:[#allocation35_spill] sm:$0xff]  ;;  %v8495_v56 = vld [vmem:[#allocation13_spill] sm:$0xff] }
 0x547   : > { %v4847_v15 = vpop.eup %4846  ;;  %v2568_v20 = vpack.c.bf16 %v4845_v5, %v4843_v40  ;;  %v1210_v34 = vpack.c.bf16 %v8494_v22, %v8493_v11 }
 0x548   : > { %v2528_v36 = vadd.f32 %v4841_v45, %v2527_v46  ;;  %2590 = vmatpush1.bf16.msra.mxu1 %v2551_v27  ;;  %v4849_v23 = vpop.eup %4848  ;;  %v8496_v46 = vld [vmem:[#allocation12_spill] sm:$0xff]  ;;  %v8500_v27 = vpack.c.bf16 %v8498_v48, %v8499_v1 }
 0x549   : > { %2591 = vmatprep.subr.bf16.mxu1 %v2550_v42  ;;  %v4851_v12 = vpop.eup %4850  ;;  %v8497_v45 = vpack.c.bf16 %v8495_v56, %v8496_v46  ;;  %v8502_v42 = vld [vmem:[#allocation45_spill] sm:$0xff] }
 0x54a   : > { %v2529_v13 = vadd.f32 %v4843_v40, %v2528_v36  ;;  %v4853_v3 = vpop.eup %4852  ;;  %v2578_v16 = vpack.c.bf16 %v4851_v12, %v4849_v23  ;;  %v8501_v36 = vld [vmem:[#allocation46_spill] sm:$0xff] }
 0x54b   : > { %v4855_v0 = vpop.eup %4854  ;;  %v2570_v8 = vpack.c.bf16 %v4853_v3, %v4847_v15  ;;  %v8503_v40 = vpack.c.bf16 %v8501_v36, %v8502_v42 }
 0x54c   : > { %v2530_v35 = vadd.f32 %v4845_v5, %v2529_v13  ;;  %2592 = vmatpush1.bf16.msra.mxu1 %v2549_v47  ;;  %v4857_v31 = vpop.eup %4856  ;;  %v8504_v5 = vld [vmem:[#allocation16_spill] sm:$0xff]  ;;  %v8505_v13 = vld [vmem:[#allocation14_spill] sm:$0xff]  ;;  %v8507_v47 = vmov 0  }
 0x54d   : > { %2593 = vmatprep.subr.bf16.mxu1 %v2548_v19  ;;  %v4859_v9 = vpop.eup %4858 }
 0x54e   : > { %v2531_v14 = vadd.f32 %v4847_v15, %v2530_v35  ;;  %v4861_v29 = vpop.eup %4860  ;;  %v2576_v37 = vpack.c.bf16 %v4859_v9, %v4857_v31  ;;  %v8506_v15 = vpack.c.bf16 %v8504_v5, %v8505_v13  ;;  %v2653_v35 = vpop.permute.xlu0 %2652 }
 0x54f   : > { %v2572_v60 = vpack.c.bf16 %v4861_v29, %v4855_v0 }
 0x550   : > { %v2532_v55 = vadd.f32 %v4853_v3, %v2531_v14  ;;  %2594 = vmatpush1.bf16.msra.mxu1 %v2547_v26 }
 0x551   : > { %2595 = vmatprep.subr.bf16.mxu1 %v2578_v16 }
 0x552   : > { %v2533_v41 = vadd.f32 %v4855_v0, %v2532_v55 }
 0x554   : > { %v2534_v52 = vadd.f32 %v4861_v29, %v2533_v41  ;;  %2596 = vmatpush2.bf16.msra.mxu1 %v2577_v39  ;;  %v8508_v39 = vld [vmem:[#allocation27_spill] sm:$0xff] }
 0x555   : > { %2597 = vmatprep.subr.bf16.mxu1 %v2576_v37 }
 0x556   : > { %v2535_v32 = vadd.f32 %v6874_v63, %v2534_v52  ;;  %v8483_v63 = vpack.c.bf16 %v6730_v2, %v6725_v17  ;;  %v8489_v17 = vld [vmem:[#allocation38_spill] sm:$0xff]  ;;  %v8490_v2 = vld [vmem:[#allocation47_spill] sm:$0xff]  ;;  %v8509_v52 = vld [vmem:[#allocation29_spill] sm:$0xff] }
 0x557   : > { %v1212_v4 = vpack.c.bf16 %v8490_v2, %v8489_v17  ;;  %v966_v37 = vpack.c.bf16 %v8509_v52, %v8508_v39 }
 0x558   : > { %v2536_v54 = vadd.f32 %v6878_v24, %v2535_v32  ;;  %2598 = vmatpush2.bf16.msra.mxu1 %v2575_v6  ;;  %v8484_v24 = vld [vmem:[#allocation61_spill] sm:$0xff]  ;;  %v2504_v6 = vrot.slane %v6888_v59, 4 }
 0x559   : > { %2599 = vmatprep.subr.bf16.mxu1 %v2574_v62  ;;  %v2567_v58 = vpack.c.bf16 %v8484_v24, %v6788_v53  ;;  %v8485_v62 = vld [vmem:[#allocation59_spill] sm:$0xff] }
 0x55a   : > { %v2537_v7 = vadd.f32 %v4857_v31, %v2536_v54  ;;  %v2565_v25 = vpack.c.bf16 %v8486_v21, %v8485_v62  ;;  %v8491_v53 = vld [vmem:[#allocation15_spill] sm:$0xff] }
 0x55b   : > { %v960_v44 = vpack.c.bf16 %v8492_v18, %v8491_v53 }
 0x55c   : > { %v2538_v61 = vadd.f32 %v4859_v9, %v2537_v7  ;;  %2600 = vmatpush2.bf16.msra.mxu1 %v8481_v38  ;;  %v2505_v7 = vadd.f32 %v2504_v6, %v6888_v59 }
 0x55d   : > { %2601 = vmatprep.subr.bf16.mxu1 %v2572_v60 }
 0x55e   : > { %v2539_v28 = vadd.f32 %v4849_v23, %v2538_v61  ;;  %v2651_v23 = vpop.permute.xlu1 %2650  ;;  %v2506_v60 = vrot.slane %v2505_v7, 2 }
 0x560   : > { %v6924_v50 = vadd.f32 %v4851_v12, %v2539_v28  ;;  %2602 = vmatpush2.bf16.msra.mxu1 %v8482_v51  ;;  %v2507_v28 = vadd.f32 %v2506_v60, %v2505_v7 }
 0x561   : > { %2603 = vmatprep.subr.bf16.mxu1 %v2570_v8 }
 0x562   : > { %v2655_v19 = vpop.permute.xlu1 %2654  ;;  %v2541_v54 = vrot.slane %v6924_v50, 4  ;;  %v2508_v51 = vrot.slane %v2507_v28, 1 }
 0x564   : > { %2604 = vmatpush2.bf16.msra.mxu1 %v8483_v63  ;;  %v2542_v61 = vadd.f32 %v2541_v54, %v6924_v50  ;;  %v2509_v63 = vadd.f32 %v2508_v51, %v2507_v28 }
 0x565   : > { %2605 = vmatprep.subr.bf16.mxu1 %v2568_v20 }
 0x566   : > { %v2657_v12 = vpop.permute.xlu1 %2656  ;;  %v2543_v38 = vrot.slane %v2542_v61, 2  ;;  %4862 = vrcp.f32 %v2509_v63 }
 0x568   : > { %2606 = vmatpush2.bf16.msra.mxu1 %v2567_v58  ;;  %v2544_v8 = vadd.f32 %v2543_v38, %v2542_v61 }
 0x569   : > { %2607 = vmatprep.subr.bf16.mxu1 %v2566_v49 }
 0x56a   : > { %v2659_v3 = vpop.permute.xlu1 %2658  ;;  %v2545_v20 = vrot.slane %v2544_v8, 1 }
 0x56c   : > { %2608 = vmatpush2.bf16.msra.mxu1 %v2565_v25  ;;  %v2546_v24 = vadd.f32 %v2545_v20, %v2544_v8 }
 0x56d   : > { %2609 = vmatprep.subr.bf16.mxu1 %v2564_v57 }
 0x56e   : > { %v2661_v14 = vpop.permute.xlu1 %2660  ;;  %4864 = vrcp.f32 %v2546_v24 }
 0x570   : > { %2610 = vmatpush2.bf16.msra.mxu1 %v2563_v33 }
 0x571   : > { %2742 = vmatprep.subr.bf16.mxu1 %v1212_v4 }
 0x572   : > { %v2663_v0 = vpop.permute.xlu1 %2662 }
 0x573   : > { %2612 = vmatmul.mubr.bf16.vlgmr.msra.gmra.mxu1 %v8497_v45  ;;  %v4863_v58 = vpop.eup %4862 }
 0x574   : > { %2621 = vmatprep.mubr.bf16.mxu1 %v960_v44  ;;  %2743 = vmatpush1.bf16.msra.mxu1 %v8500_v27 }
 0x575   : > { %2744 = vmatprep.subr.bf16.mxu1 %v1210_v34 }
 0x576   : > { %v2665_v10 = vpop.permute.xlu1 %2664 }
 0x578   : > { %2745 = vmatpush1.bf16.msra.mxu1 %v8503_v40 }
 0x57a   : > { %v2667_v26 = vpop.permute.xlu1 %2666 }
 0x57b   : > { %2622 = vmatmul.mubr.bf16.gmra.mxu1 %v8506_v15  ;;  %v4865_v21 = vpop.eup %4864 }
 0x57c   : > { %2762 = vmatprep.mubr.bf16.mxu1 %v8507_v47 }
 0x57e   : > { %v2669_v31 = vpop.permute.xlu1 %2668 }
 0x582   : > { %v2671_v55 = vpop.permute.xlu1 %2670 }
 0x583   : > { %4413 = vmatmul.mubr.msk.bf16.vlgmr.msra.gmra.mxu1 %vm1233_vm2, %v2651_v23 }
 0x584   : > { %2772 = vmatprep.mubr.bf16.mxu1 %v8507_v47 }
 0x586   : > { %v2673_v16 = vpop.permute.xlu1 %2672 }
 0x58a   : > { %v2675_v9 = vpop.permute.xlu1 %2674 }
 0x58b   : > { %4414 = vmatmul.mubr.msk.bf16.gmra.mxu1 %vm1233_vm2, %v2653_v35 }
 0x58c   : > { %2782 = vmatprep.mubr.bf16.mxu1 %v8507_v47 }
 0x58e   : > { %v2677_v41 = vpop.permute.xlu1 %2676 }
 0x592   : > { %v2679_v29 = vpop.permute.xlu1 %2678 }
 0x593   : > { %4415 = vmatmul.mubr.msk.bf16.gmra.mxu1 %vm1233_vm2, %v2655_v19 }
 0x594   : > { %2792 = vmatprep.mubr.bf16.mxu1 %v8507_v47 }
 0x596   : > { %v2681_v32 = vpop.permute.xlu1 %2680 }
 0x59b   : > { %4416 = vmatmul.mubr.msk.bf16.gmra.mxu1 %vm1233_vm2, %v2657_v12 }
 0x59c   : > { %2802 = vmatprep.mubr.bf16.mxu1 %v8507_v47 }
 0x5a3   : > { %4417 = vmatmul.mubr.msk.bf16.gmra.mxu1 %vm1233_vm2, %v2659_v3 }
 0x5a4   : > { %2812 = vmatprep.mubr.bf16.mxu1 %v8507_v47 }
 0x5ab   : > { %4418 = vmatmul.mubr.msk.bf16.gmra.mxu1 %vm1233_vm2, %v2661_v14 }
 0x5ac   : > { %2822 = vmatprep.mubr.bf16.mxu1 %v8507_v47 }
 0x5b3   : > { %4419 = vmatmul.mubr.msk.bf16.gmra.mxu1 %vm1233_vm2, %v2663_v0 }
 0x5b4   : > { %2832 = vmatprep.mubr.bf16.mxu1 %v8507_v47 }
 0x5bb   : > { %4420 = vmatmul.mubr.msk.bf16.gmra.mxu1 %vm1233_vm2, %v2665_v10 }
 0x5bc   : > { %2842 = vmatprep.mubr.bf16.mxu1 %v8507_v47 }
 0x5c3   : > { %4421 = vmatmul.mubr.msk.bf16.gmra.mxu1 %vm1233_vm2, %v2667_v26 }
 0x5c4   : > { %2852 = vmatprep.mubr.bf16.mxu1 %v8507_v47 }
 0x5cb   : > { %4422 = vmatmul.mubr.msk.bf16.gmra.mxu1 %vm1233_vm2, %v2669_v31 }
 0x5cc   : > { %2862 = vmatprep.mubr.bf16.mxu1 %v8507_v47 }
 0x5d3   : > { %4423 = vmatmul.mubr.msk.bf16.gmra.mxu1 %vm1233_vm2, %v2671_v55 }
 0x5d4   : > { %2872 = vmatprep.mubr.bf16.mxu1 %v8507_v47 }
 0x5db   : > { %4424 = vmatmul.mubr.msk.bf16.gmra.mxu1 %vm1233_vm2, %v2673_v16 }
 0x5dc   : > { %2882 = vmatprep.mubr.bf16.mxu1 %v8507_v47 }
 0x5e3   : > { %4425 = vmatmul.mubr.msk.bf16.gmra.mxu1 %vm1233_vm2, %v2675_v9 }
 0x5e4   : > { %2892 = vmatprep.mubr.bf16.mxu1 %v8507_v47 }
 0x5eb   : > { %4426 = vmatmul.mubr.msk.bf16.gmra.mxu1 %vm1233_vm2, %v2677_v41 }
 0x5ec   : > { %2902 = vmatprep.mubr.bf16.mxu1 %v8507_v47 }
 0x5f3   : > { %4427 = vmatmul.mubr.msk.bf16.gmra.mxu1 %vm1233_vm2, %v2679_v29 }
 0x5f4   : > { %2912 = vmatprep.mubr.bf16.mxu1 %v8507_v47 }
 0x5fb   : > { %4428 = vmatmul.mubr.msk.bf16.gmra.mxu1 %vm1233_vm2, %v2681_v32 }
 0x5fc   : > { %4043 = vmatprep.mubr.bf16.mxu1 %v966_v37 }
 0x633   : > { %v2613_v49 = vpop.f32.mrf.mxu1 }
 0x634   : > { %v6996_v62 = vmul.f32 %v4863_v58, %v2613_v49 }
 0x635   : > { %v2615_v25 = vpop.f32.mrf.mxu1 }
 0x636   : > { %8510 = vst [vmem:[#allocation62_spill] sm:$0xff] %v6996_v62  ;;  %v6998_v57 = vmul.f32 %v4865_v21, %v2615_v25 }
 0x637   : > { %v2617_v59 = vpop.f32.mrf.mxu1 }
 0x638   : > { %8511 = vst [vmem:[#allocation51_spill] sm:$0xff] %v6998_v57  ;;  %v7000_v50 = vmul.f32 %v4863_v58, %v2617_v59 }
 0x639   : > { %v2619_v43 = vpop.f32.mrf.mxu1 }
 0x63a   : > { %8512 = vst [vmem:[#allocation63_spill] sm:$0xff] %v7000_v50  ;;  %v7002_v30 = vmul.f32 %v4865_v21, %v2619_v43 }
 0x63b   : > { %v2623_v33 = vpop.f32.mrf.mxu1 }
 0x63c   : > { %8513 = vst [vmem:[#allocation52_spill] sm:$0xff] %v7002_v30  ;;  %v7004_v17 = vmul.f32 %v4863_v58, %v2623_v33 }
 0x63d   : > { %v2625_v2 = vpop.f32.mrf.mxu1 }
 0x63e   : > { %8514 = vst [vmem:[#allocation53_spill] sm:$0xff] %v7004_v17  ;;  %v7006_v4 = vmul.f32 %v4865_v21, %v2625_v2 }
 0x63f   : > { %v2627_v53 = vpop.f32.mrf.mxu1 }
 0x640   : > { %8515 = vst [vmem:[#allocation55_spill] sm:$0xff] %v7006_v4  ;;  %v7008_v18 = vmul.f32 %v4863_v58, %v2627_v53 }
 0x641   : > { %v2629_v44 = vpop.f32.mrf.mxu1 }
 0x642   : > { %8516 = vst [vmem:[#allocation56_spill] sm:$0xff] %v7008_v18  ;;  %v7010_v11 = vmul.f32 %v4865_v21, %v2629_v44 }
 0x643   : > { %v7012_v22 = vpop.f32.mrf.mxu1 }
 0x644   : > { %8517 = vst [vmem:[#allocation64_spill] sm:$0xff] %v7010_v11 }
 0x645   : > { %v7014_v34 = vpop.f32.mrf.mxu1 }
 0x647   : > { %v7016_v56 = vpop.f32.mrf.mxu1 }
 0x649   : > { %v7018_v46 = vpop.f32.mrf.mxu1 }
 0x64b   : > { %v7020_v45 = vpop.f32.mrf.mxu1 }
 0x64c   : > { %v2923_v59 = vmax.f32 %v7012_v22, %v7020_v45 }
 0x64d   : > { %v7022_v48 = vpop.f32.mrf.mxu1 }
 0x64f   : > { %v7024_v1 = vpop.f32.mrf.mxu1 }
 0x650   : > { %v2924_v43 = vmax.f32 %v7016_v56, %v7024_v1 }
 0x651   : > { %v7026_v27 = vpop.f32.mrf.mxu1 }
 0x652   : > { %8518 = vst [vmem:[#allocation65_spill] sm:$0xff] %v7026_v27 }
 0x653   : > { %v7028_v36 = vpop.f32.mrf.mxu1 }
 0x654   : > { %v2925_v2 = vmax.f32 %v2923_v59, %v7028_v36 }
 0x655   : > { %v7030_v42 = vpop.f32.mrf.mxu1 }
 0x657   : > { %v7032_v40 = vpop.f32.mrf.mxu1 }
 0x658   : > { %v2926_v53 = vmax.f32 %v2924_v43, %v7032_v40 }
 0x659   : > { %v7034_v5 = vpop.f32.mrf.mxu1 }
 0x65a   : > { %8519 = vst [vmem:[#allocation54_spill] sm:$0xff] %v7034_v5 }
 0x65b   : > { %v7036_v13 = vpop.f32.mrf.mxu1 }
 0x65c   : > { %v2927_v62 = vmax.f32 %v2925_v2, %v7036_v13 }
 0x65d   : > { %v7038_v15 = vpop.f32.mrf.mxu1 }
 0x65f   : > { %v7040_v23 = vpop.f32.mrf.mxu1 }
 0x660   : > { %v2928_v57 = vmax.f32 %v2926_v53, %v7040_v23 }
 0x661   : > { %v7042_v35 = vpop.f32.mrf.mxu1 }
 0x662   : > { %8520 = vst [vmem:[#allocation61_spill] sm:$0xff] %v7042_v35 }
 0x663   : > { %v7044_v19 = vpop.f32.mrf.mxu1 }
 0x664   : > { %8521 = vst [vmem:[#allocation59_spill] sm:$0xff] %v7044_v19  ;;  %v2929_v30 = vmax.f32 %v2927_v62, %v7044_v19 }
 0x665   : > { %v7046_v12 = vpop.f32.mrf.mxu1 }
 0x666   : > { %8522 = vst [vmem:[#allocation60_spill] sm:$0xff] %v7046_v12 }
 0x667   : > { %v7048_v3 = vpop.f32.mrf.mxu1 }
 0x668   : > { %v2930_v17 = vmax.f32 %v2928_v57, %v7048_v3 }
 0x669   : > { %v7050_v14 = vpop.f32.mrf.mxu1 }
 0x66a   : > { %8523 = vst [vmem:[#allocation57_spill] sm:$0xff] %v7050_v14 }
 0x66b   : > { %v7052_v0 = vpop.f32.mrf.mxu1 }
 0x66c   : > { %8524 = vst [vmem:[#allocation58_spill] sm:$0xff] %v7052_v0  ;;  %v2931_v18 = vmax.f32 %v2929_v30, %v7052_v0 }
 0x66d   : > { %v7054_v10 = vpop.f32.mrf.mxu1 }
 0x66f   : > { %v7056_v26 = vpop.f32.mrf.mxu1 }
 0x670   : > { %v2932_v59 = vmax.f32 %v2930_v17, %v7056_v26 }
 0x671   : > { %v7058_v31 = vpop.f32.mrf.mxu1 }
 0x673   : > { %v7060_v55 = vpop.f32.mrf.mxu1 }
 0x674   : > { %8525 = vst [vmem:[#allocation38_spill] sm:$0xff] %v7060_v55  ;;  %v2933_v43 = vmax.f32 %v2931_v18, %v7060_v55 }
 0x675   : > { %v7062_v16 = vpop.f32.mrf.mxu1 }
 0x677   : > { %v7064_v9 = vpop.f32.mrf.mxu1 }
 0x678   : > { %v2934_v2 = vmax.f32 %v2932_v59, %v7064_v9  ;;  %v2961_v59 = vmax.f32 %v7018_v46, %v7026_v27 }
 0x679   : > { %v7066_v41 = vpop.f32.mrf.mxu1 }
 0x67b   : > { %v7068_v29 = vpop.f32.mrf.mxu1 }
 0x67c   : > { %v2935_v53 = vmax.f32 %v2933_v43, %v7068_v29 }
 0x67d   : > { %v7070_v39 = vpop.f32.mrf.mxu1 }
 0x67f   : > { %v7072_v52 = vpop.f32.mrf.mxu1 }
 0x680   : > { %8526 = vst [vmem:[#allocation47_spill] sm:$0xff] %v7072_v52  ;;  %v2936_v62 = vmax.f32 %v2934_v2, %v7072_v52 }
 0x681   : > { %v7074_v37 = vpop.f32.mrf.mxu1 }
 0x683   : > { %v7076_v32 = vpop.f32.mrf.mxu1 }
 0x684   : > { %v2937_v57 = vmax.f32 %v2935_v53, %v7076_v32  ;;  %v2960_v53 = vmax.f32 %v7014_v34, %v7022_v48 }
 0x685   : > { %v7078_v6 = vpop.f32.mrf.mxu1 }
 0x687   : > { %v7080_v54 = vpop.f32.mrf.mxu1 }
 0x688   : > { %v2938_v30 = vmax.f32 %v2936_v62, %v7080_v54  ;;  %v2963_v62 = vmax.f32 %v2961_v59, %v7034_v5 }
 0x689   : > { %v7082_v7 = vpop.f32.mrf.mxu1 }
 0x68a   : > { %v2965_v27 = vmax.f32 %v2963_v62, %v7042_v35 }
 0x68b   : > { %v7084_v61 = vpop.f32.mrf.mxu1 }
 0x68c   : > { %8527 = vst [vmem:[#allocation15_spill] sm:$0xff] %v7084_v61  ;;  %v2939_v17 = vmax.f32 %v2937_v57, %v7084_v61  ;;  %v2962_v61 = vmax.f32 %v2960_v53, %v7030_v42  ;;  %v2967_v59 = vmax.f32 %v2965_v27, %v7050_v14 }
 0x68d   : > { %v7086_v60 = vpop.f32.mrf.mxu1 }
 0x68e   : > { %v2969_v62 = vmax.f32 %v2967_v59, %v7058_v31 }
 0x68f   : > { %v7088_v38 = vpop.f32.mrf.mxu1 }
 0x690   : > { %8528 = vst [vmem:[#allocation17_spill] sm:$0xff] %v7088_v38  ;;  %v2940_v18 = vmax.f32 %v2938_v30, %v7088_v38  ;;  %v2971_v27 = vmax.f32 %v2969_v62, %v7066_v41 }
 0x691   : > { %v7090_v28 = vpop.f32.mrf.mxu1 }
 0x693   : > { %v7092_v8 = vpop.f32.mrf.mxu1 }
 0x694   : > { %8529 = vst [vmem:[#allocation34_spill] sm:$0xff] %v7092_v8  ;;  %v2941_v43 = vmax.f32 %v2939_v17, %v7092_v8  ;;  %v2964_v8 = vmax.f32 %v2962_v61, %v7038_v15 }
 0x695   : > { %v7094_v51 = vpop.f32.mrf.mxu1 }
 0x696   : > { %v2966_v53 = vmax.f32 %v2964_v8, %v7046_v12  ;;  %v2973_v8 = vmax.f32 %v2971_v27, %v7074_v37 }
 0x697   : > { %v7096_v20 = vpop.f32.mrf.mxu1 }
 0x698   : > { %8530 = vst [vmem:[#allocation35_spill] sm:$0xff] %v7096_v20  ;;  %v2942_v2 = vmax.f32 %v2940_v18, %v7096_v20  ;;  %v2968_v61 = vmax.f32 %v2966_v53, %v7054_v10 }
 0x699   : > { %v7098_v63 = vpop.f32.mrf.mxu1 }
 0x69a   : > { %v2970_v14 = vmax.f32 %v2968_v61, %v7062_v16 }
 0x69b   : > { %v7100_v24 = vpop.f32.mrf.mxu1 }
 0x69c   : > { %v2943_v57 = vmax.f32 %v2941_v43, %v7100_v24  ;;  %v2972_v59 = vmax.f32 %v2970_v14, %v7070_v39 }
 0x69d   : > { %v7102_v58 = vpop.f32.mrf.mxu1 }
 0x69f   : > { %v7104_v49 = vpop.f32.mrf.mxu1 }
 0x6a0   : > { %v2944_v30 = vmax.f32 %v2942_v2, %v7104_v49 }
 0x6a1   : > { %v7106_v21 = vpop.f32.mrf.mxu1 }
 0x6a3   : > { %v7108_v25 = vpop.f32.mrf.mxu1 }
 0x6a4   : > { %v2945_v17 = vmax.f32 %v2943_v57, %v7108_v25 }
 0x6a5   : > { %v7114_v33 = vpop.f32.mrf.mxu1 }
 0x6a7   : > { %v7118_v44 = vpop.f32.mrf.mxu1 }
 0x6a8   : > { %v2946_v18 = vmax.f32 %v2944_v30, %v7118_v44 }
 0x6a9   : > { %v7122_v50 = vpop.f32.mrf.mxu1 }
 0x6ab   : > { %v7126_v4 = vpop.f32.mrf.mxu1 }
 0x6ac   : > { %v2947_v43 = vmax.f32 %v2945_v17, %v7126_v4 }
 0x6ad   : > { %v7130_v11 = vpop.f32.mrf.mxu1 }
 0x6af   : > { %v7134_v47 = vpop.f32.mrf.mxu1 }
 0x6b0   : > { %v2948_v2 = vmax.f32 %v2946_v18, %v7134_v47 }
 0x6b1   : > { %v7138_v19 = vpop.f32.mrf.mxu1 }
 0x6b3   : > { %v7142_v0 = vpop.f32.mrf.mxu1 }
 0x6b4   : > { %8531 = vst [vmem:[#allocation13_spill] sm:$0xff] %v7142_v0  ;;  %v2949_v57 = vmax.f32 %v2947_v43, %v7142_v0  ;;  %v2975_v43 = vmax.f32 %v2973_v8, %v7082_v7 }
 0x6b5   : > { %v7146_v55 = vpop.f32.mrf.mxu1 }
 0x6b6   : > { %v2977_v53 = vmax.f32 %v2975_v43, %v7090_v28 }
 0x6b7   : > { %v7152_v52 = vpop.f32.mrf.mxu1 }
 0x6b8   : > { %8532 = vst [vmem:[#allocation12_spill] sm:$0xff] %v7152_v52  ;;  %v2950_v30 = vmax.f32 %v2948_v2, %v7152_v52  ;;  %v2974_v52 = vmax.f32 %v2972_v59, %v7078_v6 }
 0x6b9   : > { %v7159_v38 = vpop.f32.mrf.mxu1 }
 0x6ba   : > { %v2976_v62 = vmax.f32 %v2974_v52, %v7086_v60 }
 0x6bb   : > { %v7165_v20 = vpop.f32.mrf.mxu1 }
 0x6bc   : > { %v2951_v17 = vmax.f32 %v2949_v57, %v7165_v20  ;;  %v2979_v57 = vmax.f32 %v2977_v53, %v7098_v63  ;;  %v2978_v61 = vmax.f32 %v2976_v62, %v7094_v51 }
 0x6bd   : > { %v7171_v5 = vpop.f32.mrf.mxu1 }
 0x6be   : > { %v2981_v27 = vmax.f32 %v2979_v57, %v7106_v21  ;;  %v2980_v14 = vmax.f32 %v2978_v61, %v7102_v58 }
 0x6bf   : > { %v7177_v35 = vpop.f32.mrf.mxu1 }
 0x6c0   : > { %v2952_v18 = vmax.f32 %v2950_v30, %v7177_v35  ;;  %v2982_v59 = vmax.f32 %v2980_v14, %v7114_v33 }
 0x6c2   : > { %v2953_v12 = vmax.f32 %v2951_v17, %v2952_v18  ;;  %v2983_v18 = vmax.f32 %v2981_v27, %v7122_v50  ;;  %v2984_v52 = vmax.f32 %v2982_v59, %v7130_v11 }
 0x6c4   : > { %v2954_v2 = vrot.slane %v2953_v12, 4  ;;  %v2985_v43 = vmax.f32 %v2983_v18, %v7138_v19  ;;  %v2986_v62 = vmax.f32 %v2984_v52, %v7146_v55 }
 0x6c6   : > { %v2955_v0 = vmax.f32 %v2953_v12, %v2954_v2  ;;  %v7197_v12 = vpop.f32.mrf.mxu1  ;;  %v2987_v2 = vmax.f32 %v2985_v43, %v7159_v38  ;;  %v2988_v57 = vmax.f32 %v2986_v62, %v7171_v5 }
 0x6c8   : > { %v2956_v30 = vrot.slane %v2955_v0, 2 }
 0x6ca   : > { %v2957_v17 = vmax.f32 %v2955_v0, %v2956_v30  ;;  %v2989_v0 = vmax.f32 %v2987_v2, %v7197_v12 }
 0x6cc   : > { %v2958_v8 = vrot.slane %v2957_v17, 1  ;;  %v2990_v14 = vmax.f32 %v2988_v57, %v2989_v0 }
 0x6ce   : > { %v7201_v53 = vmax.f32 %v2957_v17, %v2958_v8  ;;  %v2991_v52 = vrot.slane %v2990_v14, 4 }
 0x6d0   : > { %v2997_v30 = vsub.f32 %v7012_v22, %v7201_v53  ;;  %v2999_v61 = vsub.f32 %v7016_v56, %v7201_v53  ;;  %v3001_v27 = vsub.f32 %v7020_v45, %v7201_v53  ;;  %v3003_v17 = vsub.f32 %v7024_v1, %v7201_v53 }
 0x6d1   : > { %v3005_v59 = vsub.f32 %v7028_v36, %v7201_v53  ;;  %v3007_v22 = vsub.f32 %v7032_v40, %v7201_v53  ;;  %v3009_v45 = vsub.f32 %v7036_v13, %v7201_v53  ;;  %v2992_v62 = vmax.f32 %v2990_v14, %v2991_v52  ;;  %v8533_v36 = vld [vmem:[#allocation59_spill] sm:$0xff] }
 0x6d2   : > { %v3061_v18 = vmul.f32 1.442695, %v2997_v30  ;;  %v3065_v8 = vmul.f32 1.442695, %v2999_v61  ;;  %v3069_v43 = vmul.f32 1.442695, %v3001_v27  ;;  %v3011_v1 = vsub.f32 %v7040_v23, %v7201_v53 }
 0x6d3   : > { %v3073_v56 = vmul.f32 1.442695, %v3003_v17  ;;  %v3077_v2 = vmul.f32 1.442695, %v3005_v59  ;;  %v3081_v0 = vmul.f32 1.442695, %v3007_v22  ;;  %v3013_v57 = vsub.f32 %v8533_v36, %v7201_v53 }
 0x6d4   : > { %4866 = vpow2.f32 %v3061_v18  ;;  %v3085_v30 = vmul.f32 1.442695, %v3009_v45  ;;  %v3015_v40 = vsub.f32 %v7048_v3, %v7201_v53  ;;  %v2993_v61 = vrot.slane %v2992_v62, 2  ;;  %v8534_v27 = vld [vmem:[#allocation58_spill] sm:$0xff] }
 0x6d5   : > { %4868 = vpow2.f32 %v3065_v8  ;;  %v3017_v13 = vsub.f32 %v8534_v27, %v7201_v53  ;;  %v3089_v17 = vmul.f32 1.442695, %v3011_v1  ;;  %v3019_v14 = vsub.f32 %v7056_v26, %v7201_v53  ;;  %v8535_v23 = vld [vmem:[#allocation38_spill] sm:$0xff] }
 0x6d6   : > { %4870 = vpow2.f32 %v3069_v43  ;;  %v3021_v18 = vsub.f32 %v8535_v23, %v7201_v53  ;;  %v3093_v8 = vmul.f32 1.442695, %v3013_v57  ;;  %v3023_v59 = vsub.f32 %v7064_v9, %v7201_v53 }
 0x6d7   : > { %4872 = vpow2.f32 %v3073_v56  ;;  %v3097_v43 = vmul.f32 1.442695, %v3015_v40  ;;  %v2994_v52 = vmax.f32 %v2992_v62, %v2993_v61  ;;  %v3025_v22 = vsub.f32 %v7068_v29, %v7201_v53 }
 0x6d8   : > { %4874 = vpow2.f32 %v3077_v2  ;;  %v3101_v56 = vmul.f32 1.442695, %v3017_v13  ;;  %v3041_v26 = vsub.f32 %v7100_v24, %v7201_v53  ;;  %v3105_v2 = vmul.f32 1.442695, %v3019_v14 }
 0x6d9   : > { %4876 = vpow2.f32 %v3081_v0  ;;  %v3043_v1 = vsub.f32 %v7104_v49, %v7201_v53  ;;  %v3109_v9 = vmul.f32 1.442695, %v3021_v18  ;;  %v3045_v29 = vsub.f32 %v7108_v25, %v7201_v53 }
 0x6da   : > { %4878 = vpow2.f32 %v3085_v30  ;;  %v3113_v36 = vmul.f32 1.442695, %v3023_v59  ;;  %v2995_v57 = vrot.slane %v2994_v52, 1  ;;  %v3047_v24 = vsub.f32 %v7118_v44, %v7201_v53  ;;  %v8537_v44 = vld [vmem:[#allocation47_spill] sm:$0xff] }
 0x6db   : > { %4880 = vpow2.f32 %v3089_v17  ;;  %v3117_v30 = vmul.f32 1.442695, %v3025_v22  ;;  %v3049_v61 = vsub.f32 %v7126_v4, %v7201_v53  ;;  %v3149_v27 = vmul.f32 1.442695, %v3041_v26  ;;  %v8538_v26 = vld [vmem:[#allocation15_spill] sm:$0xff] }
 0x6dc   : > { %4882 = vpow2.f32 %v3093_v8  ;;  %v3051_v25 = vsub.f32 %v7134_v47, %v7201_v53  ;;  %v3153_v13 = vmul.f32 1.442695, %v3043_v1  ;;  %v3027_v23 = vsub.f32 %v8537_v44, %v7201_v53 }
 0x6dd   : > { %4884 = vpow2.f32 %v3097_v43  ;;  %v3157_v18 = vmul.f32 1.442695, %v3045_v29  ;;  %v7264_v8 = vmax.f32 %v2994_v52, %v2995_v57  ;;  %v3029_v4 = vsub.f32 %v7076_v32, %v7201_v53 }
 0x6de   : > { %4886 = vpow2.f32 %v3101_v56  ;;  %v3161_v59 = vmul.f32 1.442695, %v3047_v24  ;;  %v3031_v22 = vsub.f32 %v7080_v54, %v7201_v53  ;;  %v3165_v56 = vmul.f32 1.442695, %v3049_v61  ;;  %v8539_v24 = vld [vmem:[#allocation17_spill] sm:$0xff] }
 0x6df   : > { %4888 = vpow2.f32 %v3105_v2  ;;  %v3033_v2 = vsub.f32 %v8538_v26, %v7201_v53  ;;  %v3169_v52 = vmul.f32 1.442695, %v3051_v25  ;;  %v3121_v32 = vmul.f32 1.442695, %v3027_v23 }
 0x6e0   : > { %4890 = vpow2.f32 %v3109_v9  ;;  %v3125_v29 = vmul.f32 1.442695, %v3029_v4 }
 0x6e1   : > { %v7234_v3 = vpop.eup %4866  ;;  %4892 = vpow2.f32 %v3113_v36  ;;  %v3000_v36 = vsub.f32 %v7018_v46, %v7264_v8  ;;  %v3133_v61 = vmul.f32 1.442695, %v3033_v2 }
 0x6e2   : > { %v7238_v45 = vpop.eup %4868  ;;  %4894 = vpow2.f32 %v3117_v30  ;;  %v3035_v30 = vsub.f32 %v8539_v24, %v7201_v53 }
 0x6e3   : > { %8536 = vst [vmem:[#allocation39_spill] sm:$0xff] %v7238_v45  ;;  %v3189_v62 = vadd.f32 %v7238_v45, %v7234_v3  ;;  %v7246_v0 = vpop.eup %4870  ;;  %4896 = vpow2.f32 %v3149_v27 }
 0x6e4   : > { %v7253_v40 = vpop.eup %4872  ;;  %4898 = vpow2.f32 %v3153_v13  ;;  %v8540_v13 = vld [vmem:[#allocation34_spill] sm:$0xff] }
 0x6e5   : > { %v3190_v49 = vadd.f32 %v7246_v0, %v3189_v62  ;;  %v7260_v14 = vpop.eup %4874  ;;  %4900 = vpow2.f32 %v3157_v18  ;;  %v2998_v62 = vsub.f32 %v7014_v34, %v7264_v8  ;;  %v3002_v34 = vsub.f32 %v7022_v48, %v7264_v8  ;;  %v8541_v18 = vld [vmem:[#allocation65_spill] sm:$0xff]  ;;  %v8542_v48 = vld [vmem:[#allocation35_spill] sm:$0xff] }
 0x6e6   : > { %v7269_v43 = vpop.eup %4876  ;;  %4902 = vpow2.f32 %v3161_v59  ;;  %v3004_v4 = vsub.f32 %v8541_v18, %v7264_v8  ;;  %v3067_v59 = vmul.f32 1.442695, %v3000_v36 }
 0x6e7   : > { %v3191_v17 = vadd.f32 %v7253_v40, %v3190_v49  ;;  %v7276_v9 = vpop.eup %4878  ;;  %v3129_v49 = vmul.f32 1.442695, %v3031_v22  ;;  %4904 = vpow2.f32 %v3165_v56  ;;  %v3063_v46 = vmul.f32 1.442695, %v2998_v62 }
 0x6e8   : > { %v7283_v57 = vpop.eup %4880  ;;  %4906 = vpow2.f32 %v3169_v52  ;;  %v3039_v22 = vsub.f32 %v8542_v48, %v7201_v53  ;;  %v3137_v56 = vmul.f32 1.442695, %v3035_v30  ;;  %v3006_v52 = vsub.f32 %v7030_v42, %v7264_v8 }
 0x6e9   : > { %v3192_v47 = vadd.f32 %v7260_v14, %v3191_v17  ;;  %v7290_v25 = vpop.eup %4882  ;;  %v3037_v17 = vsub.f32 %v8540_v13, %v7201_v53  ;;  %4908 = vpow2.f32 %v3121_v32  ;;  %v3010_v30 = vsub.f32 %v7038_v15, %v7264_v8 }
 0x6ea   : > { %v7294_v44 = vpop.eup %4884  ;;  %4910 = vpow2.f32 %v3125_v29  ;;  %v8543_v29 = vld [vmem:[#allocation54_spill] sm:$0xff]  ;;  %v3145_v42 = vmul.f32 1.442695, %v3039_v22  ;;  %v3079_v18 = vmul.f32 1.442695, %v3006_v52  ;;  %v3022_v15 = vsub.f32 %v7062_v16, %v7264_v8 }
 0x6eb   : > { %v3193_v1 = vadd.f32 %v7269_v43, %v3192_v47  ;;  %v7299_v47 = vpop.eup %4886  ;;  %4912 = vpow2.f32 %v3129_v49  ;;  %v3141_v62 = vmul.f32 1.442695, %v3037_v17  ;;  %v3075_v49 = vmul.f32 1.442695, %v3004_v4 }
 0x6ec   : > { %v7303_v26 = vpop.eup %4888  ;;  %4914 = vpow2.f32 %v3133_v61  ;;  %v3024_v4 = vsub.f32 %v7066_v41, %v7264_v8  ;;  %v3028_v16 = vsub.f32 %v7074_v37, %v7264_v8 }
 0x6ed   : > { %v3194_v54 = vadd.f32 %v7276_v9, %v3193_v1  ;;  %v3071_v1 = vmul.f32 1.442695, %v3002_v34  ;;  %v7308_v32 = vpop.eup %4890  ;;  %4916 = vpow2.f32 %v3063_v46  ;;  %v8545_v46 = vld [vmem:[#allocation60_spill] sm:$0xff] }
 0x6ee   : > { %v7312_v36 = vpop.eup %4892  ;;  %4918 = vpow2.f32 %v3067_v59 }
 0x6ef   : > { %v3195_v27 = vadd.f32 %v7283_v57, %v3194_v54  ;;  %v3008_v54 = vsub.f32 %v8543_v29, %v7264_v8  ;;  %v7317_v61 = vpop.eup %4894  ;;  %4920 = vpow2.f32 %v3137_v56 }
 0x6f0   : > { %v7321_v13 = vpop.eup %4896  ;;  %4922 = vpow2.f32 %v3071_v1 }
 0x6f1   : > { %v3196_v23 = vadd.f32 %v7290_v25, %v3195_v27  ;;  %v8544_v27 = vld [vmem:[#allocation61_spill] sm:$0xff]  ;;  %v7326_v48 = vpop.eup %4898  ;;  %4924 = vpow2.f32 %v3141_v62  ;;  %v3083_v59 = vmul.f32 1.442695, %v3008_v54  ;;  %v3026_v62 = vsub.f32 %v7070_v39, %v7264_v8 }
 0x6f2   : > { %v3012_v34 = vsub.f32 %v8544_v27, %v7264_v8  ;;  %v7332_v22 = vpop.eup %4900  ;;  %4926 = vpow2.f32 %v3075_v49  ;;  %v3111_v39 = vmul.f32 1.442695, %v3022_v15 }
 0x6f3   : > { %v3197_v2 = vadd.f32 %v7294_v44, %v3196_v23  ;;  %v3014_v23 = vsub.f32 %v8545_v46, %v7264_v8  ;;  %v7337_v52 = vpop.eup %4902  ;;  %4928 = vpow2.f32 %v3145_v42  ;;  %v8546_v42 = vld [vmem:[#allocation57_spill] sm:$0xff] }
 0x6f4   : > { %v3091_v41 = vmul.f32 1.442695, %v3012_v34  ;;  %v7343_v29 = vpop.eup %4904  ;;  %4930 = vpow2.f32 %v3079_v18  ;;  %v3016_v27 = vsub.f32 %v8546_v42, %v7264_v8  ;;  %v3115_v34 = vmul.f32 1.442695, %v3024_v4 }
 0x6f5   : > { %v3198_v24 = vadd.f32 %v7299_v47, %v3197_v2  ;;  %v3087_v2 = vmul.f32 1.442695, %v3010_v30  ;;  %v7348_v49 = vpop.eup %4906  ;;  %4932 = vpow2.f32 %v3083_v59  ;;  %v3018_v18 = vsub.f32 %v7054_v10, %v7264_v8 }
 0x6f6   : > { %v3020_v59 = vsub.f32 %v7058_v31, %v7264_v8  ;;  %v3099_v30 = vmul.f32 1.442695, %v3016_v27  ;;  %v8552_v27 = vld [vmem:[#allocation12_spill] sm:$0xff] }
 0x6f7   : > { %v3199_v17 = vadd.f32 %v7303_v26, %v3198_v24  ;;  %v3095_v24 = vmul.f32 1.442695, %v3014_v23  ;;  %4934 = vpow2.f32 %v3087_v2  ;;  %v3123_v2 = vmul.f32 1.442695, %v3028_v16 }
 0x6f8   : > { %4936 = vpow2.f32 %v3091_v41  ;;  %v3107_v16 = vmul.f32 1.442695, %v3020_v59 }
 0x6f9   : > { %v3200_v56 = vadd.f32 %v7308_v32, %v3199_v17  ;;  %v7352_v17 = vpop.eup %4908  ;;  %4938 = vpow2.f32 %v3095_v24 }
 0x6fa   : > { %v7357_v23 = vpop.eup %4910  ;;  %4940 = vpow2.f32 %v3111_v39 }
 0x6fb   : > { %v3201_v54 = vadd.f32 %v7312_v36, %v3200_v56  ;;  %8547 = vst [vmem:[#allocation36_spill] sm:$0xff] %v7357_v23  ;;  %v3119_v56 = vmul.f32 1.442695, %v3026_v62  ;;  %v7361_v1 = vpop.eup %4912  ;;  %4942 = vpow2.f32 %v3115_v34  ;;  %v8550_v62 = vld [vmem:[#allocation13_spill] sm:$0xff]  ;;  %v3055_v34 = vsub.f32 %v8552_v27, %v7201_v53 }
 0x6fc   : > { %8548 = vst [vmem:[#allocation46_spill] sm:$0xff] %v7361_v1  ;;  %v7366_v4 = vpop.eup %4914  ;;  %v3053_v41 = vsub.f32 %v8550_v62, %v7201_v53  ;;  %v3050_v62 = vsub.f32 %v7130_v11, %v7264_v8 }
 0x6fd   : > { %v3202_v37 = vadd.f32 %v7317_v61, %v3201_v54  ;;  %8549 = vst [vmem:[#allocation45_spill] sm:$0xff] %v7366_v4  ;;  %v7368_v54 = vpop.eup %4916  ;;  %4944 = vpow2.f32 %v3119_v56 }
 0x6fe   : > { %v7371_v10 = vpop.eup %4918  ;;  %4946 = vpow2.f32 %v3123_v2  ;;  %v3173_v2 = vmul.f32 1.442695, %v3053_v41  ;;  %v3059_v41 = vsub.f32 %v7177_v35, %v7201_v53 }
 0x6ff   : > { %v3203_v15 = vadd.f32 %v7352_v17, %v3202_v37  ;;  %v3103_v37 = vmul.f32 1.442695, %v3018_v18  ;;  %v7375_v46 = vpop.eup %4920  ;;  %v3226_v24 = vadd.f32 %v7371_v10, %v7368_v54  ;;  %v3057_v18 = vsub.f32 %v7165_v20, %v7201_v53 }
 0x700   : > { %8551 = vst [vmem:[#allocation16_spill] sm:$0xff] %v7375_v46  ;;  %v7380_v39 = vpop.eup %4922  ;;  %4948 = vpow2.f32 %v3099_v30  ;;  %v3032_v53 = vsub.f32 %v7082_v7, %v7264_v8 }
 0x701   : > { %v3204_v42 = vadd.f32 %v7357_v23, %v3203_v15  ;;  %v7384_v15 = vpop.eup %4924  ;;  %4950 = vpow2.f32 %v3103_v37  ;;  %v3052_v23 = vsub.f32 %v7138_v19, %v7264_v8  ;;  %v3181_v11 = vmul.f32 1.442695, %v3057_v18 }
 0x702   : > { %v7390_v59 = vpop.eup %4926  ;;  %4952 = vpow2.f32 %v3107_v16  ;;  %v3030_v19 = vsub.f32 %v7078_v6, %v7264_v8  ;;  %v3167_v16 = vmul.f32 1.442695, %v3050_v62 }
 0x703   : > { %v3205_v31 = vadd.f32 %v7361_v1, %v3204_v42  ;;  %v3227_v42 = vadd.f32 %v7380_v39, %v3226_v24  ;;  %v7394_v1 = vpop.eup %4928  ;;  %4954 = vpow2.f32 %v3173_v2  ;;  %v3034_v2 = vsub.f32 %v7086_v60, %v7264_v8 }
 0x704   : > { %8553 = vst [vmem:[#allocation14_spill] sm:$0xff] %v7394_v1  ;;  %v7400_v30 = vpop.eup %4930 }
 0x705   : > { %v3206_v56 = vadd.f32 %v7366_v4, %v3205_v31  ;;  %v3228_v20 = vadd.f32 %v7390_v59, %v3227_v42  ;;  %v3177_v31 = vmul.f32 1.442695, %v3055_v34  ;;  %v7402_v24 = vpop.eup %4932 }
 0x707   : > { %v3207_v27 = vadd.f32 %v7375_v46, %v3206_v56  ;;  %v3229_v4 = vadd.f32 %v7400_v30, %v3228_v20  ;;  %v7408_v56 = vpop.eup %4934  ;;  %v3171_v46 = vmul.f32 1.442695, %v3052_v23  ;;  %4956 = vpow2.f32 %v3177_v31 }
 0x708   : > { %v7412_v42 = vpop.eup %4936  ;;  %4958 = vpow2.f32 %v3181_v11  ;;  %v3127_v31 = vmul.f32 1.442695, %v3030_v19  ;;  %v3131_v11 = vmul.f32 1.442695, %v3032_v53  ;;  %v3135_v19 = vmul.f32 1.442695, %v3034_v2 }
 0x709   : > { %v3208_v37 = vadd.f32 %v7384_v15, %v3207_v27  ;;  %v3230_v45 = vadd.f32 %v7402_v24, %v3229_v4  ;;  %v7416_v35 = vpop.eup %4938  ;;  %v3185_v27 = vmul.f32 1.442695, %v3059_v41  ;;  %4960 = vpow2.f32 %v3167_v16 }
 0x70a   : > { %v4941_v18 = vpop.eup %4940  ;;  %4962 = vpow2.f32 %v3171_v46  ;;  %v3036_v41 = vsub.f32 %v7090_v28, %v7264_v8  ;;  %v3038_v46 = vsub.f32 %v7094_v51, %v7264_v8 }
 0x70b   : > { %v3209_v34 = vadd.f32 %v7394_v1, %v3208_v37  ;;  %v3231_v62 = vadd.f32 %v7408_v56, %v3230_v45  ;;  %v4943_v20 = vpop.eup %4942  ;;  %4964 = vpow2.f32 %v3185_v27  ;;  %v3042_v1 = vsub.f32 %v7102_v58, %v7264_v8 }
 0x70c   : > { %v7424_v23 = vpop.eup %4944  ;;  %4966 = vpow2.f32 %v3127_v31  ;;  %v3276_v27 = vpack.c.bf16 %v4943_v20, %v4941_v18  ;;  %v3139_v2 = vmul.f32 1.442695, %v3036_v41  ;;  %v3060_v31 = vsub.f32 %v7197_v12, %v7264_v8 }
 0x70d   : > { %v3210_v6 = vadd.f32 %v7321_v13, %v3209_v34  ;;  %v3232_v7 = vadd.f32 %v7412_v42, %v3231_v62  ;;  %v7428_v37 = vpop.eup %4946  ;;  %4968 = vpow2.f32 %v3131_v11  ;;  %v3044_v41 = vsub.f32 %v7106_v21, %v7264_v8 }
 0x70e   : > { %v3278_v16 = vpack.c.bf16 %v7428_v37, %v7424_v23  ;;  %v4949_v34 = vpop.eup %4948  ;;  %4970 = vpow2.f32 %v3135_v19  ;;  %v3054_v12 = vsub.f32 %v7146_v55, %v7264_v8  ;;  %v3056_v21 = vsub.f32 %v7159_v38, %v7264_v8 }
 0x70f   : > { %v3211_v4 = vadd.f32 %v7326_v48, %v3210_v6  ;;  %v3233_v60 = vadd.f32 %v7416_v35, %v3232_v7  ;;  %v3277_v6 = vpack.c.bf16 %v7352_v17, %v7317_v61  ;;  %v4951_v62 = vpop.eup %4950  ;;  %v3040_v7 = vsub.f32 %v7098_v63, %v7264_v8 }
 0x710   : > { %3295 = vmatprep.subr.bf16.mxu0 %v3278_v16  ;;  %v3058_v17 = vsub.f32 %v7171_v5, %v7264_v8  ;;  %v3275_v63 = vpack.c.bf16 %v7312_v36, %v7308_v32  ;;  %v3046_v5 = vsub.f32 %v7114_v33, %v7264_v8  ;;  %4972 = vpow2.f32 %v3139_v2 }
 0x711   : > { %v3212_v45 = vadd.f32 %v7332_v22, %v3211_v4  ;;  %v3234_v53 = vadd.f32 %v4949_v34, %v3233_v60  ;;  %v4953_v4 = vpop.eup %4952  ;;  %3296 = vmatpush1.bf16.msra.mxu0 %v3277_v6  ;;  %v3147_v11 = vmul.f32 1.442695, %v3040_v7  ;;  %v3151_v36 = vmul.f32 1.442695, %v3042_v1 }
 0x712   : > { %3297 = vmatprep.subr.bf16.mxu0 %v3276_v27  ;;  %v3274_v16 = vpack.c.bf16 %v4953_v4, %v4951_v62  ;;  %v7453_v6 = vpop.eup %4954  ;;  %v3187_v33 = vmul.f32 1.442695, %v3060_v31  ;;  %v3273_v55 = vpack.c.bf16 %v7303_v26, %v7299_v47  ;;  %v3272_v1 = vpack.c.bf16 %v4949_v34, %v7416_v35 }
 0x713   : > { %v3213_v28 = vadd.f32 %v7337_v52, %v3212_v45  ;;  %v3235_v61 = vadd.f32 %v4951_v62, %v3234_v53  ;;  %v3143_v45 = vmul.f32 1.442695, %v3038_v46  ;;  %v3048_v7 = vsub.f32 %v7122_v50, %v7264_v8 }
 0x714   : > { %v7461_v46 = vpop.eup %4956  ;;  %v3155_v38 = vmul.f32 1.442695, %v3044_v41  ;;  %v3175_v35 = vmul.f32 1.442695, %v3054_v12  ;;  %v3179_v34 = vmul.f32 1.442695, %v3056_v21  ;;  %v3271_v50 = vpack.c.bf16 %v7294_v44, %v7290_v25 }
 0x715   : > { %v3214_v51 = vadd.f32 %v7343_v29, %v3213_v28  ;;  %v3236_v58 = vadd.f32 %v4953_v4, %v3235_v61  ;;  %3298 = vmatpush1.bf16.msra.mxu0 %v3275_v63  ;;  %v7464_v62 = vpop.eup %4958  ;;  %v3183_v28 = vmul.f32 1.442695, %v3058_v17  ;;  %4974 = vpow2.f32 %v3143_v45 }
 0x716   : > { %3299 = vmatprep.subr.bf16.mxu0 %v3274_v16  ;;  %v7470_v53 = vpop.eup %4960  ;;  %4976 = vpow2.f32 %v3147_v11  ;;  %v3270_v17 = vpack.c.bf16 %v7412_v42, %v7408_v56  ;;  %v3163_v31 = vmul.f32 1.442695, %v3048_v7  ;;  %v3269_v25 = vpack.c.bf16 %v7283_v57, %v7276_v9 }
 0x717   : > { %v3215_v60 = vadd.f32 %v7348_v49, %v3214_v51  ;;  %v3237_v19 = vadd.f32 %v4941_v18, %v3236_v58  ;;  %v7474_v18 = vpop.eup %4962  ;;  %v3159_v51 = vmul.f32 1.442695, %v3046_v5  ;;  %4978 = vpow2.f32 %v3151_v36 }
 0x718   : > { %v3290_v26 = vpack.c.bf16 %v7474_v18, %v7470_v53  ;;  %4980 = vpow2.f32 %v3183_v28  ;;  %v3268_v56 = vpack.c.bf16 %v7402_v24, %v7400_v30  ;;  %v3267_v58 = vpack.c.bf16 %v7269_v43, %v7260_v14 }
 0x719   : > { %v3216_v32 = vadd.f32 %v7453_v6, %v3215_v60  ;;  %v3238_v4 = vadd.f32 %v4943_v20, %v3237_v19  ;;  %3300 = vmatpush1.bf16.msra.mxu0 %v3273_v55  ;;  %v4965_v20 = vpop.eup %4964  ;;  %4982 = vpow2.f32 %v3187_v33  ;;  %v3266_v41 = vpack.c.bf16 %v7390_v59, %v7380_v39  ;;  %v8554_v59 = vld [vmem:[#allocation39_spill] sm:$0xff] }
 0x71a   : > { %3301 = vmatprep.subr.bf16.mxu0 %v3272_v1  ;;  %4984 = vpow2.f32 %v3155_v38  ;;  %v3265_v30 = vpack.c.bf16 %v7253_v40, %v7246_v0  ;;  %v3263_v19 = vpack.c.bf16 %v8554_v59, %v7234_v3  ;;  %v3291_v1 = vpack.c.bf16 %v7461_v46, %v7453_v6 }
 0x71b   : > { %v3217_v27 = vadd.f32 %v7461_v46, %v3216_v32  ;;  %v3239_v47 = vadd.f32 %v7424_v23, %v3238_v4  ;;  %v7489_v23 = vpop.eup %4966  ;;  %4986 = vpow2.f32 %v3159_v51  ;;  %v3264_v32 = vpack.c.bf16 %v7371_v10, %v7368_v54 }
 0x71c   : > { %v7492_v63 = vpop.eup %4968  ;;  %4988 = vpow2.f32 %v3175_v35  ;;  %v8556_v6 = vpack.c.bf16 %v7337_v52, %v7332_v22  ;;  %v8560_v35 = vld [vmem:[#allocation16_spill] sm:$0xff] }
 0x71d   : > { %v3218_v2 = vadd.f32 %v7464_v62, %v3217_v27  ;;  %v3240_v61 = vadd.f32 %v7428_v37, %v3239_v47  ;;  %3302 = vmatpush1.bf16.msra.mxu0 %v3271_v50  ;;  %4990 = vpow2.f32 %v3179_v34  ;;  %v4971_v42 = vpop.eup %4970  ;;  %v3293_v27 = vpack.c.bf16 %v4965_v20, %v7464_v62  ;;  %v8561_v52 = vld [vmem:[#allocation36_spill] sm:$0xff]  ;;  %v8562_v50 = vld [vmem:[#allocation46_spill] sm:$0xff] }
 0x71e   : > { %3303 = vmatprep.subr.bf16.mxu0 %v3270_v17  ;;  %4992 = vpow2.f32 %v3163_v31  ;;  %v4973_v60 = vpop.eup %4972  ;;  %v8555_v62 = vpack.c.bf16 %v7348_v49, %v7343_v29  ;;  %v3280_v22 = vpack.c.bf16 %v7492_v63, %v7489_v23  ;;  %v8566_v31 = vld [vmem:[#allocation25_spill] sm:$0xff] }
 0x71f   : > { %v7484_v8 = vadd.f32 %v4965_v20, %v3218_v2  ;;  %v3241_v45 = vadd.f32 %v7489_v23, %v3240_v61  ;;  %v3282_v49 = vpack.c.bf16 %v4973_v60, %v4971_v42  ;;  %v3279_v61 = vpack.c.bf16 %v8562_v50, %v8561_v52  ;;  %v8572_v23 = vld [vmem:[#allocation41_spill] sm:$0xff] }
 0x721   : > { %v3242_v44 = vadd.f32 %v7492_v63, %v3241_v45  ;;  %3304 = vmatpush1.bf16.msra.mxu0 %v3269_v25  ;;  %v8567_v25 = vld [vmem:[#allocation37_spill] sm:$0xff]  ;;  %v8573_v63 = vld [vmem:[#allocation43_spill] sm:$0xff] }
 0x722   : > { %3305 = vmatprep.subr.bf16.mxu0 %v3268_v56  ;;  %v4975_v9 = vpop.eup %4974 }
 0x723   : > { %v3243_v37 = vadd.f32 %v4971_v42, %v3242_v44  ;;  %v4977_v57 = vpop.eup %4976  ;;  %v8568_v44 = vld [vmem:[#allocation42_spill] sm:$0xff]  ;;  %v8569_v42 = vld [vmem:[#allocation20_spill] sm:$0xff] }
 0x724   : > { %v4979_v12 = vpop.eup %4978  ;;  %v3284_v46 = vpack.c.bf16 %v4977_v57, %v4975_v9  ;;  %v1214_v56 = vpack.c.bf16 %v8568_v44, %v8567_v25 }
 0x725   : > { %v3244_v16 = vadd.f32 %v4973_v60, %v3243_v37  ;;  %3306 = vmatpush1.bf16.msra.mxu0 %v3267_v58  ;;  %v4981_v24 = vpop.eup %4980  ;;  %v8570_v37 = vld [vmem:[#allocation18_spill] sm:$0xff]  ;;  %v8574_v58 = vpack.c.bf16 %v8572_v23, %v8573_v63 }
 0x726   : > { %3307 = vmatprep.subr.bf16.mxu0 %v3266_v41  ;;  %v4983_v36 = vpop.eup %4982  ;;  %v8571_v60 = vpack.c.bf16 %v8569_v42, %v8570_v37  ;;  %v8576_v41 = vld [vmem:[#allocation48_spill] sm:$0xff] }
 0x727   : > { %v3245_v5 = vadd.f32 %v4975_v9, %v3244_v16  ;;  %v4985_v14 = vpop.eup %4984  ;;  %v3294_v33 = vpack.c.bf16 %v4983_v36, %v4981_v24  ;;  %v8575_v16 = vld [vmem:[#allocation44_spill] sm:$0xff] }
 0x728   : > { %v4987_v39 = vpop.eup %4986  ;;  %v3286_v20 = vpack.c.bf16 %v4985_v14, %v4979_v12  ;;  %v8577_v9 = vpack.c.bf16 %v8575_v16, %v8576_v41 }
 0x729   : > { %v3246_v11 = vadd.f32 %v4977_v57, %v3245_v5  ;;  %3308 = vmatpush1.bf16.msra.mxu0 %v3265_v30  ;;  %v4989_v21 = vpop.eup %4988  ;;  %v8578_v57 = vld [vmem:[#allocation24_spill] sm:$0xff]  ;;  %v8579_v5 = vld [vmem:[#allocation22_spill] sm:$0xff]  ;;  %v8581_v30 = vmov 0  }
 0x72a   : > { %3309 = vmatprep.subr.bf16.mxu0 %v3264_v32  ;;  %v4991_v55 = vpop.eup %4990 }
 0x72b   : > { %v3247_v43 = vadd.f32 %v4979_v12, %v3246_v11  ;;  %v4993_v40 = vpop.eup %4992  ;;  %v3292_v10 = vpack.c.bf16 %v4991_v55, %v4989_v21  ;;  %v8580_v12 = vpack.c.bf16 %v8578_v57, %v8579_v5 }
 0x72c   : > { %v3288_v51 = vpack.c.bf16 %v4993_v40, %v4987_v39 }
 0x72d   : > { %v3248_v28 = vadd.f32 %v4985_v14, %v3247_v43  ;;  %3310 = vmatpush1.bf16.msra.mxu0 %v3263_v19 }
 0x72e   : > { %3311 = vmatprep.subr.bf16.mxu0 %v3294_v33  ;;  %v3389_v33 = vpop.permute.xlu0 %3388 }
 0x72f   : > { %v3249_v0 = vadd.f32 %v4987_v39, %v3248_v28 }
 0x731   : > { %v3250_v54 = vadd.f32 %v4993_v40, %v3249_v0  ;;  %3312 = vmatpush2.bf16.msra.mxu0 %v3293_v27 }
 0x732   : > { %3313 = vmatprep.subr.bf16.mxu0 %v3292_v10  ;;  %v3393_v0 = vpop.permute.xlu0 %3392 }
 0x733   : > { %v3251_v4 = vadd.f32 %v7470_v53, %v3250_v54  ;;  %v8557_v53 = vpack.c.bf16 %v7326_v48, %v7321_v13  ;;  %v8563_v13 = vld [vmem:[#allocation40_spill] sm:$0xff]  ;;  %v8564_v48 = vld [vmem:[#allocation9_spill] sm:$0xff]  ;;  %v3220_v54 = vrot.slane %v7484_v8, 4 }
 0x734   : > { %v1216_v17 = vpack.c.bf16 %v8564_v48, %v8563_v13 }
 0x735   : > { %v3252_v3 = vadd.f32 %v7474_v18, %v3251_v4  ;;  %3314 = vmatpush2.bf16.msra.mxu0 %v3291_v1  ;;  %v8558_v18 = vld [vmem:[#allocation14_spill] sm:$0xff]  ;;  %v3221_v4 = vadd.f32 %v3220_v54, %v7484_v8 }
 0x736   : > { %3315 = vmatprep.subr.bf16.mxu0 %v3290_v26  ;;  %v3283_v29 = vpack.c.bf16 %v8558_v18, %v7384_v15  ;;  %v8559_v26 = vld [vmem:[#allocation45_spill] sm:$0xff]  ;;  %v8565_v15 = vld [vmem:[#allocation23_spill] sm:$0xff]  ;;  %v3397_v27 = vpop.permute.xlu0 %3396 }
 0x737   : > { %v3253_v7 = vadd.f32 %v4989_v21, %v3252_v3  ;;  %v3281_v34 = vpack.c.bf16 %v8560_v35, %v8559_v26  ;;  %v964_v45 = vpack.c.bf16 %v8566_v31, %v8565_v15  ;;  %v3222_v3 = vrot.slane %v3221_v4, 2 }
 0x739   : > { %v3254_v38 = vadd.f32 %v4991_v55, %v3253_v7  ;;  %3316 = vmatpush2.bf16.msra.mxu0 %v8555_v62 }
 0x73a   : > { %3317 = vmatprep.subr.bf16.mxu0 %v3288_v51 }
 0x73b   : > { %v3255_v2 = vadd.f32 %v4981_v24, %v3254_v38  ;;  %v3367_v24 = vpop.permute.xlu1 %3366  ;;  %v3223_v38 = vadd.f32 %v3222_v3, %v3221_v4 }
 0x73d   : > { %v7520_v47 = vadd.f32 %v4983_v36, %v3255_v2  ;;  %3318 = vmatpush2.bf16.msra.mxu0 %v8556_v6  ;;  %v3224_v62 = vrot.slane %v3223_v38, 1 }
 0x73e   : > { %3319 = vmatprep.subr.bf16.mxu0 %v3286_v20 }
 0x73f   : > { %v3369_v11 = vpop.permute.xlu1 %3368  ;;  %v3257_v10 = vrot.slane %v7520_v47, 4  ;;  %v3225_v20 = vadd.f32 %v3224_v62, %v3223_v38 }
 0x741   : > { %3320 = vmatpush2.bf16.msra.mxu0 %v8557_v53  ;;  %v3258_v1 = vadd.f32 %v3257_v10, %v7520_v47  ;;  %4994 = vrcp.f32 %v3225_v20 }
 0x742   : > { %3321 = vmatprep.subr.bf16.mxu0 %v3284_v46 }
 0x743   : > { %v3371_v32 = vpop.permute.xlu1 %3370  ;;  %v3259_v7 = vrot.slane %v3258_v1, 2 }
 0x745   : > { %3322 = vmatpush2.bf16.msra.mxu0 %v3283_v29  ;;  %v3260_v51 = vadd.f32 %v3259_v7, %v3258_v1 }
 0x746   : > { %3323 = vmatprep.subr.bf16.mxu0 %v3282_v49 }
 0x747   : > { %v3373_v36 = vpop.permute.xlu1 %3372  ;;  %v3261_v2 = vrot.slane %v3260_v51, 1 }
 0x749   : > { %3324 = vmatpush2.bf16.msra.mxu0 %v3281_v34  ;;  %v3262_v6 = vadd.f32 %v3261_v2, %v3260_v51 }
 0x74a   : > { %3325 = vmatprep.subr.bf16.mxu0 %v3280_v22 }
 0x74b   : > { %v3375_v14 = vpop.permute.xlu1 %3374  ;;  %4996 = vrcp.f32 %v3262_v6 }
 0x74d   : > { %3326 = vmatpush2.bf16.msra.mxu0 %v3279_v61 }
 0x74e   : > { %3458 = vmatprep.subr.bf16.mxu0 %v1216_v17  ;;  %v4995_v46 = vpop.eup %4994 }
 0x74f   : > { %v3377_v43 = vpop.permute.xlu1 %3376 }
 0x750   : > { %3328 = vmatmul.mubr.bf16.vlgmr.msra.gmra.mxu0 %v8571_v60 }
 0x751   : > { %3337 = vmatprep.mubr.bf16.mxu0 %v964_v45  ;;  %3459 = vmatpush1.bf16.msra.mxu0 %v8574_v58 }
 0x752   : > { %3460 = vmatprep.subr.bf16.mxu0 %v1214_v56 }
 0x753   : > { %v3379_v39 = vpop.permute.xlu1 %3378 }
 0x755   : > { %3461 = vmatpush1.bf16.msra.mxu0 %v8577_v9 }
 0x757   : > { %v3381_v59 = vpop.permute.xlu1 %3380 }
 0x758   : > { %3338 = vmatmul.mubr.bf16.gmra.mxu0 %v8580_v12  ;;  %v4997_v29 = vpop.eup %4996 }
 0x759   : > { %3478 = vmatprep.mubr.bf16.mxu0 %v8581_v30 }
 0x75b   : > { %v3383_v19 = vpop.permute.xlu1 %3382 }
 0x75f   : > { %v3385_v21 = vpop.permute.xlu1 %3384 }
 0x760   : > { %4429 = vmatmul.mubr.msk.bf16.vlgmr.msra.gmra.mxu0 %vm1233_vm2, %v3367_v24 }
 0x761   : > { %3488 = vmatprep.mubr.bf16.mxu0 %v8581_v30 }
 0x763   : > { %v3387_v28 = vpop.permute.xlu1 %3386 }
 0x767   : > { %v3391_v55 = vpop.permute.xlu1 %3390 }
 0x768   : > { %4430 = vmatmul.mubr.msk.bf16.gmra.mxu0 %vm1233_vm2, %v3369_v11 }
 0x769   : > { %3498 = vmatprep.mubr.bf16.mxu0 %v8581_v30 }
 0x76b   : > { %v3395_v40 = vpop.permute.xlu1 %3394 }
 0x770   : > { %4431 = vmatmul.mubr.msk.bf16.gmra.mxu0 %vm1233_vm2, %v3371_v32 }
 0x771   : > { %3508 = vmatprep.mubr.bf16.mxu0 %v8581_v30 }
 0x778   : > { %4432 = vmatmul.mubr.msk.bf16.gmra.mxu0 %vm1233_vm2, %v3373_v36 }
 0x779   : > { %3518 = vmatprep.mubr.bf16.mxu0 %v8581_v30 }
 0x780   : > { %4433 = vmatmul.mubr.msk.bf16.gmra.mxu0 %vm1233_vm2, %v3375_v14 }
 0x781   : > { %3528 = vmatprep.mubr.bf16.mxu0 %v8581_v30 }
 0x788   : > { %4434 = vmatmul.mubr.msk.bf16.gmra.mxu0 %vm1233_vm2, %v3377_v43 }
 0x789   : > { %3538 = vmatprep.mubr.bf16.mxu0 %v8581_v30 }
 0x790   : > { %4435 = vmatmul.mubr.msk.bf16.gmra.mxu0 %vm1233_vm2, %v3379_v39 }
 0x791   : > { %3548 = vmatprep.mubr.bf16.mxu0 %v8581_v30 }
 0x798   : > { %4436 = vmatmul.mubr.msk.bf16.gmra.mxu0 %vm1233_vm2, %v3381_v59 }
 0x799   : > { %3558 = vmatprep.mubr.bf16.mxu0 %v8581_v30 }
 0x7a0   : > { %4437 = vmatmul.mubr.msk.bf16.gmra.mxu0 %vm1233_vm2, %v3383_v19 }
 0x7a1   : > { %3568 = vmatprep.mubr.bf16.mxu0 %v8581_v30 }
 0x7a8   : > { %4438 = vmatmul.mubr.msk.bf16.gmra.mxu0 %vm1233_vm2, %v3385_v21 }
 0x7a9   : > { %3578 = vmatprep.mubr.bf16.mxu0 %v8581_v30 }
 0x7b0   : > { %4439 = vmatmul.mubr.msk.bf16.gmra.mxu0 %vm1233_vm2, %v3387_v28 }
 0x7b1   : > { %3588 = vmatprep.mubr.bf16.mxu0 %v8581_v30 }
 0x7b8   : > { %4440 = vmatmul.mubr.msk.bf16.gmra.mxu0 %vm1233_vm2, %v3389_v33 }
 0x7b9   : > { %3598 = vmatprep.mubr.bf16.mxu0 %v8581_v30 }
 0x7c0   : > { %4441 = vmatmul.mubr.msk.bf16.gmra.mxu0 %vm1233_vm2, %v3391_v55 }
 0x7c1   : > { %3608 = vmatprep.mubr.bf16.mxu0 %v8581_v30 }
 0x7c8   : > { %4442 = vmatmul.mubr.msk.bf16.gmra.mxu0 %vm1233_vm2, %v3393_v0 }
 0x7c9   : > { %3618 = vmatprep.mubr.bf16.mxu0 %v8581_v30 }
 0x7d0   : > { %4443 = vmatmul.mubr.msk.bf16.gmra.mxu0 %vm1233_vm2, %v3395_v40 }
 0x7d1   : > { %3628 = vmatprep.mubr.bf16.mxu0 %v8581_v30 }
 0x7d8   : > { %4444 = vmatmul.mubr.msk.bf16.gmra.mxu0 %vm1233_vm2, %v3397_v27 }
 0x810   : > { %v3329_v53 = vpop.f32.mrf.mxu0 }
 0x811   : > { %v7590_v18 = vmul.f32 %v4995_v46, %v3329_v53 }
 0x812   : > { %v3331_v49 = vpop.f32.mrf.mxu0 }
 0x813   : > { %8582 = vst [vmem:[#allocation27_spill] sm:$0xff] %v7590_v18  ;;  %v7592_v26 = vmul.f32 %v4997_v29, %v3331_v49 }
 0x814   : > { %v3333_v8 = vpop.f32.mrf.mxu0 }
 0x815   : > { %8583 = vst [vmem:[#allocation29_spill] sm:$0xff] %v7592_v26  ;;  %v7594_v47 = vmul.f32 %v4995_v46, %v3333_v8 }
 0x816   : > { %v3335_v35 = vpop.f32.mrf.mxu0 }
 0x817   : > { %8584 = vst [vmem:[#allocation59_spill] sm:$0xff] %v7594_v47  ;;  %v7596_v34 = vmul.f32 %v4997_v29, %v3335_v35 }
 0x818   : > { %v3339_v22 = vpop.f32.mrf.mxu0 }
 0x819   : > { %8585 = vst [vmem:[#allocation58_spill] sm:$0xff] %v7596_v34  ;;  %v7598_v52 = vmul.f32 %v4995_v46, %v3339_v22 }
 0x81a   : > { %v3341_v50 = vpop.f32.mrf.mxu0 }
 0x81b   : > { %8586 = vst [vmem:[#allocation38_spill] sm:$0xff] %v7598_v52  ;;  %v7600_v61 = vmul.f32 %v4997_v29, %v3341_v50 }
 0x81c   : > { %v3343_v13 = vpop.f32.mrf.mxu0 }
 0x81d   : > { %8587 = vst [vmem:[#allocation47_spill] sm:$0xff] %v7600_v61  ;;  %v7602_v48 = vmul.f32 %v4995_v46, %v3343_v13 }
 0x81e   : > { %v3345_v17 = vpop.f32.mrf.mxu0 }
 0x81f   : > { %8588 = vst [vmem:[#allocation15_spill] sm:$0xff] %v7602_v48  ;;  %v7604_v15 = vmul.f32 %v4997_v29, %v3345_v17 }
 0x820   : > { %v7606_v31 = vpop.f32.mrf.mxu0 }
 0x821   : > { %8589 = vst [vmem:[#allocation17_spill] sm:$0xff] %v7604_v15 }
 0x822   : > { %v7608_v45 = vpop.f32.mrf.mxu0 }
 0x824   : > { %v7610_v25 = vpop.f32.mrf.mxu0 }
 0x826   : > { %v7612_v44 = vpop.f32.mrf.mxu0 }
 0x828   : > { %v7614_v56 = vpop.f32.mrf.mxu0 }
 0x829   : > { %v3639_v49 = vmax.f32 %v7606_v31, %v7614_v56 }
 0x82a   : > { %v7616_v42 = vpop.f32.mrf.mxu0 }
 0x82c   : > { %v7618_v37 = vpop.f32.mrf.mxu0 }
 0x82d   : > { %v3640_v8 = vmax.f32 %v7610_v25, %v7618_v37 }
 0x82e   : > { %v7620_v60 = vpop.f32.mrf.mxu0 }
 0x82f   : > { %8590 = vst [vmem:[#allocation34_spill] sm:$0xff] %v7620_v60 }
 0x830   : > { %v7622_v23 = vpop.f32.mrf.mxu0 }
 0x831   : > { %v3641_v22 = vmax.f32 %v3639_v49, %v7622_v23 }
 0x832   : > { %v7624_v63 = vpop.f32.mrf.mxu0 }
 0x834   : > { %v7626_v58 = vpop.f32.mrf.mxu0 }
 0x835   : > { %v3642_v50 = vmax.f32 %v3640_v8, %v7626_v58 }
 0x836   : > { %v7628_v16 = vpop.f32.mrf.mxu0 }
 0x837   : > { %8591 = vst [vmem:[#allocation65_spill] sm:$0xff] %v7628_v16 }
 0x838   : > { %v7630_v41 = vpop.f32.mrf.mxu0 }
 0x839   : > { %v3643_v17 = vmax.f32 %v3641_v22, %v7630_v41 }
 0x83a   : > { %v7632_v9 = vpop.f32.mrf.mxu0 }
 0x83c   : > { %v7634_v57 = vpop.f32.mrf.mxu0 }
 0x83d   : > { %v3644_v18 = vmax.f32 %v3642_v50, %v7634_v57 }
 0x83e   : > { %v7636_v5 = vpop.f32.mrf.mxu0 }
 0x83f   : > { %8592 = vst [vmem:[#allocation35_spill] sm:$0xff] %v7636_v5 }
 0x840   : > { %v7638_v12 = vpop.f32.mrf.mxu0 }
 0x841   : > { %8593 = vst [vmem:[#allocation54_spill] sm:$0xff] %v7638_v12  ;;  %v3645_v47 = vmax.f32 %v3643_v17, %v7638_v12 }
 0x842   : > { %v7640_v30 = vpop.f32.mrf.mxu0 }
 0x843   : > { %8594 = vst [vmem:[#allocation61_spill] sm:$0xff] %v7640_v30 }
 0x844   : > { %v7642_v24 = vpop.f32.mrf.mxu0 }
 0x845   : > { %v3646_v34 = vmax.f32 %v3644_v18, %v7642_v24 }
 0x846   : > { %v7644_v11 = vpop.f32.mrf.mxu0 }
 0x847   : > { %8595 = vst [vmem:[#allocation60_spill] sm:$0xff] %v7644_v11 }
 0x848   : > { %v7646_v32 = vpop.f32.mrf.mxu0 }
 0x849   : > { %8596 = vst [vmem:[#allocation57_spill] sm:$0xff] %v7646_v32  ;;  %v3647_v61 = vmax.f32 %v3645_v47, %v7646_v32 }
 0x84a   : > { %v7648_v36 = vpop.f32.mrf.mxu0 }
 0x84c   : > { %v7650_v14 = vpop.f32.mrf.mxu0 }
 0x84d   : > { %v3648_v49 = vmax.f32 %v3646_v34, %v7650_v14 }
 0x84e   : > { %v7652_v43 = vpop.f32.mrf.mxu0 }
 0x850   : > { %v7654_v39 = vpop.f32.mrf.mxu0 }
 0x851   : > { %8597 = vst [vmem:[#allocation13_spill] sm:$0xff] %v7654_v39  ;;  %v3649_v8 = vmax.f32 %v3647_v61, %v7654_v39 }
 0x852   : > { %v7656_v59 = vpop.f32.mrf.mxu0 }
 0x854   : > { %v7658_v19 = vpop.f32.mrf.mxu0 }
 0x855   : > { %v3650_v22 = vmax.f32 %v3648_v49, %v7658_v19  ;;  %v3677_v49 = vmax.f32 %v7612_v44, %v7620_v60 }
 0x856   : > { %v7660_v21 = vpop.f32.mrf.mxu0 }
 0x858   : > { %v7662_v28 = vpop.f32.mrf.mxu0 }
 0x859   : > { %v3651_v50 = vmax.f32 %v3649_v8, %v7662_v28 }
 0x85a   : > { %v7664_v33 = vpop.f32.mrf.mxu0 }
 0x85c   : > { %v7666_v55 = vpop.f32.mrf.mxu0 }
 0x85d   : > { %8598 = vst [vmem:[#allocation12_spill] sm:$0xff] %v7666_v55  ;;  %v3652_v17 = vmax.f32 %v3650_v22, %v7666_v55 }
 0x85e   : > { %v7668_v0 = vpop.f32.mrf.mxu0 }
 0x860   : > { %v7670_v40 = vpop.f32.mrf.mxu0 }
 0x861   : > { %v3653_v18 = vmax.f32 %v3651_v50, %v7670_v40  ;;  %v3676_v50 = vmax.f32 %v7608_v45, %v7616_v42 }
 0x862   : > { %v7672_v27 = vpop.f32.mrf.mxu0 }
 0x864   : > { %v7674_v54 = vpop.f32.mrf.mxu0 }
 0x865   : > { %v3654_v47 = vmax.f32 %v3652_v17, %v7674_v54  ;;  %v3679_v17 = vmax.f32 %v3677_v49, %v7628_v16 }
 0x866   : > { %v7676_v10 = vpop.f32.mrf.mxu0 }
 0x867   : > { %v3681_v60 = vmax.f32 %v3679_v17, %v7636_v5 }
 0x868   : > { %v7678_v4 = vpop.f32.mrf.mxu0 }
 0x869   : > { %8599 = vst [vmem:[#allocation39_spill] sm:$0xff] %v7678_v4  ;;  %v3655_v34 = vmax.f32 %v3653_v18, %v7678_v4  ;;  %v3678_v4 = vmax.f32 %v3676_v50, %v7624_v63  ;;  %v3683_v49 = vmax.f32 %v3681_v60, %v7644_v11 }
 0x86a   : > { %v7680_v1 = vpop.f32.mrf.mxu0 }
 0x86b   : > { %v3685_v17 = vmax.f32 %v3683_v49, %v7652_v43 }
 0x86c   : > { %v7682_v3 = vpop.f32.mrf.mxu0 }
 0x86d   : > { %8600 = vst [vmem:[#allocation14_spill] sm:$0xff] %v7682_v3  ;;  %v3656_v61 = vmax.f32 %v3654_v47, %v7682_v3  ;;  %v3687_v60 = vmax.f32 %v3685_v17, %v7660_v21 }
 0x86e   : > { %v7684_v7 = vpop.f32.mrf.mxu0 }
 0x870   : > { %v7686_v38 = vpop.f32.mrf.mxu0 }
 0x871   : > { %8601 = vst [vmem:[#allocation45_spill] sm:$0xff] %v7686_v38  ;;  %v3657_v8 = vmax.f32 %v3655_v34, %v7686_v38  ;;  %v3680_v38 = vmax.f32 %v3678_v4, %v7632_v9 }
 0x872   : > { %v7688_v51 = vpop.f32.mrf.mxu0 }
 0x873   : > { %v3682_v50 = vmax.f32 %v3680_v38, %v7640_v30  ;;  %v3689_v38 = vmax.f32 %v3687_v60, %v7668_v0 }
 0x874   : > { %v7690_v62 = vpop.f32.mrf.mxu0 }
 0x875   : > { %8602 = vst [vmem:[#allocation16_spill] sm:$0xff] %v7690_v62  ;;  %v3658_v22 = vmax.f32 %v3656_v61, %v7690_v62  ;;  %v3684_v4 = vmax.f32 %v3682_v50, %v7648_v36 }
 0x876   : > { %v7692_v2 = vpop.f32.mrf.mxu0 }
 0x877   : > { %v3686_v11 = vmax.f32 %v3684_v4, %v7656_v59 }
 0x878   : > { %v7694_v20 = vpop.f32.mrf.mxu0 }
 0x879   : > { %v3659_v18 = vmax.f32 %v3657_v8, %v7694_v20  ;;  %v3688_v49 = vmax.f32 %v3686_v11, %v7664_v33 }
 0x87a   : > { %v7696_v6 = vpop.f32.mrf.mxu0 }
 0x87c   : > { %v7698_v46 = vpop.f32.mrf.mxu0 }
 0x87d   : > { %v3660_v47 = vmax.f32 %v3658_v22, %v7698_v46 }
 0x87e   : > { %v7700_v53 = vpop.f32.mrf.mxu0 }
 0x880   : > { %v7702_v29 = vpop.f32.mrf.mxu0 }
 0x881   : > { %v3661_v34 = vmax.f32 %v3659_v18, %v7702_v29 }
 0x882   : > { %v7708_v35 = vpop.f32.mrf.mxu0 }
 0x884   : > { %v7712_v13 = vpop.f32.mrf.mxu0 }
 0x885   : > { %v3662_v61 = vmax.f32 %v3660_v47, %v7712_v13 }
 0x886   : > { %v7716_v26 = vpop.f32.mrf.mxu0 }
 0x888   : > { %v7720_v52 = vpop.f32.mrf.mxu0 }
 0x889   : > { %v3663_v8 = vmax.f32 %v3661_v34, %v7720_v52 }
 0x88a   : > { %v7724_v48 = vpop.f32.mrf.mxu0 }
 0x88c   : > { %v7728_v15 = vpop.f32.mrf.mxu0 }
 0x88d   : > { %v3664_v22 = vmax.f32 %v3662_v61, %v7728_v15 }
 0x88e   : > { %v7732_v12 = vpop.f32.mrf.mxu0 }
 0x890   : > { %v7736_v32 = vpop.f32.mrf.mxu0 }
 0x891   : > { %8603 = vst [vmem:[#allocation36_spill] sm:$0xff] %v7736_v32  ;;  %v3665_v18 = vmax.f32 %v3663_v8, %v7736_v32  ;;  %v3691_v8 = vmax.f32 %v3689_v38, %v7676_v10 }
 0x892   : > { %v7740_v39 = vpop.f32.mrf.mxu0 }
 0x893   : > { %v3693_v50 = vmax.f32 %v3691_v8, %v7684_v7 }
 0x894   : > { %v7746_v55 = vpop.f32.mrf.mxu0 }
 0x895   : > { %8604 = vst [vmem:[#allocation46_spill] sm:$0xff] %v7746_v55  ;;  %v3666_v47 = vmax.f32 %v3664_v22, %v7746_v55  ;;  %v3690_v55 = vmax.f32 %v3688_v49, %v7672_v27 }
 0x896   : > { %v7753_v3 = vpop.f32.mrf.mxu0 }
 0x897   : > { %v3692_v17 = vmax.f32 %v3690_v55, %v7680_v1 }
 0x898   : > { %v7759_v62 = vpop.f32.mrf.mxu0 }
 0x899   : > { %v3667_v34 = vmax.f32 %v3665_v18, %v7759_v62  ;;  %v3695_v18 = vmax.f32 %v3693_v50, %v7692_v2  ;;  %v3694_v4 = vmax.f32 %v3692_v17, %v7688_v51 }
 0x89a   : > { %v7765_v16 = vpop.f32.mrf.mxu0 }
 0x89b   : > { %v3697_v60 = vmax.f32 %v3695_v18, %v7700_v53  ;;  %v3696_v11 = vmax.f32 %v3694_v4, %v7696_v6 }
 0x89c   : > { %v7771_v5 = vpop.f32.mrf.mxu0 }
 0x89d   : > { %v3668_v61 = vmax.f32 %v3666_v47, %v7771_v5  ;;  %v3698_v49 = vmax.f32 %v3696_v11, %v7708_v35 }
 0x89f   : > { %v3669_v30 = vmax.f32 %v3667_v34, %v3668_v61  ;;  %v3699_v61 = vmax.f32 %v3697_v60, %v7716_v26  ;;  %v3700_v55 = vmax.f32 %v3698_v49, %v7724_v48 }
 0x8a1   : > { %v3670_v22 = vrot.slane %v3669_v30, 4  ;;  %v3701_v8 = vmax.f32 %v3699_v61, %v7732_v12  ;;  %v3702_v17 = vmax.f32 %v3700_v55, %v7740_v39 }
 0x8a3   : > { %v3671_v32 = vmax.f32 %v3669_v30, %v3670_v22  ;;  %v7791_v30 = vpop.f32.mrf.mxu0  ;;  %v3703_v22 = vmax.f32 %v3701_v8, %v7753_v3  ;;  %v3704_v18 = vmax.f32 %v3702_v17, %v7765_v16 }
 0x8a5   : > { %v3672_v47 = vrot.slane %v3671_v32, 2 }
 0x8a7   : > { %v3673_v34 = vmax.f32 %v3671_v32, %v3672_v47  ;;  %v3705_v32 = vmax.f32 %v3703_v22, %v7791_v30 }
 0x8a9   : > { %v3674_v38 = vrot.slane %v3673_v34, 1  ;;  %v3706_v11 = vmax.f32 %v3704_v18, %v3705_v32 }
 0x8ab   : > { %v7795_v50 = vmax.f32 %v3673_v34, %v3674_v38  ;;  %v3707_v55 = vrot.slane %v3706_v11, 4 }
 0x8ad   : > { %v3713_v47 = vsub.f32 %v7606_v31, %v7795_v50  ;;  %v3715_v4 = vsub.f32 %v7610_v25, %v7795_v50  ;;  %v3717_v60 = vsub.f32 %v7614_v56, %v7795_v50  ;;  %v3719_v34 = vsub.f32 %v7618_v37, %v7795_v50 }
 0x8ae   : > { %v3721_v49 = vsub.f32 %v7622_v23, %v7795_v50  ;;  %v3723_v31 = vsub.f32 %v7626_v58, %v7795_v50  ;;  %v3725_v56 = vsub.f32 %v7630_v41, %v7795_v50  ;;  %v3708_v17 = vmax.f32 %v3706_v11, %v3707_v55  ;;  %v8605_v23 = vld [vmem:[#allocation54_spill] sm:$0xff] }
 0x8af   : > { %v3777_v61 = vmul.f32 1.442695, %v3713_v47  ;;  %v3781_v38 = vmul.f32 1.442695, %v3715_v4  ;;  %v3785_v8 = vmul.f32 1.442695, %v3717_v60  ;;  %v3727_v37 = vsub.f32 %v7634_v57, %v7795_v50 }
 0x8b0   : > { %v3789_v25 = vmul.f32 1.442695, %v3719_v34  ;;  %v3793_v22 = vmul.f32 1.442695, %v3721_v49  ;;  %v3797_v32 = vmul.f32 1.442695, %v3723_v31  ;;  %v3729_v18 = vsub.f32 %v8605_v23, %v7795_v50 }
 0x8b1   : > { %4998 = vpow2.f32 %v3777_v61  ;;  %v3801_v47 = vmul.f32 1.442695, %v3725_v56  ;;  %v3731_v58 = vsub.f32 %v7642_v24, %v7795_v50  ;;  %v3709_v4 = vrot.slane %v3708_v17, 2  ;;  %v8606_v60 = vld [vmem:[#allocation57_spill] sm:$0xff] }
 0x8b2   : > { %5000 = vpow2.f32 %v3781_v38  ;;  %v3733_v41 = vsub.f32 %v8606_v60, %v7795_v50  ;;  %v3805_v34 = vmul.f32 1.442695, %v3727_v37  ;;  %v3735_v11 = vsub.f32 %v7650_v14, %v7795_v50  ;;  %v8607_v57 = vld [vmem:[#allocation13_spill] sm:$0xff] }
 0x8b3   : > { %5002 = vpow2.f32 %v3785_v8  ;;  %v3737_v61 = vsub.f32 %v8607_v57, %v7795_v50  ;;  %v3809_v38 = vmul.f32 1.442695, %v3729_v18  ;;  %v3739_v49 = vsub.f32 %v7658_v19, %v7795_v50 }
 0x8b4   : > { %5004 = vpow2.f32 %v3789_v25  ;;  %v3813_v8 = vmul.f32 1.442695, %v3731_v58  ;;  %v3710_v55 = vmax.f32 %v3708_v17, %v3709_v4  ;;  %v3741_v31 = vsub.f32 %v7662_v28, %v7795_v50 }
 0x8b5   : > { %5006 = vpow2.f32 %v3793_v22  ;;  %v3817_v25 = vmul.f32 1.442695, %v3733_v41  ;;  %v3757_v14 = vsub.f32 %v7694_v20, %v7795_v50  ;;  %v3821_v22 = vmul.f32 1.442695, %v3735_v11 }
 0x8b6   : > { %5008 = vpow2.f32 %v3797_v32  ;;  %v3759_v37 = vsub.f32 %v7698_v46, %v7795_v50  ;;  %v3825_v19 = vmul.f32 1.442695, %v3737_v61  ;;  %v3761_v28 = vsub.f32 %v7702_v29, %v7795_v50 }
 0x8b7   : > { %5010 = vpow2.f32 %v3801_v47  ;;  %v3829_v23 = vmul.f32 1.442695, %v3739_v49  ;;  %v3711_v18 = vrot.slane %v3710_v55, 1  ;;  %v3763_v20 = vsub.f32 %v7712_v13, %v7795_v50  ;;  %v8609_v13 = vld [vmem:[#allocation12_spill] sm:$0xff] }
 0x8b8   : > { %5012 = vpow2.f32 %v3805_v34  ;;  %v3833_v47 = vmul.f32 1.442695, %v3741_v31  ;;  %v3765_v4 = vsub.f32 %v7720_v52, %v7795_v50  ;;  %v3865_v60 = vmul.f32 1.442695, %v3757_v14  ;;  %v8610_v14 = vld [vmem:[#allocation39_spill] sm:$0xff] }
 0x8b9   : > { %5014 = vpow2.f32 %v3809_v38  ;;  %v3767_v29 = vsub.f32 %v7728_v15, %v7795_v50  ;;  %v3869_v41 = vmul.f32 1.442695, %v3759_v37  ;;  %v3743_v57 = vsub.f32 %v8609_v13, %v7795_v50 }
 0x8ba   : > { %5016 = vpow2.f32 %v3813_v8  ;;  %v3873_v61 = vmul.f32 1.442695, %v3761_v28  ;;  %v7858_v38 = vmax.f32 %v3710_v55, %v3711_v18  ;;  %v3745_v52 = vsub.f32 %v7670_v40, %v7795_v50 }
 0x8bb   : > { %5018 = vpow2.f32 %v3817_v25  ;;  %v3877_v49 = vmul.f32 1.442695, %v3763_v20  ;;  %v3747_v31 = vsub.f32 %v7674_v54, %v7795_v50  ;;  %v3881_v25 = vmul.f32 1.442695, %v3765_v4  ;;  %v8611_v20 = vld [vmem:[#allocation14_spill] sm:$0xff] }
 0x8bc   : > { %5020 = vpow2.f32 %v3821_v22  ;;  %v3749_v22 = vsub.f32 %v8610_v14, %v7795_v50  ;;  %v3885_v55 = vmul.f32 1.442695, %v3767_v29  ;;  %v3837_v40 = vmul.f32 1.442695, %v3743_v57 }
 0x8bd   : > { %5022 = vpow2.f32 %v3825_v19  ;;  %v3841_v28 = vmul.f32 1.442695, %v3745_v52 }
 0x8be   : > { %v7828_v24 = vpop.eup %4998  ;;  %5024 = vpow2.f32 %v3829_v23  ;;  %v3716_v23 = vsub.f32 %v7612_v44, %v7858_v38  ;;  %v3849_v4 = vmul.f32 1.442695, %v3749_v22 }
 0x8bf   : > { %v7832_v56 = vpop.eup %5000  ;;  %5026 = vpow2.f32 %v3833_v47  ;;  %v3751_v47 = vsub.f32 %v8611_v20, %v7795_v50 }
 0x8c0   : > { %8608 = vst [vmem:[#allocation40_spill] sm:$0xff] %v7832_v56  ;;  %v3905_v17 = vadd.f32 %v7832_v56, %v7828_v24  ;;  %v7840_v32 = vpop.eup %5002  ;;  %5028 = vpow2.f32 %v3865_v60 }
 0x8c1   : > { %v7847_v58 = vpop.eup %5004  ;;  %5030 = vpow2.f32 %v3869_v41  ;;  %v8612_v41 = vld [vmem:[#allocation45_spill] sm:$0xff] }
 0x8c2   : > { %v3906_v46 = vadd.f32 %v7840_v32, %v3905_v17  ;;  %v7854_v11 = vpop.eup %5006  ;;  %5032 = vpow2.f32 %v3873_v61  ;;  %v3714_v17 = vsub.f32 %v7608_v45, %v7858_v38  ;;  %v3718_v45 = vsub.f32 %v7616_v42, %v7858_v38  ;;  %v8613_v61 = vld [vmem:[#allocation34_spill] sm:$0xff]  ;;  %v8614_v42 = vld [vmem:[#allocation16_spill] sm:$0xff] }
 0x8c3   : > { %v7863_v8 = vpop.eup %5008  ;;  %5034 = vpow2.f32 %v3877_v49  ;;  %v3720_v52 = vsub.f32 %v8613_v61, %v7858_v38  ;;  %v3783_v49 = vmul.f32 1.442695, %v3716_v23 }
 0x8c4   : > { %v3907_v34 = vadd.f32 %v7847_v58, %v3906_v46  ;;  %v7870_v19 = vpop.eup %5010  ;;  %v3845_v46 = vmul.f32 1.442695, %v3747_v31  ;;  %5036 = vpow2.f32 %v3881_v25  ;;  %v3779_v44 = vmul.f32 1.442695, %v3714_v17 }
 0x8c5   : > { %v7877_v18 = vpop.eup %5012  ;;  %5038 = vpow2.f32 %v3885_v55  ;;  %v3755_v31 = vsub.f32 %v8614_v42, %v7795_v50  ;;  %v3853_v25 = vmul.f32 1.442695, %v3751_v47  ;;  %v3722_v55 = vsub.f32 %v7624_v63, %v7858_v38 }
 0x8c6   : > { %v3908_v15 = vadd.f32 %v7854_v11, %v3907_v34  ;;  %v7884_v29 = vpop.eup %5014  ;;  %v3753_v34 = vsub.f32 %v8612_v41, %v7795_v50  ;;  %5040 = vpow2.f32 %v3837_v40  ;;  %v3726_v47 = vsub.f32 %v7632_v9, %v7858_v38 }
 0x8c7   : > { %v7888_v13 = vpop.eup %5016  ;;  %5042 = vpow2.f32 %v3841_v28  ;;  %v8615_v28 = vld [vmem:[#allocation65_spill] sm:$0xff]  ;;  %v3861_v63 = vmul.f32 1.442695, %v3755_v31  ;;  %v3795_v61 = vmul.f32 1.442695, %v3722_v55  ;;  %v3738_v9 = vsub.f32 %v7656_v59, %v7858_v38 }
 0x8c8   : > { %v3909_v37 = vadd.f32 %v7863_v8, %v3908_v15  ;;  %v7893_v15 = vpop.eup %5018  ;;  %5044 = vpow2.f32 %v3845_v46  ;;  %v3857_v17 = vmul.f32 1.442695, %v3753_v34  ;;  %v3791_v46 = vmul.f32 1.442695, %v3720_v52 }
 0x8c9   : > { %v7897_v14 = vpop.eup %5020  ;;  %5046 = vpow2.f32 %v3849_v4  ;;  %v3740_v52 = vsub.f32 %v7660_v21, %v7858_v38  ;;  %v3744_v59 = vsub.f32 %v7668_v0, %v7858_v38 }
 0x8ca   : > { %v3910_v54 = vadd.f32 %v7870_v19, %v3909_v37  ;;  %v3787_v37 = vmul.f32 1.442695, %v3718_v45  ;;  %v7902_v40 = vpop.eup %5022  ;;  %5048 = vpow2.f32 %v3779_v44  ;;  %v8617_v44 = vld [vmem:[#allocation61_spill] sm:$0xff] }
 0x8cb   : > { %v7906_v23 = vpop.eup %5024  ;;  %5050 = vpow2.f32 %v3783_v49 }
 0x8cc   : > { %v3911_v60 = vadd.f32 %v7877_v18, %v3910_v54  ;;  %v3724_v54 = vsub.f32 %v8615_v28, %v7858_v38  ;;  %v7911_v4 = vpop.eup %5026  ;;  %5052 = vpow2.f32 %v3853_v25 }
 0x8cd   : > { %v7915_v41 = vpop.eup %5028  ;;  %5054 = vpow2.f32 %v3787_v37 }
 0x8ce   : > { %v3912_v57 = vadd.f32 %v7884_v29, %v3911_v60  ;;  %v8616_v60 = vld [vmem:[#allocation35_spill] sm:$0xff]  ;;  %v7920_v42 = vpop.eup %5030  ;;  %5056 = vpow2.f32 %v3857_v17  ;;  %v3799_v49 = vmul.f32 1.442695, %v3724_v54  ;;  %v3742_v17 = vsub.f32 %v7664_v33, %v7858_v38 }
 0x8cf   : > { %v3728_v45 = vsub.f32 %v8616_v60, %v7858_v38  ;;  %v7926_v31 = vpop.eup %5032  ;;  %5058 = vpow2.f32 %v3791_v46  ;;  %v3827_v33 = vmul.f32 1.442695, %v3738_v9 }
 0x8d0   : > { %v3913_v22 = vadd.f32 %v7888_v13, %v3912_v57  ;;  %v3730_v57 = vsub.f32 %v8617_v44, %v7858_v38  ;;  %v7931_v55 = vpop.eup %5034  ;;  %5060 = vpow2.f32 %v3861_v63  ;;  %v8618_v63 = vld [vmem:[#allocation60_spill] sm:$0xff] }
 0x8d1   : > { %v3807_v21 = vmul.f32 1.442695, %v3728_v45  ;;  %v7937_v28 = vpop.eup %5036  ;;  %5062 = vpow2.f32 %v3795_v61  ;;  %v3732_v60 = vsub.f32 %v8618_v63, %v7858_v38  ;;  %v3831_v45 = vmul.f32 1.442695, %v3740_v52 }
 0x8d2   : > { %v3914_v20 = vadd.f32 %v7893_v15, %v3913_v22  ;;  %v3803_v22 = vmul.f32 1.442695, %v3726_v47  ;;  %v7942_v46 = vpop.eup %5038  ;;  %5064 = vpow2.f32 %v3799_v49  ;;  %v3734_v61 = vsub.f32 %v7648_v36, %v7858_v38 }
 0x8d3   : > { %v3736_v49 = vsub.f32 %v7652_v43, %v7858_v38  ;;  %v3815_v47 = vmul.f32 1.442695, %v3732_v60  ;;  %v8624_v60 = vld [vmem:[#allocation46_spill] sm:$0xff] }
 0x8d4   : > { %v3915_v34 = vadd.f32 %v7897_v14, %v3914_v20  ;;  %v3811_v20 = vmul.f32 1.442695, %v3730_v57  ;;  %5066 = vpow2.f32 %v3803_v22  ;;  %v3839_v22 = vmul.f32 1.442695, %v3744_v59 }
 0x8d5   : > { %5068 = vpow2.f32 %v3807_v21  ;;  %v3823_v59 = vmul.f32 1.442695, %v3736_v49 }
 0x8d6   : > { %v3916_v25 = vadd.f32 %v7902_v40, %v3915_v34  ;;  %v7946_v34 = vpop.eup %5040  ;;  %5070 = vpow2.f32 %v3811_v20 }
 0x8d7   : > { %v7951_v57 = vpop.eup %5042  ;;  %5072 = vpow2.f32 %v3827_v33 }
 0x8d8   : > { %v3917_v54 = vadd.f32 %v7906_v23, %v3916_v25  ;;  %8619 = vst [vmem:[#allocation9_spill] sm:$0xff] %v7951_v57  ;;  %v3835_v25 = vmul.f32 1.442695, %v3742_v17  ;;  %v7955_v37 = vpop.eup %5044  ;;  %5074 = vpow2.f32 %v3831_v45  ;;  %v8622_v17 = vld [vmem:[#allocation36_spill] sm:$0xff]  ;;  %v3771_v45 = vsub.f32 %v8624_v60, %v7795_v50 }
 0x8d9   : > { %8620 = vst [vmem:[#allocation23_spill] sm:$0xff] %v7955_v37  ;;  %v7960_v52 = vpop.eup %5046  ;;  %v3769_v21 = vsub.f32 %v8622_v17, %v7795_v50  ;;  %v3766_v17 = vsub.f32 %v7724_v48, %v7858_v38 }
 0x8da   : > { %v3918_v0 = vadd.f32 %v7911_v4, %v3917_v54  ;;  %8621 = vst [vmem:[#allocation25_spill] sm:$0xff] %v7960_v52  ;;  %v7962_v54 = vpop.eup %5048  ;;  %5076 = vpow2.f32 %v3835_v25 }
 0x8db   : > { %v7965_v36 = vpop.eup %5050  ;;  %5078 = vpow2.f32 %v3839_v22  ;;  %v3889_v22 = vmul.f32 1.442695, %v3769_v21  ;;  %v3775_v21 = vsub.f32 %v7771_v5, %v7795_v50 }
 0x8dc   : > { %v3919_v9 = vadd.f32 %v7946_v34, %v3918_v0  ;;  %v3819_v0 = vmul.f32 1.442695, %v3734_v61  ;;  %v7969_v44 = vpop.eup %5052  ;;  %v3942_v20 = vadd.f32 %v7965_v36, %v7962_v54  ;;  %v3773_v61 = vsub.f32 %v7759_v62, %v7795_v50 }
 0x8dd   : > { %8623 = vst [vmem:[#allocation37_spill] sm:$0xff] %v7969_v44  ;;  %v7974_v33 = vpop.eup %5054  ;;  %5080 = vpow2.f32 %v3815_v47  ;;  %v3748_v50 = vsub.f32 %v7676_v10, %v7858_v38 }
 0x8de   : > { %v3920_v63 = vadd.f32 %v7951_v57, %v3919_v9  ;;  %v7978_v9 = vpop.eup %5056  ;;  %5082 = vpow2.f32 %v3819_v0  ;;  %v3768_v57 = vsub.f32 %v7732_v12, %v7858_v38  ;;  %v3897_v48 = vmul.f32 1.442695, %v3773_v61 }
 0x8df   : > { %v7984_v49 = vpop.eup %5058  ;;  %5084 = vpow2.f32 %v3823_v59  ;;  %v3746_v12 = vsub.f32 %v7672_v27, %v7858_v38  ;;  %v3883_v59 = vmul.f32 1.442695, %v3766_v17 }
 0x8e0   : > { %v3921_v43 = vadd.f32 %v7955_v37, %v3920_v63  ;;  %v3943_v63 = vadd.f32 %v7974_v33, %v3942_v20  ;;  %v7988_v37 = vpop.eup %5060  ;;  %5086 = vpow2.f32 %v3889_v22  ;;  %v3750_v22 = vsub.f32 %v7680_v1, %v7858_v38 }
 0x8e1   : > { %8625 = vst [vmem:[#allocation42_spill] sm:$0xff] %v7988_v37  ;;  %v7994_v47 = vpop.eup %5062 }
 0x8e2   : > { %v3922_v25 = vadd.f32 %v7960_v52, %v3921_v43  ;;  %v3944_v62 = vadd.f32 %v7984_v49, %v3943_v63  ;;  %v3893_v43 = vmul.f32 1.442695, %v3771_v45  ;;  %v7996_v20 = vpop.eup %5064 }
 0x8e4   : > { %v3923_v60 = vadd.f32 %v7969_v44, %v3922_v25  ;;  %v3945_v52 = vadd.f32 %v7994_v47, %v3944_v62  ;;  %v8002_v25 = vpop.eup %5066  ;;  %v3887_v44 = vmul.f32 1.442695, %v3768_v57  ;;  %5088 = vpow2.f32 %v3893_v43 }
 0x8e5   : > { %v8006_v63 = vpop.eup %5068  ;;  %5090 = vpow2.f32 %v3897_v48  ;;  %v3843_v43 = vmul.f32 1.442695, %v3746_v12  ;;  %v3847_v48 = vmul.f32 1.442695, %v3748_v50  ;;  %v3851_v12 = vmul.f32 1.442695, %v3750_v22 }
 0x8e6   : > { %v3924_v0 = vadd.f32 %v7978_v9, %v3923_v60  ;;  %v3946_v56 = vadd.f32 %v7996_v20, %v3945_v52  ;;  %v8010_v5 = vpop.eup %5070  ;;  %v3901_v60 = vmul.f32 1.442695, %v3775_v21  ;;  %5092 = vpow2.f32 %v3883_v59 }
 0x8e7   : > { %v5073_v61 = vpop.eup %5072  ;;  %5094 = vpow2.f32 %v3887_v44  ;;  %v3752_v21 = vsub.f32 %v7684_v7, %v7858_v38  ;;  %v3754_v44 = vsub.f32 %v7688_v51, %v7858_v38 }
 0x8e8   : > { %v3925_v45 = vadd.f32 %v7988_v37, %v3924_v0  ;;  %v3947_v17 = vadd.f32 %v8002_v25, %v3946_v56  ;;  %v5075_v62 = vpop.eup %5074  ;;  %5096 = vpow2.f32 %v3901_v60  ;;  %v3758_v37 = vsub.f32 %v7696_v6, %v7858_v38 }
 0x8e9   : > { %v8018_v57 = vpop.eup %5076  ;;  %5098 = vpow2.f32 %v3843_v43  ;;  %v3992_v60 = vpack.c.bf16 %v5075_v62, %v5073_v61  ;;  %v3855_v22 = vmul.f32 1.442695, %v3752_v21  ;;  %v3776_v43 = vsub.f32 %v7791_v30, %v7858_v38 }
 0x8ea   : > { %v3926_v27 = vadd.f32 %v7915_v41, %v3925_v45  ;;  %v3948_v10 = vadd.f32 %v8006_v63, %v3947_v17  ;;  %v8022_v0 = vpop.eup %5078  ;;  %5100 = vpow2.f32 %v3847_v48  ;;  %v3760_v21 = vsub.f32 %v7700_v53, %v7858_v38 }
 0x8eb   : > { %v3994_v59 = vpack.c.bf16 %v8022_v0, %v8018_v57  ;;  %v5081_v45 = vpop.eup %5080  ;;  %5102 = vpow2.f32 %v3851_v12  ;;  %v3770_v30 = vsub.f32 %v7740_v39, %v7858_v38  ;;  %v3772_v53 = vsub.f32 %v7753_v3, %v7858_v38 }
 0x8ec   : > { %v3927_v52 = vadd.f32 %v7920_v42, %v3926_v27  ;;  %v3949_v1 = vadd.f32 %v8010_v5, %v3948_v10  ;;  %v3993_v27 = vpack.c.bf16 %v7946_v34, %v7911_v4  ;;  %v5083_v17 = vpop.eup %5082  ;;  %v3756_v10 = vsub.f32 %v7692_v2, %v7858_v38 }
 0x8ed   : > { %4011 = vmatprep.subr.bf16.mxu1 %v3994_v59  ;;  %v3774_v34 = vsub.f32 %v7765_v16, %v7858_v38  ;;  %v3991_v2 = vpack.c.bf16 %v7906_v23, %v7902_v40  ;;  %v3762_v16 = vsub.f32 %v7708_v35, %v7858_v38  ;;  %5104 = vpow2.f32 %v3855_v22 }
 0x8ee   : > { %v3928_v56 = vadd.f32 %v7926_v31, %v3927_v52  ;;  %v3950_v50 = vadd.f32 %v5081_v45, %v3949_v1  ;;  %v5085_v52 = vpop.eup %5084  ;;  %4012 = vmatpush1.bf16.msra.mxu1 %v3993_v27  ;;  %v3863_v48 = vmul.f32 1.442695, %v3756_v10  ;;  %v3867_v23 = vmul.f32 1.442695, %v3758_v37 }
 0x8ef   : > { %4013 = vmatprep.subr.bf16.mxu1 %v3992_v60  ;;  %v3990_v59 = vpack.c.bf16 %v5085_v52, %v5083_v17  ;;  %v8047_v27 = vpop.eup %5086  ;;  %v3903_v35 = vmul.f32 1.442695, %v3776_v43  ;;  %v3989_v39 = vpack.c.bf16 %v7897_v14, %v7893_v15  ;;  %v3988_v37 = vpack.c.bf16 %v5081_v45, %v8010_v5 }
 0x8f0   : > { %v3929_v7 = vadd.f32 %v7931_v55, %v3928_v56  ;;  %v3951_v4 = vadd.f32 %v5083_v17, %v3950_v50  ;;  %v3859_v56 = vmul.f32 1.442695, %v3754_v44  ;;  %v3764_v10 = vsub.f32 %v7716_v26, %v7858_v38 }
 0x8f1   : > { %v8055_v44 = vpop.eup %5088  ;;  %v3871_v3 = vmul.f32 1.442695, %v3760_v21  ;;  %v3891_v5 = vmul.f32 1.442695, %v3770_v30  ;;  %v3895_v45 = vmul.f32 1.442695, %v3772_v53  ;;  %v3987_v26 = vpack.c.bf16 %v7888_v13, %v7884_v29 }
 0x8f2   : > { %v3930_v51 = vadd.f32 %v7937_v28, %v3929_v7  ;;  %v3952_v6 = vadd.f32 %v5085_v52, %v3951_v4  ;;  %4014 = vmatpush1.bf16.msra.mxu1 %v3991_v2  ;;  %v8058_v17 = vpop.eup %5090  ;;  %v3899_v7 = vmul.f32 1.442695, %v3774_v34  ;;  %5106 = vpow2.f32 %v3859_v56 }
 0x8f3   : > { %4015 = vmatprep.subr.bf16.mxu1 %v3990_v59  ;;  %v8064_v50 = vpop.eup %5092  ;;  %5108 = vpow2.f32 %v3863_v48  ;;  %v3986_v34 = vpack.c.bf16 %v8006_v63, %v8002_v25  ;;  %v3879_v43 = vmul.f32 1.442695, %v3764_v10  ;;  %v3985_v29 = vpack.c.bf16 %v7877_v18, %v7870_v19 }
 0x8f4   : > { %v3931_v1 = vadd.f32 %v7942_v46, %v3930_v51  ;;  %v3953_v12 = vadd.f32 %v5073_v61, %v3952_v6  ;;  %v8068_v61 = vpop.eup %5094  ;;  %v3875_v51 = vmul.f32 1.442695, %v3762_v16  ;;  %5110 = vpow2.f32 %v3867_v23 }
 0x8f5   : > { %v4006_v14 = vpack.c.bf16 %v8068_v61, %v8064_v50  ;;  %5112 = vpow2.f32 %v3899_v7  ;;  %v3984_v25 = vpack.c.bf16 %v7996_v20, %v7994_v47  ;;  %v3983_v6 = vpack.c.bf16 %v7863_v8, %v7854_v11 }
 0x8f6   : > { %v3932_v40 = vadd.f32 %v8047_v27, %v3931_v1  ;;  %v3954_v52 = vadd.f32 %v5075_v62, %v3953_v12  ;;  %4016 = vmatpush1.bf16.msra.mxu1 %v3989_v39  ;;  %v5097_v62 = vpop.eup %5096  ;;  %5114 = vpow2.f32 %v3903_v35  ;;  %v3982_v21 = vpack.c.bf16 %v7984_v49, %v7974_v33  ;;  %v8626_v49 = vld [vmem:[#allocation40_spill] sm:$0xff] }
 0x8f7   : > { %4017 = vmatprep.subr.bf16.mxu1 %v3988_v37  ;;  %5116 = vpow2.f32 %v3871_v3  ;;  %v3981_v47 = vpack.c.bf16 %v7847_v58, %v7840_v32  ;;  %v3979_v12 = vpack.c.bf16 %v8626_v49, %v7828_v24  ;;  %v4007_v37 = vpack.c.bf16 %v8055_v44, %v8047_v27 }
 0x8f8   : > { %v3933_v60 = vadd.f32 %v8055_v44, %v3932_v40  ;;  %v3955_v15 = vadd.f32 %v8018_v57, %v3954_v52  ;;  %v8083_v57 = vpop.eup %5098  ;;  %5118 = vpow2.f32 %v3875_v51  ;;  %v3980_v40 = vpack.c.bf16 %v7965_v36, %v7962_v54 }
 0x8f9   : > { %v8086_v2 = vpop.eup %5100  ;;  %5120 = vpow2.f32 %v3891_v5  ;;  %v8628_v27 = vpack.c.bf16 %v7931_v55, %v7926_v31  ;;  %v8632_v5 = vld [vmem:[#allocation37_spill] sm:$0xff] }
 0x8fa   : > { %v3934_v22 = vadd.f32 %v8058_v17, %v3933_v60  ;;  %v3956_v4 = vadd.f32 %v8022_v0, %v3955_v15  ;;  %4018 = vmatpush1.bf16.msra.mxu1 %v3987_v26  ;;  %5122 = vpow2.f32 %v3895_v45  ;;  %v5103_v63 = vpop.eup %5102  ;;  %v4009_v60 = vpack.c.bf16 %v5097_v62, %v8058_v17  ;;  %v8633_v55 = vld [vmem:[#allocation9_spill] sm:$0xff]  ;;  %v8634_v26 = vld [vmem:[#allocation23_spill] sm:$0xff] }
 0x8fb   : > { %4019 = vmatprep.subr.bf16.mxu1 %v3986_v34  ;;  %5124 = vpow2.f32 %v3879_v43  ;;  %v5105_v1 = vpop.eup %5104  ;;  %v8627_v17 = vpack.c.bf16 %v7942_v46, %v7937_v28  ;;  %v8631_v46 = vld [vmem:[#allocation25_spill] sm:$0xff]  ;;  %v3996_v31 = vpack.c.bf16 %v8086_v2, %v8083_v57  ;;  %v8637_v43 = vld [vmem:[#allocation28_spill] sm:$0xff] }
 0x8fc   : > { %v8078_v38 = vadd.f32 %v5097_v62, %v3934_v22  ;;  %v3957_v56 = vadd.f32 %v8083_v57, %v3956_v4  ;;  %v3998_v28 = vpack.c.bf16 %v5105_v1, %v5103_v63  ;;  %v3997_v45 = vpack.c.bf16 %v8632_v5, %v8631_v46  ;;  %v4115_v57 = vld [vmem:[%s8216_s6] sm:$0xf]  ;;  %v8660_v5 = vld [vmem:[#allocation51_spill] sm:$0xff] }
 0x8fd   : > { %v3995_v4 = vpack.c.bf16 %v8634_v26, %v8633_v55  ;;  %4118 = vperm.xlu1 %4598, %v4115_v57   ;;  %v8663_v55 = vld [vmem:[#allocation8_spill] sm:$0xff] }
 0x8fe   : > { %v3958_v13 = vadd.f32 %v8086_v2, %v3957_v56  ;;  %4020 = vmatpush1.bf16.msra.mxu1 %v3985_v29  ;;  %v8640_v29 = vld [vmem:[#allocation32_spill] sm:$0xff] }
 0x8ff   : > { %4021 = vmatprep.subr.bf16.mxu1 %v3984_v25  ;;  %v5107_v19 = vpop.eup %5106 }
 0x900   : > { %v3959_v0 = vadd.f32 %v5103_v63, %v3958_v13  ;;  %v5109_v18 = vpop.eup %5108  ;;  %v8641_v13 = vld [vmem:[#allocation30_spill] sm:$0xff]  ;;  %v8643_v63 = vmov 0.0  }
 0x901   : > { %v5111_v30 = vpop.eup %5110  ;;  %v4000_v44 = vpack.c.bf16 %v5109_v18, %v5107_v19  ;;  %v8642_v25 = vpack.c.bf16 %v8640_v29, %v8641_v13 }
 0x902   : > { %v3960_v59 = vadd.f32 %v5105_v1, %v3959_v0  ;;  %4022 = vmatpush1.bf16.msra.mxu1 %v3983_v6  ;;  %v5113_v20 = vpop.eup %5112  ;;  %v3936_v0 = vrot.slane %v8078_v38, 4 }
 0x903   : > { %4023 = vmatprep.subr.bf16.mxu1 %v3982_v21  ;;  %v5115_v23 = vpop.eup %5114 }
 0x904   : > { %v3961_v16 = vadd.f32 %v5107_v19, %v3960_v59  ;;  %v5117_v11 = vpop.eup %5116  ;;  %v4010_v35 = vpack.c.bf16 %v5115_v23, %v5113_v20  ;;  %v3937_v6 = vadd.f32 %v3936_v0, %v8078_v38 }
 0x905   : > { %v5119_v33 = vpop.eup %5118  ;;  %v4002_v62 = vpack.c.bf16 %v5117_v11, %v5111_v30 }
 0x906   : > { %v3962_v48 = vadd.f32 %v5109_v18, %v3961_v16  ;;  %4024 = vmatpush1.bf16.msra.mxu1 %v3981_v47  ;;  %v5121_v53 = vpop.eup %5120  ;;  %v3938_v21 = vrot.slane %v3937_v6, 2 }
 0x907   : > { %4025 = vmatprep.subr.bf16.mxu1 %v3980_v40  ;;  %v5123_v39 = vpop.eup %5122 }
 0x908   : > { %v3963_v8 = vadd.f32 %v5111_v30, %v3962_v48  ;;  %v5125_v58 = vpop.eup %5124  ;;  %v4008_v36 = vpack.c.bf16 %v5123_v39, %v5121_v53  ;;  %v3939_v18 = vadd.f32 %v3938_v21, %v3937_v6 }
 0x909   : > { %v4004_v51 = vpack.c.bf16 %v5125_v58, %v5119_v33 }
 0x90a   : > { %v3964_v7 = vadd.f32 %v5117_v11, %v3963_v8  ;;  %4026 = vmatpush1.bf16.msra.mxu1 %v3979_v12  ;;  %v3940_v30 = vrot.slane %v3939_v18, 1 }
 0x90b   : > { %4027 = vmatprep.subr.bf16.mxu1 %v4010_v35 }
 0x90c   : > { %v3965_v32 = vadd.f32 %v5119_v33, %v3964_v7 }
 0x90e   : > { %v3966_v54 = vadd.f32 %v5125_v58, %v3965_v32  ;;  %4028 = vmatpush2.bf16.msra.mxu1 %v4009_v60 }
 0x90f   : > { %4029 = vmatprep.subr.bf16.mxu1 %v4008_v36 }
 0x910   : > { %v3967_v52 = vadd.f32 %v8064_v50, %v3966_v54  ;;  %v8629_v50 = vpack.c.bf16 %v7920_v42, %v7915_v41  ;;  %v8635_v41 = vld [vmem:[#allocation31_spill] sm:$0xff]  ;;  %v8636_v42 = vld [vmem:[#allocation33_spill] sm:$0xff] }
 0x911   : > { %v968_v34 = vpack.c.bf16 %v8636_v42, %v8635_v41  ;;  %v8665_v41 = vld [vmem:[#allocation19_spill] sm:$0xff]  ;;  %v8666_v42 = vld [vmem:[#allocation10_spill] sm:$0xff] }
 0x912   : > { %v3968_v24 = vadd.f32 %v8068_v61, %v3967_v52  ;;  %4030 = vmatpush2.bf16.msra.mxu1 %v4007_v37  ;;  %v8630_v61 = vld [vmem:[#allocation42_spill] sm:$0xff]  ;;  %v8644_v52 = vld [vmem:[#allocation17_spill] sm:$0xff]  ;;  %v8645_v37 = vld [vmem:[#allocation15_spill] sm:$0xff] }
 0x913   : > { %4031 = vmatprep.subr.bf16.mxu1 %v4006_v14  ;;  %v3999_v14 = vpack.c.bf16 %v8630_v61, %v7978_v9  ;;  %v8638_v9 = vld [vmem:[#allocation26_spill] sm:$0xff]  ;;  %v8657_v61 = vld [vmem:[#allocation63_spill] sm:$0xff] }
 0x914   : > { %v3969_v10 = vadd.f32 %v5121_v53, %v3968_v24  ;;  %v8639_v56 = vpack.c.bf16 %v8637_v43, %v8638_v9  ;;  %v8646_v24 = vld [vmem:[#allocation47_spill] sm:$0xff]  ;;  %v8667_v43 = vld [vmem:[#allocation6_spill] sm:$0xff] }
 0x915   : > { %v8668_v9 = vld [vmem:[#allocation11_spill] sm:$0xff] }
 0x916   : > { %v3970_v3 = vadd.f32 %v5123_v39, %v3969_v10  ;;  %4032 = vmatpush2.bf16.msra.mxu1 %v8627_v17  ;;  %v8647_v10 = vld [vmem:[#allocation38_spill] sm:$0xff]  ;;  %v8650_v17 = vld [vmem:[#allocation29_spill] sm:$0xff] }
 0x917   : > { %4033 = vmatprep.subr.bf16.mxu1 %v4004_v51  ;;  %v8649_v51 = vld [vmem:[#allocation59_spill] sm:$0xff] }
 0x918   : > { %v3971_v22 = vadd.f32 %v5113_v20, %v3970_v3  ;;  %v3941_v20 = vadd.f32 %v3940_v30, %v3939_v18  ;;  %v8648_v3 = vld [vmem:[#allocation58_spill] sm:$0xff] }
 0x91a   : > { %v3972_v15 = vadd.f32 %v5115_v23, %v3971_v22  ;;  %4034 = vmatpush2.bf16.msra.mxu1 %v8628_v27  ;;  %v8651_v22 = vld [vmem:[#allocation27_spill] sm:$0xff] }
 0x91b   : > { %4035 = vmatprep.subr.bf16.mxu1 %v4002_v62  ;;  %v8653_v62 = vld [vmem:[#allocation56_spill] sm:$0xff]  ;;  %v8654_v27 = vld [vmem:[#allocation55_spill] sm:$0xff] }
 0x91c   : > { %v3973_v2 = vrot.slane %v3972_v15, 4 }
 0x91e   : > { %4036 = vmatpush2.bf16.msra.mxu1 %v8629_v50  ;;  %v3974_v1 = vadd.f32 %v3973_v2, %v3972_v15  ;;  %v8652_v15 = vld [vmem:[#allocation64_spill] sm:$0xff] }
 0x91f   : > { %4037 = vmatprep.subr.bf16.mxu1 %v4000_v44  ;;  %v8655_v44 = vld [vmem:[#allocation53_spill] sm:$0xff]  ;;  %v8656_v50 = vld [vmem:[#allocation52_spill] sm:$0xff] }
 0x920   : > { %v3975_v59 = vrot.slane %v3974_v1, 2 }
 0x922   : > { %4038 = vmatpush2.bf16.msra.mxu1 %v3999_v14  ;;  %v3976_v19 = vadd.f32 %v3975_v59, %v3974_v1  ;;  %v8658_v14 = vld [vmem:[#allocation50_spill] sm:$0xff] }
 0x923   : > { %4039 = vmatprep.subr.bf16.mxu1 %v3998_v28  ;;  %v8659_v28 = vld [vmem:[#allocation7_spill] sm:$0xff] }
 0x924   : > { %v3977_v16 = vrot.slane %v3976_v19, 1  ;;  %v1909_v46 = vmul.f32 %v8659_v28, %v8658_v14  ;;  %v1905_v26 = vmul.f32 %v8659_v28, %v8663_v55 }
 0x926   : > { %4040 = vmatpush2.bf16.msra.mxu1 %v3997_v45  ;;  %v3978_v47 = vadd.f32 %v3977_v16, %v3976_v19  ;;  %v8661_v45 = vld [vmem:[#allocation62_spill] sm:$0xff] }
 0x927   : > { %4041 = vmatprep.subr.bf16.mxu1 %v3996_v31  ;;  %v8662_v31 = vld [vmem:[#allocation49_spill] sm:$0xff] }
 0x928   : > { %5126 = vrcp.f32 %v3978_v47 }
 0x929   : > { %5128 = vrcp.f32 %v3941_v20 }
 0x92a   : > { %4042 = vmatpush2.bf16.msra.mxu1 %v3995_v4  ;;  %v8664_v4 = vld [vmem:[#allocation21_spill] sm:$0xff] }
 0x92d   : > { %4044 = vmatmul.mubr.bf16.vlgmr.msra.gmra.mxu1 %v8639_v56 }
 0x92e   : > { %4053 = vmatprep.mubr.bf16.mxu1 %v968_v34  ;;  %v4082_v34 = vld [vmem:[%s8215_s5] sm:$0xf] }
 0x935   : > { %4054 = vmatmul.mubr.bf16.gmra.mxu1 %v8642_v25  ;;  %v5127_v12 = vpop.eup %5126 }
 0x936   : > { %4185 = vmatprep.mubr.f32.mxu1 %v8643_v63  ;;  %v5129_v38 = vpop.eup %5128 }
 0x978   : > { %v4119_v29 = vpop.permute.xlu1 %4118 }
 0x9ed   : > { %v4045_v48 = vpop.f32.mrf.mxu1 }
 0x9ee   : > { %v4066_v36 = vmul.f32 %v5129_v38, %v4045_v48 }
 0x9ef   : > { %v4047_v40 = vpop.f32.mrf.mxu1 }
 0x9f0   : > { %v4067_v54 = vmul.f32 %v5127_v12, %v4047_v40 }
 0x9f1   : > { %v4049_v23 = vpop.f32.mrf.mxu1 }
 0x9f2   : > { %v4068_v60 = vmul.f32 %v5129_v38, %v4049_v23 }
 0x9f3   : > { %v4051_v11 = vpop.f32.mrf.mxu1 }
 0x9f4   : > { %v4069_v58 = vmul.f32 %v5127_v12, %v4051_v11 }
 0x9f5   : > { %v4055_v8 = vpop.f32.mrf.mxu1 }
 0x9f6   : > { %v4070_v32 = vmul.f32 %v5129_v38, %v4055_v8 }
 0x9f7   : > { %v4057_v33 = vpop.f32.mrf.mxu1 }
 0x9f8   : > { %v4071_v39 = vmul.f32 %v5127_v12, %v4057_v33 }
 0x9f9   : > { %v4059_v49 = vpop.f32.mrf.mxu1 }
 0x9fa   : > { %v4072_v35 = vmul.f32 %v5129_v38, %v4059_v49 }
 0x9fb   : > { %v4061_v53 = vpop.f32.mrf.mxu1 }
 0x9fc   : > { %v4073_v7 = vmul.f32 %v5127_v12, %v4061_v53 }
 0x9fe   : > { %4121 = vmatprep.subr.mxu1 %v4073_v7 }
 0x9ff   : > { %4122 = vmatpush1.msra.mxu1 %v4072_v35 }
 0xa00   : > { %4123 = vmatprep.subr.mxu1 %v4071_v39 }
 0xa01   : > { %4124 = vmatpush1.msra.mxu1 %v4070_v32 }
 0xa02   : > { %4125 = vmatprep.subr.mxu1 %v4069_v58 }
 0xa03   : > { %4126 = vmatpush1.msra.mxu1 %v4068_v60 }
 0xa04   : > { %4127 = vmatprep.subr.mxu1 %v4067_v54 }
 0xa05   : > { %4128 = vmatpush1.msra.mxu1 %v4066_v36 }
 0xa06   : > { %4129 = vmatprep.subr.mxu1 %v8644_v52 }
 0xa07   : > { %4130 = vmatpush1.msra.mxu1 %v8645_v37 }
 0xa08   : > { %4131 = vmatprep.subr.mxu1 %v8646_v24 }
 0xa09   : > { %4132 = vmatpush1.msra.mxu1 %v8647_v10 }
 0xa0a   : > { %4133 = vmatprep.subr.mxu1 %v8648_v3 }
 0xa0b   : > { %4134 = vmatpush1.msra.mxu1 %v8649_v51 }
 0xa0c   : > { %4135 = vmatprep.subr.mxu1 %v8650_v17 }
 0xa0d   : > { %4136 = vmatpush1.msra.mxu1 %v8651_v22 }
 0xa0e   : > { %4137 = vmatprep.subr.mxu1 %v8652_v15 }
 0xa0f   : > { %4138 = vmatpush1.msra.mxu1 %v8653_v62 }
 0xa10   : > { %4139 = vmatprep.subr.mxu1 %v8654_v27 }
 0xa11   : > { %4140 = vmatpush1.msra.mxu1 %v8655_v44 }
 0xa12   : > { %4141 = vmatprep.subr.mxu1 %v8656_v50 }
 0xa13   : > { %4142 = vmatpush1.msra.mxu1 %v8657_v61 }
 0xa14   : > { %4143 = vmatprep.subr.mxu1 %v8660_v5 }
 0xa15   : > { %4144 = vmatpush1.msra.mxu1 %v8661_v45 }
 0xa16   : > { %4145 = vmatprep.subr.mxu1 %v1909_v46 }
 0xa17   : > { %4146 = vmatpush1.msra.mxu1 %v8662_v31 }
 0xa18   : > { %4147 = vmatprep.subr.mxu1 %v8664_v4 }
 0xa19   : > { %4148 = vmatpush1.msra.mxu1 %v8665_v41 }
 0xa1a   : > { %4149 = vmatprep.subr.mxu1 %v1905_v26 }
 0xa1b   : > { %4150 = vmatpush1.msra.mxu1 %v8666_v42 }
 0xa1c   : > { %4151 = vmatprep.subr.mxu1 %v8667_v43 }
 0xa1d   : > { %4152 = vmatpush1.msra.mxu1 %v8668_v9 }
 0xa1e   : > { %4186 = vmatmul.mubr.f32.vlgmr.msra.gmra.mxu1 %v4082_v34 }
 0xade   : > { %v4187_v56 = vpop.f32.mrf.mxu1 }
 0xadf   : > { %v4188_v25 = vadd.f32 %v4187_v56, %v4119_v29 }
 0xae0   : > { %v4189_v13 = vpop.f32.mrf.mxu1 }
 0xae1   : > { %v4190_v63 = vadd.f32 %v4189_v13, %v4119_v29 }
 0xae3   : > { %v4194_v57 = vcombine.low %v4188_v25, %v4190_v63 }
 0xae5   : > { %4196 = vst [vmem:[%s311_s23] sm:$0xff] %v4194_v57 }
 0xae6   : > { %5143 = shalt.err (!%p5140_p5)
}
 0xae7   : > { %s5144_s19 = scalar_lea.hbm %s4212_s16, 128  ;;  %s5148_s22 = scalar_lea.hbm %s8217_s7, 256 }
 0xae8   : > { %p5145_p6 = scmp.ne.s32.totalorder %s4212_s16, %s5144_s19  ;;  %p5149_p10 = scmp.lt.s32.totalorder %s4212_s16, %s8217_s7 }
 0xae9   : > { %p5150_p11 = scmp.lt.s32.totalorder %s5148_s22, %s5144_s19 }
 0xaea   : > { %p5146_p7 = pnand %p5145_p6, %p5294_p4 }
 0xaeb   : > { %p5151_p12 = por %p5150_p11, %p5149_p10 }
 0xaec   : > { %p5147_p9 = pneg %p5146_p7 }
 0xaee   : > { %p5152_p13 = pnand %p5151_p12, %p5147_p9 }
 0xaf0   : > { %5155 = shalt.err (!%p5152_p13)
}
 0xaf1   : > { %4538 = dma.vmem_to_hbm [thread:$0]  (%p5294_p4), %s4215_s30, 128, %s4212_s16, %s4198_s17  }
 0xaf2 PF: > { %p4544_p0 = scmp.ge.s32.totalorder %s5206_s29, 2  ;;  %s4226_s15 = sand.u32 1, %s5186_s24  }
 0xaf3   : > { %s4227_s10 = scalar_lea.sflag [#allocation4], %s4226_s15 }
 0xaf4   : > { %p4541_p1 = pnand %p4544_p0, %p5301_p8 }
 0xaf6   : > { %p4542_p2 = pneg %p4541_p1 }
 0xaf8   : > { %5181 = dma.done.wait (%p4542_p2), %s4227_s10, 128  }
 0xaf9   : > { %5183 = vsyncadd (%p4542_p2), %s4227_s10, 4294967168  ;;  %s20_s29 = sadd.s32 1, %s5206_s29   ;;  %s8669_s24 = smov %s5190_s25 }
 0xafa   : > { %p17_p3 = scmp.ge.s32.totalorder %s20_s29, 4   ;;  %s8670_s25 = smov %s5194_s26 }
 0xafb   : > { %s8671_s26 = smov %s5307_s14  ;;  %s8672_s27 = smov %s5202_s28 }
 0xafc   : > { %s8673_s28 = smov %s8675_s9  ;;  %19 = sbr.rel (!%p17_p3) target bundleno = 4 (0x4), region = 86 }
 0xb01   :  { %4232 = vsyncpa [#allocation4], 1 }
 0xb02   :  { %4234 = vsyncpa [#allocation4 + $0x1], 1 }

</bundles_post_ra>
